<compile_context>
chip_gen: v5e
topology: v5e:2x2
jax: 0.10.0
libtpu: 0.0.40
codegen_flags: <defaults>
</compile_context>

<pallas_src>
import functools
import numpy as np
import jax
import jax.numpy as jnp
from jax.experimental import pallas as pl
from jax.experimental.pallas import tpu as pltpu

MAX_1 = 4.0
THETA = MAX_1 - 0.001   # threshold used by create_spike_input_cuda / getSpikes

cfg = {
    'VGG11': [64, 'M', 128, 'M', 256, 256, 'M', 512, 512, 'M', 512, 512, 'M'],
    'VGG16': [64, 64, 'M', 128, 128, 'M', 256, 256, 256, 'M', 512, 512, 512, 'M',
              512, 512, 512, 'M'],
    'repvgg_': [(64, 2), (192, 2), 192, 192, 192, (384, 2), 384, 384, 384, 384, 384,
                (768, 2), 768, 768, 768, 768, 768, 768, 768, 768, 768, 768, 768, 768,
                768, 768, 768, (2560, 2)],
    # scaled-down repvgg-style cfg used for the runnable demo
    'tiny_repvgg': [(8, 2), 8, (16, 2)],
}

_LANE = 128


def _round_up(x, m):
    return (x + m - 1) // m * m


def _pick_tile(dim, maximum, quantum):
    """Largest multiple of `quantum` <= maximum that divides `dim`."""
    best = quantum
    t = quantum
    while t <= min(dim, maximum):
        if dim % t == 0:
            best = t
        t += quantum
    return best


# --------------------------------------------------------------------------
# In-kernel helpers
# --------------------------------------------------------------------------
def _if_rate(v, T, theta):
    """mean_t of IF spikes (soft reset, >= threshold) driven by constant input v (f32)."""
    pot = jnp.zeros_like(v)
    cnt = jnp.zeros_like(v)
    for _ in range(T):                       # T is a small compile-time constant -> unrolled
        pot = pot + v
        s = (pot >= theta).astype(v.dtype)
        cnt = cnt + s
        pot = pot - s * theta
    return cnt * (1.0 / T)


# --------------------------------------------------------------------------
# Pallas kernels
# --------------------------------------------------------------------------
def _conv_row_kernel(*args, stride, B, Cin, Wo, T, theta):
    """Fused 3x3 conv (pad=1) + bias + NewSpike for one output row (all batch items).

    args = [row refs (3*stride of them, each (B,1,Wc,Cin) bf16), w_ref (9*Cin, tn),
            b_ref (1, tn), o_ref (B,1,Wo,tn)].
    Row refs are ordered [(parity p, vertical tap ky) for p in range(stride) for ky in 0..2].
    Tap (ky,kx) uses parity view p = kx % stride at column offset kx // stride, so
    every slice is contiguous; the 9 taps accumulate on the MXU in f32.
    """
    nrow = 3 * stride
    row_refs = args[:nrow]
    w_ref, b_ref, o_ref = args[nrow], args[nrow + 1], args[nrow + 2]
    tn = o_ref.shape[-1]

    rows = [rr[...] for rr in row_refs]                    # (B, 1, Wc, Cin) bf16 each
    acc = jnp.zeros((B * Wo, tn), jnp.float32)
    for ky in range(3):
        for kx in range(3):
            p, c = kx % stride, kx // stride
            a = rows[p * 3 + ky][:, 0, c:c + Wo, :].reshape(B * Wo, Cin)
            w_tap = w_ref[(ky * 3 + kx) * Cin:(ky * 3 + kx + 1) * Cin, :]
            acc = acc + jnp.dot(a, w_tap, preferred_element_type=jnp.float32)

    v = acc + b_ref[...]                                   # (1, tn) broadcast
    v = _if_rate(v, T, theta)                              # NewSpike fused in epilogue
    o_ref[...] = v.reshape(B, 1, Wo, tn).astype(o_ref.dtype)


def _mm_bias_kernel(a_ref, w_ref, b_ref, o_ref):
    """o = a @ w + b (classifier head; sum_spikes(dense)/T == W r + b after the hoist)."""
    v = jnp.dot(a_ref[...], w_ref[...], preferred_element_type=jnp.float32)
    o_ref[...] = (v + b_ref[...]).astype(o_ref.dtype)


def _time_mean_kernel(x_ref, o_ref, *, T):
    """mean over the leading time axis of a (T, SUB, 128) block."""
    o_ref[...] = (jnp.sum(x_ref[...].astype(jnp.float32), axis=0)
                  * (1.0 / T)).astype(o_ref.dtype)


def _pool_spike_kernel(x_ref, o_ref, *, inv_area, T, theta):
    """avg-pool over the k*k window axis fused with NewSpike rate."""
    v = jnp.sum(x_ref[...].astype(jnp.float32), axis=1) * inv_area
    o_ref[...] = _if_rate(v, T, theta).astype(o_ref.dtype)


# --------------------------------------------------------------------------
# Wrappers (layout plumbing in plain JAX, compute in Pallas)
# --------------------------------------------------------------------------
def conv3x3_spike(x, wmat, b2d, c_out, stride, T, theta=THETA, tn_max=512):
    """Fused 3x3 conv (pad=1, stride 1 or 2) + bias + NewSpike on a rate tensor.

    x: (B, H, W, Cin) bf16 rates (NHWC); wmat: (9*Cin, Np) bf16 (rows in (ky,kx,cin)
    order, Np multiple of 128); b2d: (1, Np) f32.  Returns (B, Ho, Wo, c_out).
    No im2col hits HBM: the window gathering happens inside the kernel.
    """
    B, H, W, Cin = x.shape
    Ho = (H + 2 - 3) // stride + 1
    Wo = (W + 2 - 3) // stride + 1
    Np = wmat.shape[1]
    assert Np % _LANE == 0
    tn = _pick_tile(Np, tn_max, _LANE)

    xp = jnp.pad(x.astype(jnp.bfloat16), ((0, 0), (1, 1), (1, 1), (0, 0)))
    # Column-parity views: for stride 2 the horizontal taps land on even/odd padded
    # columns; splitting once in JAX keeps every in-kernel slice contiguous.
    views = [xp[:, :, p::stride, :] for p in range(stride)]

    in_specs, row_arrays = [], []
    for p in range(stride):
        v = views[p]
        for ky in range(3):
            # Block size 1 along H => block index == element row index, so the
            # index_map can address the arbitrary padded row  r*stride + ky.
            in_specs.append(pl.BlockSpec(
                (B, 1, v.shape[2], Cin),
                lambda j, r, ky=ky, s=stride: (0, r * s + ky, 0, 0)))
            row_arrays.append(v)
    in_specs += [pl.BlockSpec((9 * Cin, tn), lambda j, r: (0, j)),   # weights (cached over rows)
                 pl.BlockSpec((1, tn), lambda j, r: (0, j))]         # bias (f32)

    out = pl.pallas_call(
        functools.partial(_conv_row_kernel, stride=stride, B=B, Cin=Cin,
                          Wo=Wo, T=T, theta=theta),
        out_shape=jax.ShapeDtypeStruct((B, Ho, Wo, Np), jnp.bfloat16),
        grid=(Np // tn, Ho),                 # Cout tiles outer, rows inner -> weights resident
        in_specs=in_specs,
        out_specs=pl.BlockSpec((B, 1, Wo, tn), lambda j, r: (0, r, 0, j)),
        compiler_params=pltpu.CompilerParams(
            dimension_semantics=("parallel", "parallel"),
            vmem_limit_bytes=48 * 1024 * 1024),
    )(*row_arrays, wmat, b2d)
    return out[..., :c_out]


def dense_bias(a, w, b2d, n_out, out_dtype=jnp.float32, tm_max=256, tn_max=512):
    """Classifier head: a @ w + b.  a: (M, K) rates; w: (K, Np) bf16 pre-padded; b2d: (1, Np)."""
    M, K = a.shape
    Kw, Np = w.shape
    assert Kw == K and Np % _LANE == 0
    tm = min(tm_max, _round_up(M, 8))
    Mp = _round_up(M, tm)
    tn = _pick_tile(Np, tn_max, _LANE)

    a_p = a.astype(jnp.bfloat16)
    if Mp != M:
        a_p = jnp.pad(a_p, ((0, Mp - M), (0, 0)))

    # N tiles on the OUTER grid axis so the (K, tn) weight slab stays VMEM-resident
    # across the (typically larger) M sweep.
    out = pl.pallas_call(
        _mm_bias_kernel,
        out_shape=jax.ShapeDtypeStruct((Mp, Np), out_dtype),
        grid=(Np // tn, Mp // tm),
        in_specs=[pl.BlockSpec((tm, K), lambda j, i: (i, 0)),
                  pl.BlockSpec((K, tn), lambda j, i: (0, j)),
                  pl.BlockSpec((1, tn), lambda j, i: (0, j))],
        out_specs=pl.BlockSpec((tm, tn), lambda j, i: (i, j)),
        compiler_params=pltpu.CompilerParams(
            dimension_semantics=("parallel", "parallel"),
            vmem_limit_bytes=48 * 1024 * 1024),
    )(a_p, w, b2d)
    return out[:M, :n_out]


def spike_rate_mean(x_tp, T, out_dtype=jnp.bfloat16, sub_max=256):
    """x_tp: (T, P) spikes -> (P,) rate = sum_t / T  (time-major, lane-dense blocks)."""
    P = x_tp.shape[1]
    r_needed = pl.cdiv(P, _LANE)
    sub = min(sub_max, _round_up(r_needed, 8))
    R = _round_up(r_needed, sub)
    Pp = R * _LANE
    xt = x_tp.astype(jnp.bfloat16)
    if Pp != P:
        xt = jnp.pad(xt, ((0, 0), (0, Pp - P)))
    xt = xt.reshape(T, R, _LANE)
    out = pl.pallas_call(
        functools.partial(_time_mean_kernel, T=T),
        out_shape=jax.ShapeDtypeStruct((R, _LANE), out_dtype),
        grid=(R // sub,),
        in_specs=[pl.BlockSpec((T, sub, _LANE), lambda i: (0, i, 0))],
        out_specs=pl.BlockSpec((sub, _LANE), lambda i: (i, 0)),
    )(xt)
    return out.reshape(Pp)[:P]


def avgpool_spike(x, k, T, theta=THETA, out_dtype=jnp.bfloat16):
    """k x k average pooling (stride k) fused with NewSpike.  x: (B, H, W, C) rates."""
    B, H, W, C = x.shape
    Ho, Wo = H // k, W // k
    win = x.reshape(B, Ho, k, Wo, k, C).transpose(0, 1, 3, 2, 4, 5)
    win = win.reshape(B * Ho * Wo, k * k, C)
    M = B * Ho * Wo
    rb = min(64, _round_up(M, 8))
    Mp = _round_up(M, rb)
    if Mp != M:
        win = jnp.pad(win, ((0, Mp - M), (0, 0), (0, 0)))
    out = pl.pallas_call(
        functools.partial(_pool_spike_kernel, inv_area=1.0 / (k * k), T=T, theta=theta),
        out_shape=jax.ShapeDtypeStruct((Mp, C), out_dtype),
        grid=(Mp // rb,),
        in_specs=[pl.BlockSpec((rb, k * k, C), lambda i: (i, 0, 0))],
        out_specs=pl.BlockSpec((rb, C), lambda i: (i, 0)),
    )(win)
    return out[:M].reshape(B, Ho, Wo, C)


# --------------------------------------------------------------------------
# CatVGG model (JAX/Pallas)
# --------------------------------------------------------------------------
class CatVGGPallas:
    def __init__(self, vgg_name, T, bias=True, in_channels=3,
                 pool_kernel=10, classifier_in=2560, num_classes=1000, key=None):
        if key is None:
            key = jax.random.PRNGKey(0)
        self.T = T
        self.pool_kernel = pool_kernel
        self.num_classes = num_classes
        self.layers = []
        c_in = in_channels
        for item in cfg[vgg_name]:
            c_out, stride = item if isinstance(item, tuple) else (item, 1)
            key, wk, bk = jax.random.split(key, 3)
            w = jax.random.normal(wk, (3, 3, c_in, c_out), jnp.float32) / np.sqrt(9 * c_in)
            bb = (jax.random.normal(bk, (c_out,), jnp.float32) * 0.01
                  if bias else jnp.zeros((c_out,), jnp.float32))
            n_pad = _round_up(c_out, _LANE)
            # Pad / reshape / cast weights ONCE at init (bf16 MXU operands, f32 bias).
            wmat = jnp.pad(w.reshape(9 * c_in, c_out),
                           ((0, 0), (0, n_pad - c_out))).astype(jnp.bfloat16)
            b2d = jnp.pad(bb, (0, n_pad - c_out)).reshape(1, n_pad).astype(jnp.float32)
            self.layers.append((wmat, b2d, c_out, stride))
            c_in = c_out
        key, wk, bk = jax.random.split(key, 3)
        fc_w = jax.random.normal(wk, (classifier_in, num_classes),
                                 jnp.float32) / np.sqrt(classifier_in)
        fc_b = jax.random.normal(bk, (num_classes,), jnp.float32) * 0.01
        n_pad = _round_up(num_classes, _LANE)
        self.fc_w = jnp.pad(fc_w, ((0, 0), (0, n_pad - num_classes))).astype(jnp.bfloat16)
        self.fc_b = jnp.pad(fc_b, (0, n_pad - num_classes)).reshape(1, n_pad).astype(jnp.float32)

    def __call__(self, x):
        # x: (N, C, H, W, T) — PyTorch/catSNN spike-tensor layout.
        T = self.T
        N, C, H, W, _ = x.shape
        # Linearity hoist: every conv/dense is per-timestep linear with shared weights
        # and every NewSpike averages over T first, so the network only depends on the
        # spike RATE r = mean_t(spikes).  Compute mean_t ONCE and never carry T again.
        xt = jnp.transpose(x, (4, 0, 2, 3, 1)).reshape(T, N * H * W * C)  # time-major NHWC
        r = spike_rate_mean(xt, T).reshape(N, H, W, C)
        for (wmat, b2d, c_out, stride) in self.layers:
            r = conv3x3_spike(r, wmat, b2d, c_out, stride, T)   # fused conv + bias + NewSpike
        r = avgpool_spike(r, self.pool_kernel, T)               # pool + NewSpike
        feat = r.reshape(N, -1)                                 # (1,1,C) spatial -> features
        out = dense_bias(feat, self.fc_w, self.fc_b, self.num_classes,
                         out_dtype=jnp.float32)
        return out.reshape(N, self.num_classes, 1, 1)           # sum_spikes(dense)/T == W r + b


# --------------------------------------------------------------------------
if __name__ == "__main__":
    T = 4
    N, C, H, W = 2, 3, 16, 16

    # Original: CatVGGPallas('repvgg_', T=16, pool_kernel=10, classifier_in=2560,
    #                        num_classes=1000) on 320x320 inputs.
    model = CatVGGPallas('tiny_repvgg', T=T, bias=True, in_channels=C,
                         pool_kernel=4, classifier_in=16, num_classes=10,
                         key=jax.random.PRNGKey(42))

    # Deterministic spike input exactly like create_spike_input_cuda: replicate an
    # analog image over T and IF-encode with threshold max_1 - 0.001.
    key = jax.random.PRNGKey(0)
    img = jax.random.uniform(key, (N, C, H, W), jnp.float32, 0.0, MAX_1)
    pot = jnp.zeros_like(img)
    spikes = []
    for _ in range(T):
        pot = pot + img
        s = (pot >= THETA).astype(jnp.float32)
        pot = pot - s * THETA
        spikes.append(s)
    x = jnp.stack(spikes, axis=-1)            # (N, C, H, W, T)

    fwd = jax.jit(lambda inp: model(inp))
    out = jax.block_until_ready(fwd(x))
    assert out.shape == (N, 10, 1, 1), out.shape
    assert bool(jnp.all(jnp.isfinite(out)))
    print("KERNEL_OK")
</pallas_src>

<mosaic_0001>
module attributes {stable_mosaic.version = 11 : i64} {
  func.func @_time_mean_kernel(%arg0: i32, %arg1: memref<4x16x128xbf16, #tpu.memory_space<vmem>>, %arg2: memref<16x128xbf16, #tpu.memory_space<vmem>>) attributes {dimension_semantics = [#tpu.dimension_semantics<arbitrary>], iteration_bounds = array<i64: 1>, scalar_prefetch = 0 : i64, scratch_operands = 0 : i64, tpu.core_type = #tpu.core_type<tc>, window_params = [{transform_indices = @transform_0, window_bounds = array<i64: 4, 16, 128>}, {transform_indices = @transform_1, window_bounds = array<i64: 16, 128>}]} {
    %c0 = arith.constant 0 : index
    %c0_0 = arith.constant 0 : index
    %c0_1 = arith.constant 0 : index
    %0 = vector.load %arg1[%c0, %c0_0, %c0_1] : memref<4x16x128xbf16, #tpu.memory_space<vmem>>, vector<4x16x128xbf16>
    %1 = arith.extf %0 : vector<4x16x128xbf16> to vector<4x16x128xf32>
    %cst = arith.constant dense<0.000000e+00> : vector<16x128xf32>
    %2 = vector.multi_reduction <add>, %1, %cst [0] : vector<4x16x128xf32> to vector<16x128xf32>
    %cst_2 = arith.constant 2.500000e-01 : f32
    %3 = vector.broadcast %cst_2 : f32 to vector<16x128xf32>
    %4 = arith.mulf %2, %3 : vector<16x128xf32>
    %5 = arith.truncf %4 : vector<16x128xf32> to vector<16x128xbf16>
    %c0_3 = arith.constant 0 : index
    %c0_4 = arith.constant 0 : index
    %6 = vector.load %arg2[%c0_3, %c0_4] : memref<16x128xbf16, #tpu.memory_space<vmem>>, vector<16x128xbf16>
    tpu.vector_store %arg2[%c0_3, %c0_4], %5 {strides = array<i32>} : memref<16x128xbf16, #tpu.memory_space<vmem>>, vector<16x128xbf16>,
    return
  }
  func.func @transform_0(%arg0: i32) -> (i32, i32, i32) {
    %c0_i32 = arith.constant 0 : i32
    %c0_i32_0 = arith.constant 0 : i32
    %c0_i32_1 = arith.constant 0 : i32
    return %c0_i32, %arg0, %c0_i32_0 : i32, i32, i32
  }
  func.func @transform_1(%arg0: i32) -> (i32, i32) {
    %c0_i32 = arith.constant 0 : i32
    %c0_i32_0 = arith.constant 0 : i32
    return %arg0, %c0_i32 : i32, i32
  }
}

module attributes {stable_mosaic.version = 11 : i64} {
  func.func @_conv_row_kernel(%arg0: i32, %arg1: i32, %arg2: memref<2x1x9x3xbf16, #tpu.memory_space<vmem>>, %arg3: memref<2x1x9x3xbf16, #tpu.memory_space<vmem>>, %arg4: memref<2x1x9x3xbf16, #tpu.memory_space<vmem>>, %arg5: memref<2x1x9x3xbf16, #tpu.memory_space<vmem>>, %arg6: memref<2x1x9x3xbf16, #tpu.memory_space<vmem>>, %arg7: memref<2x1x9x3xbf16, #tpu.memory_space<vmem>>, %arg8: memref<27x128xbf16, #tpu.memory_space<vmem>>, %arg9: memref<1x128xf32, #tpu.memory_space<vmem>>, %arg10: memref<2x1x8x128xbf16, #tpu.memory_space<vmem>>) attributes {dimension_semantics = [#tpu.dimension_semantics<parallel>, #tpu.dimension_semantics<parallel>], iteration_bounds = array<i64: 1, 8>, scalar_prefetch = 0 : i64, scratch_operands = 0 : i64, tpu.core_type = #tpu.core_type<tc>, window_params = [{transform_indices = @transform_0, window_bounds = array<i64: 2, 1, 9, 3>}, {transform_indices = @transform_1, window_bounds = array<i64: 2, 1, 9, 3>}, {transform_indices = @transform_2, window_bounds = array<i64: 2, 1, 9, 3>}, {transform_indices = @transform_3, window_bounds = array<i64: 2, 1, 9, 3>}, {transform_indices = @transform_4, window_bounds = array<i64: 2, 1, 9, 3>}, {transform_indices = @transform_5, window_bounds = array<i64: 2, 1, 9, 3>}, {transform_indices = @transform_6, window_bounds = array<i64: 27, 128>}, {transform_indices = @transform_7, window_bounds = array<i64: 1, 128>}, {transform_indices = @transform_8, window_bounds = array<i64: 2, 1, 8, 128>}]} {
    %c0 = arith.constant 0 : index
    %c0_0 = arith.constant 0 : index
    %c0_1 = arith.constant 0 : index
    %c0_2 = arith.constant 0 : index
    %0 = vector.load %arg2[%c0, %c0_0, %c0_1, %c0_2] : memref<2x1x9x3xbf16, #tpu.memory_space<vmem>>, vector<2x1x9x3xbf16>
    %c0_3 = arith.constant 0 : index
    %c0_4 = arith.constant 0 : index
    %c0_5 = arith.constant 0 : index
    %c0_6 = arith.constant 0 : index
    %1 = vector.load %arg3[%c0_3, %c0_4, %c0_5, %c0_6] : memref<2x1x9x3xbf16, #tpu.memory_space<vmem>>, vector<2x1x9x3xbf16>
    %c0_7 = arith.constant 0 : index
    %c0_8 = arith.constant 0 : index
    %c0_9 = arith.constant 0 : index
    %c0_10 = arith.constant 0 : index
    %2 = vector.load %arg4[%c0_7, %c0_8, %c0_9, %c0_10] : memref<2x1x9x3xbf16, #tpu.memory_space<vmem>>, vector<2x1x9x3xbf16>
    %c0_11 = arith.constant 0 : index
    %c0_12 = arith.constant 0 : index
    %c0_13 = arith.constant 0 : index
    %c0_14 = arith.constant 0 : index
    %3 = vector.load %arg5[%c0_11, %c0_12, %c0_13, %c0_14] : memref<2x1x9x3xbf16, #tpu.memory_space<vmem>>, vector<2x1x9x3xbf16>
    %c0_15 = arith.constant 0 : index
    %c0_16 = arith.constant 0 : index
    %c0_17 = arith.constant 0 : index
    %c0_18 = arith.constant 0 : index
    %4 = vector.load %arg6[%c0_15, %c0_16, %c0_17, %c0_18] : memref<2x1x9x3xbf16, #tpu.memory_space<vmem>>, vector<2x1x9x3xbf16>
    %c0_19 = arith.constant 0 : index
    %c0_20 = arith.constant 0 : index
    %c0_21 = arith.constant 0 : index
    %c0_22 = arith.constant 0 : index
    %5 = vector.load %arg7[%c0_19, %c0_20, %c0_21, %c0_22] : memref<2x1x9x3xbf16, #tpu.memory_space<vmem>>, vector<2x1x9x3xbf16>
    %cst = arith.constant 0.000000e+00 : f32
    %6 = vector.broadcast %cst : f32 to vector<16x128xf32>
    %7 = vector.extract_strided_slice %0 {offsets = [0, 0, 0, 0], sizes = [2, 1, 8, 3], strides = [1, 1, 1, 1]} : vector<2x1x9x3xbf16> to vector<2x1x8x3xbf16>
    %8 = vector.shape_cast %7 : vector<2x1x8x3xbf16> to vector<2x8x3xbf16>
    %9 = vector.shape_cast %8 : vector<2x8x3xbf16> to vector<16x3xbf16>
    %c0_23 = arith.constant 0 : index
    %c0_24 = arith.constant 0 : index
    %10 = vector.load %arg8[%c0_23, %c0_24] : memref<27x128xbf16, #tpu.memory_space<vmem>>, vector<3x128xbf16>
    %cst_25 = arith.constant dense<0.000000e+00> : vector<16x128xf32>
    %11 = tpu.matmul %9, %10, %cst_25 {dimension_numbers = #tpu.dot_dimension_numbers<[1], [0], [0], [1], [0, 0, 1, 1], [], []>} : vector<16x3xbf16>, vector<3x128xbf16>, vector<16x128xf32> -> vector<16x128xf32>
    %12 = arith.addf %6, %11 : vector<16x128xf32>
    %13 = vector.extract_strided_slice %3 {offsets = [0, 0, 0, 0], sizes = [2, 1, 8, 3], strides = [1, 1, 1, 1]} : vector<2x1x9x3xbf16> to vector<2x1x8x3xbf16>
    %14 = vector.shape_cast %13 : vector<2x1x8x3xbf16> to vector<2x8x3xbf16>
    %15 = vector.shape_cast %14 : vector<2x8x3xbf16> to vector<16x3xbf16>
    %c3 = arith.constant 3 : index
    %c0_26 = arith.constant 0 : index
    %16 = vector.load %arg8[%c3, %c0_26] : memref<27x128xbf16, #tpu.memory_space<vmem>>, vector<3x128xbf16>
    %cst_27 = arith.constant dense<0.000000e+00> : vector<16x128xf32>
    %17 = tpu.matmul %15, %16, %cst_27 {dimension_numbers = #tpu.dot_dimension_numbers<[1], [0], [0], [1], [0, 0, 1, 1], [], []>} : vector<16x3xbf16>, vector<3x128xbf16>, vector<16x128xf32> -> vector<16x128xf32>
    %18 = arith.addf %12, %17 : vector<16x128xf32>
    %19 = vector.extract_strided_slice %0 {offsets = [0, 0, 1, 0], sizes = [2, 1, 8, 3], strides = [1, 1, 1, 1]} : vector<2x1x9x3xbf16> to vector<2x1x8x3xbf16>
    %20 = vector.shape_cast %19 : vector<2x1x8x3xbf16> to vector<2x8x3xbf16>
    %21 = vector.shape_cast %20 : vector<2x8x3xbf16> to vector<16x3xbf16>
    %c6 = arith.constant 6 : index
    %c0_28 = arith.constant 0 : index
    %22 = vector.load %arg8[%c6, %c0_28] : memref<27x128xbf16, #tpu.memory_space<vmem>>, vector<3x128xbf16>
    %cst_29 = arith.constant dense<0.000000e+00> : vector<16x128xf32>
    %23 = tpu.matmul %21, %22, %cst_29 {dimension_numbers = #tpu.dot_dimension_numbers<[1], [0], [0], [1], [0, 0, 1, 1], [], []>} : vector<16x3xbf16>, vector<3x128xbf16>, vector<16x128xf32> -> vector<16x128xf32>
    %24 = arith.addf %18, %23 : vector<16x128xf32>
    %25 = vector.extract_strided_slice %1 {offsets = [0, 0, 0, 0], sizes = [2, 1, 8, 3], strides = [1, 1, 1, 1]} : vector<2x1x9x3xbf16> to vector<2x1x8x3xbf16>
    %26 = vector.shape_cast %25 : vector<2x1x8x3xbf16> to vector<2x8x3xbf16>
    %27 = vector.shape_cast %26 : vector<2x8x3xbf16> to vector<16x3xbf16>
    %c9 = arith.constant 9 : index
    %c0_30 = arith.constant 0 : index
    %28 = vector.load %arg8[%c9, %c0_30] : memref<27x128xbf16, #tpu.memory_space<vmem>>, vector<3x128xbf16>
    %cst_31 = arith.constant dense<0.000000e+00> : vector<16x128xf32>
    %29 = tpu.matmul %27, %28, %cst_31 {dimension_numbers = #tpu.dot_dimension_numbers<[1], [0], [0], [1], [0, 0, 1, 1], [], []>} : vector<16x3xbf16>, vector<3x128xbf16>, vector<16x128xf32> -> vector<16x128xf32>
    %30 = arith.addf %24, %29 : vector<16x128xf32>
    %31 = vector.extract_strided_slice %4 {offsets = [0, 0, 0, 0], sizes = [2, 1, 8, 3], strides = [1, 1, 1, 1]} : vector<2x1x9x3xbf16> to vector<2x1x8x3xbf16>
    %32 = vector.shape_cast %31 : vector<2x1x8x3xbf16> to vector<2x8x3xbf16>
    %33 = vector.shape_cast %32 : vector<2x8x3xbf16> to vector<16x3xbf16>
    %c12 = arith.constant 12 : index
    %c0_32 = arith.constant 0 : index
    %34 = vector.load %arg8[%c12, %c0_32] : memref<27x128xbf16, #tpu.memory_space<vmem>>, vector<3x128xbf16>
    %cst_33 = arith.constant dense<0.000000e+00> : vector<16x128xf32>
    %35 = tpu.matmul %33, %34, %cst_33 {dimension_numbers = #tpu.dot_dimension_numbers<[1], [0], [0], [1], [0, 0, 1, 1], [], []>} : vector<16x3xbf16>, vector<3x128xbf16>, vector<16x128xf32> -> vector<16x128xf32>
    %36 = arith.addf %30, %35 : vector<16x128xf32>
    %37 = vector.extract_strided_slice %1 {offsets = [0, 0, 1, 0], sizes = [2, 1, 8, 3], strides = [1, 1, 1, 1]} : vector<2x1x9x3xbf16> to vector<2x1x8x3xbf16>
    %38 = vector.shape_cast %37 : vector<2x1x8x3xbf16> to vector<2x8x3xbf16>
    %39 = vector.shape_cast %38 : vector<2x8x3xbf16> to vector<16x3xbf16>
    %c15 = arith.constant 15 : index
    %c0_34 = arith.constant 0 : index
    %40 = vector.load %arg8[%c15, %c0_34] : memref<27x128xbf16, #tpu.memory_space<vmem>>, vector<3x128xbf16>
    %cst_35 = arith.constant dense<0.000000e+00> : vector<16x128xf32>
    %41 = tpu.matmul %39, %40, %cst_35 {dimension_numbers = #tpu.dot_dimension_numbers<[1], [0], [0], [1], [0, 0, 1, 1], [], []>} : vector<16x3xbf16>, vector<3x128xbf16>, vector<16x128xf32> -> vector<16x128xf32>
    %42 = arith.addf %36, %41 : vector<16x128xf32>
    %43 = vector.extract_strided_slice %2 {offsets = [0, 0, 0, 0], sizes = [2, 1, 8, 3], strides = [1, 1, 1, 1]} : vector<2x1x9x3xbf16> to vector<2x1x8x3xbf16>
    %44 = vector.shape_cast %43 : vector<2x1x8x3xbf16> to vector<2x8x3xbf16>
    %45 = vector.shape_cast %44 : vector<2x8x3xbf16> to vector<16x3xbf16>
    %c18 = arith.constant 18 : index
    %c0_36 = arith.constant 0 : index
    %46 = vector.load %arg8[%c18, %c0_36] : memref<27x128xbf16, #tpu.memory_space<vmem>>, vector<3x128xbf16>
    %cst_37 = arith.constant dense<0.000000e+00> : vector<16x128xf32>
    %47 = tpu.matmul %45, %46, %cst_37 {dimension_numbers = #tpu.dot_dimension_numbers<[1], [0], [0], [1], [0, 0, 1, 1], [], []>} : vector<16x3xbf16>, vector<3x128xbf16>, vector<16x128xf32> -> vector<16x128xf32>
    %48 = arith.addf %42, %47 : vector<16x128xf32>
    %49 = vector.extract_strided_slice %5 {offsets = [0, 0, 0, 0], sizes = [2, 1, 8, 3], strides = [1, 1, 1, 1]} : vector<2x1x9x3xbf16> to vector<2x1x8x3xbf16>
    %50 = vector.shape_cast %49 : vector<2x1x8x3xbf16> to vector<2x8x3xbf16>
    %51 = vector.shape_cast %50 : vector<2x8x3xbf16> to vector<16x3xbf16>
    %c21 = arith.constant 21 : index
    %c0_38 = arith.constant 0 : index
    %52 = vector.load %arg8[%c21, %c0_38] : memref<27x128xbf16, #tpu.memory_space<vmem>>, vector<3x128xbf16>
    %cst_39 = arith.constant dense<0.000000e+00> : vector<16x128xf32>
    %53 = tpu.matmul %51, %52, %cst_39 {dimension_numbers = #tpu.dot_dimension_numbers<[1], [0], [0], [1], [0, 0, 1, 1], [], []>} : vector<16x3xbf16>, vector<3x128xbf16>, vector<16x128xf32> -> vector<16x128xf32>
    %54 = arith.addf %48, %53 : vector<16x128xf32>
    %55 = vector.extract_strided_slice %2 {offsets = [0, 0, 1, 0], sizes = [2, 1, 8, 3], strides = [1, 1, 1, 1]} : vector<2x1x9x3xbf16> to vector<2x1x8x3xbf16>
    %56 = vector.shape_cast %55 : vector<2x1x8x3xbf16> to vector<2x8x3xbf16>
    %57 = vector.shape_cast %56 : vector<2x8x3xbf16> to vector<16x3xbf16>
    %c24 = arith.constant 24 : index
    %c0_40 = arith.constant 0 : index
    %58 = vector.load %arg8[%c24, %c0_40] : memref<27x128xbf16, #tpu.memory_space<vmem>>, vector<3x128xbf16>
    %cst_41 = arith.constant dense<0.000000e+00> : vector<16x128xf32>
    %59 = tpu.matmul %57, %58, %cst_41 {dimension_numbers = #tpu.dot_dimension_numbers<[1], [0], [0], [1], [0, 0, 1, 1], [], []>} : vector<16x3xbf16>, vector<3x128xbf16>, vector<16x128xf32> -> vector<16x128xf32>
    %60 = arith.addf %54, %59 : vector<16x128xf32>
    %c0_42 = arith.constant 0 : index
    %c0_43 = arith.constant 0 : index
    %61 = vector.load %arg9[%c0_42, %c0_43] : memref<1x128xf32, #tpu.memory_space<vmem>>, vector<1x128xf32>
    %62 = vector.broadcast %61 : vector<1x128xf32> to vector<16x128xf32>
    %63 = arith.addf %60, %62 : vector<16x128xf32>
    %cst_44 = arith.constant 0.000000e+00 : f32
    %64 = vector.broadcast %cst_44 : f32 to vector<16x128xf32>
    %cst_45 = arith.constant 0.000000e+00 : f32
    %65 = vector.broadcast %cst_45 : f32 to vector<16x128xf32>
    %66 = arith.addf %64, %63 : vector<16x128xf32>
    %cst_46 = arith.constant 3.999000e+00 : f32
    %67 = vector.broadcast %cst_46 : f32 to vector<16x128xf32>
    %68 = arith.cmpf oge, %66, %67 : vector<16x128xf32>
    %69 = arith.extui %68 : vector<16x128xi1> to vector<16x128xi32>
    %70 = arith.sitofp %69 : vector<16x128xi32> to vector<16x128xf32>
    %71 = arith.addf %65, %70 : vector<16x128xf32>
    %cst_47 = arith.constant 3.999000e+00 : f32
    %72 = vector.broadcast %cst_47 : f32 to vector<16x128xf32>
    %73 = arith.mulf %70, %72 : vector<16x128xf32>
    %74 = arith.subf %66, %73 : vector<16x128xf32>
    %75 = arith.addf %74, %63 : vector<16x128xf32>
    %cst_48 = arith.constant 3.999000e+00 : f32
    %76 = vector.broadcast %cst_48 : f32 to vector<16x128xf32>
    %77 = arith.cmpf oge, %75, %76 : vector<16x128xf32>
    %78 = arith.extui %77 : vector<16x128xi1> to vector<16x128xi32>
    %79 = arith.sitofp %78 : vector<16x128xi32> to vector<16x128xf32>
    %80 = arith.addf %71, %79 : vector<16x128xf32>
    %cst_49 = arith.constant 3.999000e+00 : f32
    %81 = vector.broadcast %cst_49 : f32 to vector<16x128xf32>
    %82 = arith.mulf %79, %81 : vector<16x128xf32>
    %83 = arith.subf %75, %82 : vector<16x128xf32>
    %84 = arith.addf %83, %63 : vector<16x128xf32>
    %cst_50 = arith.constant 3.999000e+00 : f32
    %85 = vector.broadcast %cst_50 : f32 to vector<16x128xf32>
    %86 = arith.cmpf oge, %84, %85 : vector<16x128xf32>
    %87 = arith.extui %86 : vector<16x128xi1> to vector<16x128xi32>
    %88 = arith.sitofp %87 : vector<16x128xi32> to vector<16x128xf32>
    %89 = arith.addf %80, %88 : vector<16x128xf32>
    %cst_51 = arith.constant 3.999000e+00 : f32
    %90 = vector.broadcast %cst_51 : f32 to vector<16x128xf32>
    %91 = arith.mulf %88, %90 : vector<16x128xf32>
    %92 = arith.subf %84, %91 : vector<16x128xf32>
    %93 = arith.addf %92, %63 : vector<16x128xf32>
    %cst_52 = arith.constant 3.999000e+00 : f32
    %94 = vector.broadcast %cst_52 : f32 to vector<16x128xf32>
    %95 = arith.cmpf oge, %93, %94 : vector<16x128xf32>
    %96 = arith.extui %95 : vector<16x128xi1> to vector<16x128xi32>
    %97 = arith.sitofp %96 : vector<16x128xi32> to vector<16x128xf32>
    %98 = arith.addf %89, %97 : vector<16x128xf32>
    %cst_53 = arith.constant 2.500000e-01 : f32
    %99 = vector.broadcast %cst_53 : f32 to vector<16x128xf32>
    %100 = arith.mulf %98, %99 : vector<16x128xf32>
    %101 = vector.shape_cast %100 : vector<16x128xf32> to vector<2x1x8x128xf32>
    %102 = arith.truncf %101 : vector<2x1x8x128xf32> to vector<2x1x8x128xbf16>
    %c0_54 = arith.constant 0 : index
    %c0_55 = arith.constant 0 : index
    %c0_56 = arith.constant 0 : index
    %c0_57 = arith.constant 0 : index
    %103 = vector.load %arg10[%c0_54, %c0_55, %c0_56, %c0_57] : memref<2x1x8x128xbf16, #tpu.memory_space<vmem>>, vector<2x1x8x128xbf16>
    tpu.vector_store %arg10[%c0_54, %c0_55, %c0_56, %c0_57], %102 {strides = array<i32>} : memref<2x1x8x128xbf16, #tpu.memory_space<vmem>>, vector<2x1x8x128xbf16>,
    return
  }
  func.func @transform_0(%arg0: i32, %arg1: i32) -> (i32, i32, i32, i32) {
    %c2_i32 = arith.constant 2 : i32
    %0 = arith.muli %arg1, %c2_i32 : i32
    %c0_i32 = arith.constant 0 : i32
    %1 = arith.addi %0, %c0_i32 : i32
    %c0_i32_0 = arith.constant 0 : i32
    %c0_i32_1 = arith.constant 0 : i32
    %c0_i32_2 = arith.constant 0 : i32
    %c0_i32_3 = arith.constant 0 : i32
    return %c0_i32_0, %1, %c0_i32_1, %c0_i32_2 : i32, i32, i32, i32
  }
  func.func @transform_1(%arg0: i32, %arg1: i32) -> (i32, i32, i32, i32) {
    %c2_i32 = arith.constant 2 : i32
    %0 = arith.muli %arg1, %c2_i32 : i32
    %c1_i32 = arith.constant 1 : i32
    %1 = arith.addi %0, %c1_i32 : i32
    %c0_i32 = arith.constant 0 : i32
    %c0_i32_0 = arith.constant 0 : i32
    %c0_i32_1 = arith.constant 0 : i32
    %c0_i32_2 = arith.constant 0 : i32
    return %c0_i32, %1, %c0_i32_0, %c0_i32_1 : i32, i32, i32, i32
  }
  func.func @transform_2(%arg0: i32, %arg1: i32) -> (i32, i32, i32, i32) {
    %c2_i32 = arith.constant 2 : i32
    %0 = arith.muli %arg1, %c2_i32 : i32
    %c2_i32_0 = arith.constant 2 : i32
    %1 = arith.addi %0, %c2_i32_0 : i32
    %c0_i32 = arith.constant 0 : i32
    %c0_i32_1 = arith.constant 0 : i32
    %c0_i32_2 = arith.constant 0 : i32
    %c0_i32_3 = arith.constant 0 : i32
    return %c0_i32, %1, %c0_i32_1, %c0_i32_2 : i32, i32, i32, i32
  }
  func.func @transform_3(%arg0: i32, %arg1: i32) -> (i32, i32, i32, i32) {
    %c2_i32 = arith.constant 2 : i32
    %0 = arith.muli %arg1, %c2_i32 : i32
    %c0_i32 = arith.constant 0 : i32
    %1 = arith.addi %0, %c0_i32 : i32
    %c0_i32_0 = arith.constant 0 : i32
    %c0_i32_1 = arith.constant 0 : i32
    %c0_i32_2 = arith.constant 0 : i32
    %c0_i32_3 = arith.constant 0 : i32
    return %c0_i32_0, %1, %c0_i32_1, %c0_i32_2 : i32, i32, i32, i32
  }
  func.func @transform_4(%arg0: i32, %arg1: i32) -> (i32, i32, i32, i32) {
    %c2_i32 = arith.constant 2 : i32
    %0 = arith.muli %arg1, %c2_i32 : i32
    %c1_i32 = arith.constant 1 : i32
    %1 = arith.addi %0, %c1_i32 : i32
    %c0_i32 = arith.constant 0 : i32
    %c0_i32_0 = arith.constant 0 : i32
    %c0_i32_1 = arith.constant 0 : i32
    %c0_i32_2 = arith.constant 0 : i32
    return %c0_i32, %1, %c0_i32_0, %c0_i32_1 : i32, i32, i32, i32
  }
  func.func @transform_5(%arg0: i32, %arg1: i32) -> (i32, i32, i32, i32) {
    %c2_i32 = arith.constant 2 : i32
    %0 = arith.muli %arg1, %c2_i32 : i32
    %c2_i32_0 = arith.constant 2 : i32
    %1 = arith.addi %0, %c2_i32_0 : i32
    %c0_i32 = arith.constant 0 : i32
    %c0_i32_1 = arith.constant 0 : i32
    %c0_i32_2 = arith.constant 0 : i32
    %c0_i32_3 = arith.constant 0 : i32
    return %c0_i32, %1, %c0_i32_1, %c0_i32_2 : i32, i32, i32, i32
  }
  func.func @transform_6(%arg0: i32, %arg1: i32) -> (i32, i32) {
    %c0_i32 = arith.constant 0 : i32
    %c0_i32_0 = arith.constant 0 : i32
    return %c0_i32, %arg0 : i32, i32
  }
  func.func @transform_7(%arg0: i32, %arg1: i32) -> (i32, i32) {
    %c0_i32 = arith.constant 0 : i32
    %c0_i32_0 = arith.constant 0 : i32
    return %c0_i32, %arg0 : i32, i32
  }
  func.func @transform_8(%arg0: i32, %arg1: i32) -> (i32, i32, i32, i32) {
    %c0_i32 = arith.constant 0 : i32
    %c0_i32_0 = arith.constant 0 : i32
    %c0_i32_1 = arith.constant 0 : i32
    return %c0_i32, %arg1, %c0_i32_0, %arg0 : i32, i32, i32, i32
  }
}

module attributes {stable_mosaic.version = 11 : i64} {
  func.func @_conv_row_kernel(%arg0: i32, %arg1: i32, %arg2: memref<2x1x10x8xbf16, #tpu.memory_space<vmem>>, %arg3: memref<2x1x10x8xbf16, #tpu.memory_space<vmem>>, %arg4: memref<2x1x10x8xbf16, #tpu.memory_space<vmem>>, %arg5: memref<72x128xbf16, #tpu.memory_space<vmem>>, %arg6: memref<1x128xf32, #tpu.memory_space<vmem>>, %arg7: memref<2x1x8x128xbf16, #tpu.memory_space<vmem>>) attributes {dimension_semantics = [#tpu.dimension_semantics<parallel>, #tpu.dimension_semantics<parallel>], iteration_bounds = array<i64: 1, 8>, scalar_prefetch = 0 : i64, scratch_operands = 0 : i64, tpu.core_type = #tpu.core_type<tc>, window_params = [{transform_indices = @transform_0, window_bounds = array<i64: 2, 1, 10, 8>}, {transform_indices = @transform_1, window_bounds = array<i64: 2, 1, 10, 8>}, {transform_indices = @transform_2, window_bounds = array<i64: 2, 1, 10, 8>}, {transform_indices = @transform_3, window_bounds = array<i64: 72, 128>}, {transform_indices = @transform_4, window_bounds = array<i64: 1, 128>}, {transform_indices = @transform_5, window_bounds = array<i64: 2, 1, 8, 128>}]} {
    %c0 = arith.constant 0 : index
    %c0_0 = arith.constant 0 : index
    %c0_1 = arith.constant 0 : index
    %c0_2 = arith.constant 0 : index
    %0 = vector.load %arg2[%c0, %c0_0, %c0_1, %c0_2] : memref<2x1x10x8xbf16, #tpu.memory_space<vmem>>, vector<2x1x10x8xbf16>
    %c0_3 = arith.constant 0 : index
    %c0_4 = arith.constant 0 : index
    %c0_5 = arith.constant 0 : index
    %c0_6 = arith.constant 0 : index
    %1 = vector.load %arg3[%c0_3, %c0_4, %c0_5, %c0_6] : memref<2x1x10x8xbf16, #tpu.memory_space<vmem>>, vector<2x1x10x8xbf16>
    %c0_7 = arith.constant 0 : index
    %c0_8 = arith.constant 0 : index
    %c0_9 = arith.constant 0 : index
    %c0_10 = arith.constant 0 : index
    %2 = vector.load %arg4[%c0_7, %c0_8, %c0_9, %c0_10] : memref<2x1x10x8xbf16, #tpu.memory_space<vmem>>, vector<2x1x10x8xbf16>
    %cst = arith.constant 0.000000e+00 : f32
    %3 = vector.broadcast %cst : f32 to vector<16x128xf32>
    %4 = vector.extract_strided_slice %0 {offsets = [0, 0, 0, 0], sizes = [2, 1, 8, 8], strides = [1, 1, 1, 1]} : vector<2x1x10x8xbf16> to vector<2x1x8x8xbf16>
    %5 = vector.shape_cast %4 : vector<2x1x8x8xbf16> to vector<2x8x8xbf16>
    %6 = vector.shape_cast %5 : vector<2x8x8xbf16> to vector<16x8xbf16>
    %c0_11 = arith.constant 0 : index
    %c0_12 = arith.constant 0 : index
    %7 = vector.load %arg5[%c0_11, %c0_12] : memref<72x128xbf16, #tpu.memory_space<vmem>>, vector<8x128xbf16>
    %cst_13 = arith.constant dense<0.000000e+00> : vector<16x128xf32>
    %8 = tpu.matmul %6, %7, %cst_13 {dimension_numbers = #tpu.dot_dimension_numbers<[1], [0], [0], [1], [0, 0, 1, 1], [], []>} : vector<16x8xbf16>, vector<8x128xbf16>, vector<16x128xf32> -> vector<16x128xf32>
    %9 = arith.addf %3, %8 : vector<16x128xf32>
    %10 = vector.extract_strided_slice %0 {offsets = [0, 0, 1, 0], sizes = [2, 1, 8, 8], strides = [1, 1, 1, 1]} : vector<2x1x10x8xbf16> to vector<2x1x8x8xbf16>
    %11 = vector.shape_cast %10 : vector<2x1x8x8xbf16> to vector<2x8x8xbf16>
    %12 = vector.shape_cast %11 : vector<2x8x8xbf16> to vector<16x8xbf16>
    %c8 = arith.constant 8 : index
    %c0_14 = arith.constant 0 : index
    %13 = vector.load %arg5[%c8, %c0_14] : memref<72x128xbf16, #tpu.memory_space<vmem>>, vector<8x128xbf16>
    %cst_15 = arith.constant dense<0.000000e+00> : vector<16x128xf32>
    %14 = tpu.matmul %12, %13, %cst_15 {dimension_numbers = #tpu.dot_dimension_numbers<[1], [0], [0], [1], [0, 0, 1, 1], [], []>} : vector<16x8xbf16>, vector<8x128xbf16>, vector<16x128xf32> -> vector<16x128xf32>
    %15 = arith.addf %9, %14 : vector<16x128xf32>
    %16 = vector.extract_strided_slice %0 {offsets = [0, 0, 2, 0], sizes = [2, 1, 8, 8], strides = [1, 1, 1, 1]} : vector<2x1x10x8xbf16> to vector<2x1x8x8xbf16>
    %17 = vector.shape_cast %16 : vector<2x1x8x8xbf16> to vector<2x8x8xbf16>
    %18 = vector.shape_cast %17 : vector<2x8x8xbf16> to vector<16x8xbf16>
    %c16 = arith.constant 16 : index
    %c0_16 = arith.constant 0 : index
    %19 = vector.load %arg5[%c16, %c0_16] : memref<72x128xbf16, #tpu.memory_space<vmem>>, vector<8x128xbf16>
    %cst_17 = arith.constant dense<0.000000e+00> : vector<16x128xf32>
    %20 = tpu.matmul %18, %19, %cst_17 {dimension_numbers = #tpu.dot_dimension_numbers<[1], [0], [0], [1], [0, 0, 1, 1], [], []>} : vector<16x8xbf16>, vector<8x128xbf16>, vector<16x128xf32> -> vector<16x128xf32>
    %21 = arith.addf %15, %20 : vector<16x128xf32>
    %22 = vector.extract_strided_slice %1 {offsets = [0, 0, 0, 0], sizes = [2, 1, 8, 8], strides = [1, 1, 1, 1]} : vector<2x1x10x8xbf16> to vector<2x1x8x8xbf16>
    %23 = vector.shape_cast %22 : vector<2x1x8x8xbf16> to vector<2x8x8xbf16>
    %24 = vector.shape_cast %23 : vector<2x8x8xbf16> to vector<16x8xbf16>
    %c24 = arith.constant 24 : index
    %c0_18 = arith.constant 0 : index
    %25 = vector.load %arg5[%c24, %c0_18] : memref<72x128xbf16, #tpu.memory_space<vmem>>, vector<8x128xbf16>
    %cst_19 = arith.constant dense<0.000000e+00> : vector<16x128xf32>
    %26 = tpu.matmul %24, %25, %cst_19 {dimension_numbers = #tpu.dot_dimension_numbers<[1], [0], [0], [1], [0, 0, 1, 1], [], []>} : vector<16x8xbf16>, vector<8x128xbf16>, vector<16x128xf32> -> vector<16x128xf32>
    %27 = arith.addf %21, %26 : vector<16x128xf32>
    %28 = vector.extract_strided_slice %1 {offsets = [0, 0, 1, 0], sizes = [2, 1, 8, 8], strides = [1, 1, 1, 1]} : vector<2x1x10x8xbf16> to vector<2x1x8x8xbf16>
    %29 = vector.shape_cast %28 : vector<2x1x8x8xbf16> to vector<2x8x8xbf16>
    %30 = vector.shape_cast %29 : vector<2x8x8xbf16> to vector<16x8xbf16>
    %c32 = arith.constant 32 : index
    %c0_20 = arith.constant 0 : index
    %31 = vector.load %arg5[%c32, %c0_20] : memref<72x128xbf16, #tpu.memory_space<vmem>>, vector<8x128xbf16>
    %cst_21 = arith.constant dense<0.000000e+00> : vector<16x128xf32>
    %32 = tpu.matmul %30, %31, %cst_21 {dimension_numbers = #tpu.dot_dimension_numbers<[1], [0], [0], [1], [0, 0, 1, 1], [], []>} : vector<16x8xbf16>, vector<8x128xbf16>, vector<16x128xf32> -> vector<16x128xf32>
    %33 = arith.addf %27, %32 : vector<16x128xf32>
    %34 = vector.extract_strided_slice %1 {offsets = [0, 0, 2, 0], sizes = [2, 1, 8, 8], strides = [1, 1, 1, 1]} : vector<2x1x10x8xbf16> to vector<2x1x8x8xbf16>
    %35 = vector.shape_cast %34 : vector<2x1x8x8xbf16> to vector<2x8x8xbf16>
    %36 = vector.shape_cast %35 : vector<2x8x8xbf16> to vector<16x8xbf16>
    %c40 = arith.constant 40 : index
    %c0_22 = arith.constant 0 : index
    %37 = vector.load %arg5[%c40, %c0_22] : memref<72x128xbf16, #tpu.memory_space<vmem>>, vector<8x128xbf16>
    %cst_23 = arith.constant dense<0.000000e+00> : vector<16x128xf32>
    %38 = tpu.matmul %36, %37, %cst_23 {dimension_numbers = #tpu.dot_dimension_numbers<[1], [0], [0], [1], [0, 0, 1, 1], [], []>} : vector<16x8xbf16>, vector<8x128xbf16>, vector<16x128xf32> -> vector<16x128xf32>
    %39 = arith.addf %33, %38 : vector<16x128xf32>
    %40 = vector.extract_strided_slice %2 {offsets = [0, 0, 0, 0], sizes = [2, 1, 8, 8], strides = [1, 1, 1, 1]} : vector<2x1x10x8xbf16> to vector<2x1x8x8xbf16>
    %41 = vector.shape_cast %40 : vector<2x1x8x8xbf16> to vector<2x8x8xbf16>
    %42 = vector.shape_cast %41 : vector<2x8x8xbf16> to vector<16x8xbf16>
    %c48 = arith.constant 48 : index
    %c0_24 = arith.constant 0 : index
    %43 = vector.load %arg5[%c48, %c0_24] : memref<72x128xbf16, #tpu.memory_space<vmem>>, vector<8x128xbf16>
    %cst_25 = arith.constant dense<0.000000e+00> : vector<16x128xf32>
    %44 = tpu.matmul %42, %43, %cst_25 {dimension_numbers = #tpu.dot_dimension_numbers<[1], [0], [0], [1], [0, 0, 1, 1], [], []>} : vector<16x8xbf16>, vector<8x128xbf16>, vector<16x128xf32> -> vector<16x128xf32>
    %45 = arith.addf %39, %44 : vector<16x128xf32>
    %46 = vector.extract_strided_slice %2 {offsets = [0, 0, 1, 0], sizes = [2, 1, 8, 8], strides = [1, 1, 1, 1]} : vector<2x1x10x8xbf16> to vector<2x1x8x8xbf16>
    %47 = vector.shape_cast %46 : vector<2x1x8x8xbf16> to vector<2x8x8xbf16>
    %48 = vector.shape_cast %47 : vector<2x8x8xbf16> to vector<16x8xbf16>
    %c56 = arith.constant 56 : index
    %c0_26 = arith.constant 0 : index
    %49 = vector.load %arg5[%c56, %c0_26] : memref<72x128xbf16, #tpu.memory_space<vmem>>, vector<8x128xbf16>
    %cst_27 = arith.constant dense<0.000000e+00> : vector<16x128xf32>
    %50 = tpu.matmul %48, %49, %cst_27 {dimension_numbers = #tpu.dot_dimension_numbers<[1], [0], [0], [1], [0, 0, 1, 1], [], []>} : vector<16x8xbf16>, vector<8x128xbf16>, vector<16x128xf32> -> vector<16x128xf32>
    %51 = arith.addf %45, %50 : vector<16x128xf32>
    %52 = vector.extract_strided_slice %2 {offsets = [0, 0, 2, 0], sizes = [2, 1, 8, 8], strides = [1, 1, 1, 1]} : vector<2x1x10x8xbf16> to vector<2x1x8x8xbf16>
    %53 = vector.shape_cast %52 : vector<2x1x8x8xbf16> to vector<2x8x8xbf16>
    %54 = vector.shape_cast %53 : vector<2x8x8xbf16> to vector<16x8xbf16>
    %c64 = arith.constant 64 : index
    %c0_28 = arith.constant 0 : index
    %55 = vector.load %arg5[%c64, %c0_28] : memref<72x128xbf16, #tpu.memory_space<vmem>>, vector<8x128xbf16>
    %cst_29 = arith.constant dense<0.000000e+00> : vector<16x128xf32>
    %56 = tpu.matmul %54, %55, %cst_29 {dimension_numbers = #tpu.dot_dimension_numbers<[1], [0], [0], [1], [0, 0, 1, 1], [], []>} : vector<16x8xbf16>, vector<8x128xbf16>, vector<16x128xf32> -> vector<16x128xf32>
    %57 = arith.addf %51, %56 : vector<16x128xf32>
    %c0_30 = arith.constant 0 : index
    %c0_31 = arith.constant 0 : index
    %58 = vector.load %arg6[%c0_30, %c0_31] : memref<1x128xf32, #tpu.memory_space<vmem>>, vector<1x128xf32>
    %59 = vector.broadcast %58 : vector<1x128xf32> to vector<16x128xf32>
    %60 = arith.addf %57, %59 : vector<16x128xf32>
    %cst_32 = arith.constant 0.000000e+00 : f32
    %61 = vector.broadcast %cst_32 : f32 to vector<16x128xf32>
    %cst_33 = arith.constant 0.000000e+00 : f32
    %62 = vector.broadcast %cst_33 : f32 to vector<16x128xf32>
    %63 = arith.addf %61, %60 : vector<16x128xf32>
    %cst_34 = arith.constant 3.999000e+00 : f32
    %64 = vector.broadcast %cst_34 : f32 to vector<16x128xf32>
    %65 = arith.cmpf oge, %63, %64 : vector<16x128xf32>
    %66 = arith.extui %65 : vector<16x128xi1> to vector<16x128xi32>
    %67 = arith.sitofp %66 : vector<16x128xi32> to vector<16x128xf32>
    %68 = arith.addf %62, %67 : vector<16x128xf32>
    %cst_35 = arith.constant 3.999000e+00 : f32
    %69 = vector.broadcast %cst_35 : f32 to vector<16x128xf32>
    %70 = arith.mulf %67, %69 : vector<16x128xf32>
    %71 = arith.subf %63, %70 : vector<16x128xf32>
    %72 = arith.addf %71, %60 : vector<16x128xf32>
    %cst_36 = arith.constant 3.999000e+00 : f32
    %73 = vector.broadcast %cst_36 : f32 to vector<16x128xf32>
    %74 = arith.cmpf oge, %72, %73 : vector<16x128xf32>
    %75 = arith.extui %74 : vector<16x128xi1> to vector<16x128xi32>
    %76 = arith.sitofp %75 : vector<16x128xi32> to vector<16x128xf32>
    %77 = arith.addf %68, %76 : vector<16x128xf32>
    %cst_37 = arith.constant 3.999000e+00 : f32
    %78 = vector.broadcast %cst_37 : f32 to vector<16x128xf32>
    %79 = arith.mulf %76, %78 : vector<16x128xf32>
    %80 = arith.subf %72, %79 : vector<16x128xf32>
    %81 = arith.addf %80, %60 : vector<16x128xf32>
    %cst_38 = arith.constant 3.999000e+00 : f32
    %82 = vector.broadcast %cst_38 : f32 to vector<16x128xf32>
    %83 = arith.cmpf oge, %81, %82 : vector<16x128xf32>
    %84 = arith.extui %83 : vector<16x128xi1> to vector<16x128xi32>
    %85 = arith.sitofp %84 : vector<16x128xi32> to vector<16x128xf32>
    %86 = arith.addf %77, %85 : vector<16x128xf32>
    %cst_39 = arith.constant 3.999000e+00 : f32
    %87 = vector.broadcast %cst_39 : f32 to vector<16x128xf32>
    %88 = arith.mulf %85, %87 : vector<16x128xf32>
    %89 = arith.subf %81, %88 : vector<16x128xf32>
    %90 = arith.addf %89, %60 : vector<16x128xf32>
    %cst_40 = arith.constant 3.999000e+00 : f32
    %91 = vector.broadcast %cst_40 : f32 to vector<16x128xf32>
    %92 = arith.cmpf oge, %90, %91 : vector<16x128xf32>
    %93 = arith.extui %92 : vector<16x128xi1> to vector<16x128xi32>
    %94 = arith.sitofp %93 : vector<16x128xi32> to vector<16x128xf32>
    %95 = arith.addf %86, %94 : vector<16x128xf32>
    %cst_41 = arith.constant 2.500000e-01 : f32
    %96 = vector.broadcast %cst_41 : f32 to vector<16x128xf32>
    %97 = arith.mulf %95, %96 : vector<16x128xf32>
    %98 = vector.shape_cast %97 : vector<16x128xf32> to vector<2x1x8x128xf32>
    %99 = arith.truncf %98 : vector<2x1x8x128xf32> to vector<2x1x8x128xbf16>
    %c0_42 = arith.constant 0 : index
    %c0_43 = arith.constant 0 : index
    %c0_44 = arith.constant 0 : index
    %c0_45 = arith.constant 0 : index
    %100 = vector.load %arg7[%c0_42, %c0_43, %c0_44, %c0_45] : memref<2x1x8x128xbf16, #tpu.memory_space<vmem>>, vector<2x1x8x128xbf16>
    tpu.vector_store %arg7[%c0_42, %c0_43, %c0_44, %c0_45], %99 {strides = array<i32>} : memref<2x1x8x128xbf16, #tpu.memory_space<vmem>>, vector<2x1x8x128xbf16>,
    return
  }
  func.func @transform_0(%arg0: i32, %arg1: i32) -> (i32, i32, i32, i32) {
    %c1_i32 = arith.constant 1 : i32
    %0 = arith.muli %arg1, %c1_i32 : i32
    %c0_i32 = arith.constant 0 : i32
    %1 = arith.addi %0, %c0_i32 : i32
    %c0_i32_0 = arith.constant 0 : i32
    %c0_i32_1 = arith.constant 0 : i32
    %c0_i32_2 = arith.constant 0 : i32
    %c0_i32_3 = arith.constant 0 : i32
    return %c0_i32_0, %1, %c0_i32_1, %c0_i32_2 : i32, i32, i32, i32
  }
  func.func @transform_1(%arg0: i32, %arg1: i32) -> (i32, i32, i32, i32) {
    %c1_i32 = arith.constant 1 : i32
    %0 = arith.muli %arg1, %c1_i32 : i32
    %c1_i32_0 = arith.constant 1 : i32
    %1 = arith.addi %0, %c1_i32_0 : i32
    %c0_i32 = arith.constant 0 : i32
    %c0_i32_1 = arith.constant 0 : i32
    %c0_i32_2 = arith.constant 0 : i32
    %c0_i32_3 = arith.constant 0 : i32
    return %c0_i32, %1, %c0_i32_1, %c0_i32_2 : i32, i32, i32, i32
  }
  func.func @transform_2(%arg0: i32, %arg1: i32) -> (i32, i32, i32, i32) {
    %c1_i32 = arith.constant 1 : i32
    %0 = arith.muli %arg1, %c1_i32 : i32
    %c2_i32 = arith.constant 2 : i32
    %1 = arith.addi %0, %c2_i32 : i32
    %c0_i32 = arith.constant 0 : i32
    %c0_i32_0 = arith.constant 0 : i32
    %c0_i32_1 = arith.constant 0 : i32
    %c0_i32_2 = arith.constant 0 : i32
    return %c0_i32, %1, %c0_i32_0, %c0_i32_1 : i32, i32, i32, i32
  }
  func.func @transform_3(%arg0: i32, %arg1: i32) -> (i32, i32) {
    %c0_i32 = arith.constant 0 : i32
    %c0_i32_0 = arith.constant 0 : i32
    return %c0_i32, %arg0 : i32, i32
  }
  func.func @transform_4(%arg0: i32, %arg1: i32) -> (i32, i32) {
    %c0_i32 = arith.constant 0 : i32
    %c0_i32_0 = arith.constant 0 : i32
    return %c0_i32, %arg0 : i32, i32
  }
  func.func @transform_5(%arg0: i32, %arg1: i32) -> (i32, i32, i32, i32) {
    %c0_i32 = arith.constant 0 : i32
    %c0_i32_0 = arith.constant 0 : i32
    %c0_i32_1 = arith.constant 0 : i32
    return %c0_i32, %arg1, %c0_i32_0, %arg0 : i32, i32, i32, i32
  }
}

module attributes {stable_mosaic.version = 11 : i64} {
  func.func @_conv_row_kernel(%arg0: i32, %arg1: i32, %arg2: memref<2x1x5x8xbf16, #tpu.memory_space<vmem>>, %arg3: memref<2x1x5x8xbf16, #tpu.memory_space<vmem>>, %arg4: memref<2x1x5x8xbf16, #tpu.memory_space<vmem>>, %arg5: memref<2x1x5x8xbf16, #tpu.memory_space<vmem>>, %arg6: memref<2x1x5x8xbf16, #tpu.memory_space<vmem>>, %arg7: memref<2x1x5x8xbf16, #tpu.memory_space<vmem>>, %arg8: memref<72x128xbf16, #tpu.memory_space<vmem>>, %arg9: memref<1x128xf32, #tpu.memory_space<vmem>>, %arg10: memref<2x1x4x128xbf16, #tpu.memory_space<vmem>>) attributes {dimension_semantics = [#tpu.dimension_semantics<parallel>, #tpu.dimension_semantics<parallel>], iteration_bounds = array<i64: 1, 4>, scalar_prefetch = 0 : i64, scratch_operands = 0 : i64, tpu.core_type = #tpu.core_type<tc>, window_params = [{transform_indices = @transform_0, window_bounds = array<i64: 2, 1, 5, 8>}, {transform_indices = @transform_1, window_bounds = array<i64: 2, 1, 5, 8>}, {transform_indices = @transform_2, window_bounds = array<i64: 2, 1, 5, 8>}, {transform_indices = @transform_3, window_bounds = array<i64: 2, 1, 5, 8>}, {transform_indices = @transform_4, window_bounds = array<i64: 2, 1, 5, 8>}, {transform_indices = @transform_5, window_bounds = array<i64: 2, 1, 5, 8>}, {transform_indices = @transform_6, window_bounds = array<i64: 72, 128>}, {transform_indices = @transform_7, window_bounds = array<i64: 1, 128>}, {transform_indices = @transform_8, window_bounds = array<i64: 2, 1, 4, 128>}]} {
    %c0 = arith.constant 0 : index
    %c0_0 = arith.constant 0 : index
    %c0_1 = arith.constant 0 : index
    %c0_2 = arith.constant 0 : index
    %0 = vector.load %arg2[%c0, %c0_0, %c0_1, %c0_2] : memref<2x1x5x8xbf16, #tpu.memory_space<vmem>>, vector<2x1x5x8xbf16>
    %c0_3 = arith.constant 0 : index
    %c0_4 = arith.constant 0 : index
    %c0_5 = arith.constant 0 : index
    %c0_6 = arith.constant 0 : index
    %1 = vector.load %arg3[%c0_3, %c0_4, %c0_5, %c0_6] : memref<2x1x5x8xbf16, #tpu.memory_space<vmem>>, vector<2x1x5x8xbf16>
    %c0_7 = arith.constant 0 : index
    %c0_8 = arith.constant 0 : index
    %c0_9 = arith.constant 0 : index
    %c0_10 = arith.constant 0 : index
    %2 = vector.load %arg4[%c0_7, %c0_8, %c0_9, %c0_10] : memref<2x1x5x8xbf16, #tpu.memory_space<vmem>>, vector<2x1x5x8xbf16>
    %c0_11 = arith.constant 0 : index
    %c0_12 = arith.constant 0 : index
    %c0_13 = arith.constant 0 : index
    %c0_14 = arith.constant 0 : index
    %3 = vector.load %arg5[%c0_11, %c0_12, %c0_13, %c0_14] : memref<2x1x5x8xbf16, #tpu.memory_space<vmem>>, vector<2x1x5x8xbf16>
    %c0_15 = arith.constant 0 : index
    %c0_16 = arith.constant 0 : index
    %c0_17 = arith.constant 0 : index
    %c0_18 = arith.constant 0 : index
    %4 = vector.load %arg6[%c0_15, %c0_16, %c0_17, %c0_18] : memref<2x1x5x8xbf16, #tpu.memory_space<vmem>>, vector<2x1x5x8xbf16>
    %c0_19 = arith.constant 0 : index
    %c0_20 = arith.constant 0 : index
    %c0_21 = arith.constant 0 : index
    %c0_22 = arith.constant 0 : index
    %5 = vector.load %arg7[%c0_19, %c0_20, %c0_21, %c0_22] : memref<2x1x5x8xbf16, #tpu.memory_space<vmem>>, vector<2x1x5x8xbf16>
    %cst = arith.constant 0.000000e+00 : f32
    %6 = vector.broadcast %cst : f32 to vector<8x128xf32>
    %7 = vector.extract_strided_slice %0 {offsets = [0, 0, 0, 0], sizes = [2, 1, 4, 8], strides = [1, 1, 1, 1]} : vector<2x1x5x8xbf16> to vector<2x1x4x8xbf16>
    %8 = vector.shape_cast %7 : vector<2x1x4x8xbf16> to vector<2x4x8xbf16>
    %9 = vector.shape_cast %8 : vector<2x4x8xbf16> to vector<8x8xbf16>
    %c0_23 = arith.constant 0 : index
    %c0_24 = arith.constant 0 : index
    %10 = vector.load %arg8[%c0_23, %c0_24] : memref<72x128xbf16, #tpu.memory_space<vmem>>, vector<8x128xbf16>
    %cst_25 = arith.constant dense<0.000000e+00> : vector<8x128xf32>
    %11 = tpu.matmul %9, %10, %cst_25 {dimension_numbers = #tpu.dot_dimension_numbers<[1], [0], [0], [1], [0, 0, 1, 1], [], []>} : vector<8x8xbf16>, vector<8x128xbf16>, vector<8x128xf32> -> vector<8x128xf32>
    %12 = arith.addf %6, %11 : vector<8x128xf32>
    %13 = vector.extract_strided_slice %3 {offsets = [0, 0, 0, 0], sizes = [2, 1, 4, 8], strides = [1, 1, 1, 1]} : vector<2x1x5x8xbf16> to vector<2x1x4x8xbf16>
    %14 = vector.shape_cast %13 : vector<2x1x4x8xbf16> to vector<2x4x8xbf16>
    %15 = vector.shape_cast %14 : vector<2x4x8xbf16> to vector<8x8xbf16>
    %c8 = arith.constant 8 : index
    %c0_26 = arith.constant 0 : index
    %16 = vector.load %arg8[%c8, %c0_26] : memref<72x128xbf16, #tpu.memory_space<vmem>>, vector<8x128xbf16>
    %cst_27 = arith.constant dense<0.000000e+00> : vector<8x128xf32>
    %17 = tpu.matmul %15, %16, %cst_27 {dimension_numbers = #tpu.dot_dimension_numbers<[1], [0], [0], [1], [0, 0, 1, 1], [], []>} : vector<8x8xbf16>, vector<8x128xbf16>, vector<8x128xf32> -> vector<8x128xf32>
    %18 = arith.addf %12, %17 : vector<8x128xf32>
    %19 = vector.extract_strided_slice %0 {offsets = [0, 0, 1, 0], sizes = [2, 1, 4, 8], strides = [1, 1, 1, 1]} : vector<2x1x5x8xbf16> to vector<2x1x4x8xbf16>
    %20 = vector.shape_cast %19 : vector<2x1x4x8xbf16> to vector<2x4x8xbf16>
    %21 = vector.shape_cast %20 : vector<2x4x8xbf16> to vector<8x8xbf16>
    %c16 = arith.constant 16 : index
    %c0_28 = arith.constant 0 : index
    %22 = vector.load %arg8[%c16, %c0_28] : memref<72x128xbf16, #tpu.memory_space<vmem>>, vector<8x128xbf16>
    %cst_29 = arith.constant dense<0.000000e+00> : vector<8x128xf32>
    %23 = tpu.matmul %21, %22, %cst_29 {dimension_numbers = #tpu.dot_dimension_numbers<[1], [0], [0], [1], [0, 0, 1, 1], [], []>} : vector<8x8xbf16>, vector<8x128xbf16>, vector<8x128xf32> -> vector<8x128xf32>
    %24 = arith.addf %18, %23 : vector<8x128xf32>
    %25 = vector.extract_strided_slice %1 {offsets = [0, 0, 0, 0], sizes = [2, 1, 4, 8], strides = [1, 1, 1, 1]} : vector<2x1x5x8xbf16> to vector<2x1x4x8xbf16>
    %26 = vector.shape_cast %25 : vector<2x1x4x8xbf16> to vector<2x4x8xbf16>
    %27 = vector.shape_cast %26 : vector<2x4x8xbf16> to vector<8x8xbf16>
    %c24 = arith.constant 24 : index
    %c0_30 = arith.constant 0 : index
    %28 = vector.load %arg8[%c24, %c0_30] : memref<72x128xbf16, #tpu.memory_space<vmem>>, vector<8x128xbf16>
    %cst_31 = arith.constant dense<0.000000e+00> : vector<8x128xf32>
    %29 = tpu.matmul %27, %28, %cst_31 {dimension_numbers = #tpu.dot_dimension_numbers<[1], [0], [0], [1], [0, 0, 1, 1], [], []>} : vector<8x8xbf16>, vector<8x128xbf16>, vector<8x128xf32> -> vector<8x128xf32>
    %30 = arith.addf %24, %29 : vector<8x128xf32>
    %31 = vector.extract_strided_slice %4 {offsets = [0, 0, 0, 0], sizes = [2, 1, 4, 8], strides = [1, 1, 1, 1]} : vector<2x1x5x8xbf16> to vector<2x1x4x8xbf16>
    %32 = vector.shape_cast %31 : vector<2x1x4x8xbf16> to vector<2x4x8xbf16>
    %33 = vector.shape_cast %32 : vector<2x4x8xbf16> to vector<8x8xbf16>
    %c32 = arith.constant 32 : index
    %c0_32 = arith.constant 0 : index
    %34 = vector.load %arg8[%c32, %c0_32] : memref<72x128xbf16, #tpu.memory_space<vmem>>, vector<8x128xbf16>
    %cst_33 = arith.constant dense<0.000000e+00> : vector<8x128xf32>
    %35 = tpu.matmul %33, %34, %cst_33 {dimension_numbers = #tpu.dot_dimension_numbers<[1], [0], [0], [1], [0, 0, 1, 1], [], []>} : vector<8x8xbf16>, vector<8x128xbf16>, vector<8x128xf32> -> vector<8x128xf32>
    %36 = arith.addf %30, %35 : vector<8x128xf32>
    %37 = vector.extract_strided_slice %1 {offsets = [0, 0, 1, 0], sizes = [2, 1, 4, 8], strides = [1, 1, 1, 1]} : vector<2x1x5x8xbf16> to vector<2x1x4x8xbf16>
    %38 = vector.shape_cast %37 : vector<2x1x4x8xbf16> to vector<2x4x8xbf16>
    %39 = vector.shape_cast %38 : vector<2x4x8xbf16> to vector<8x8xbf16>
    %c40 = arith.constant 40 : index
    %c0_34 = arith.constant 0 : index
    %40 = vector.load %arg8[%c40, %c0_34] : memref<72x128xbf16, #tpu.memory_space<vmem>>, vector<8x128xbf16>
    %cst_35 = arith.constant dense<0.000000e+00> : vector<8x128xf32>
    %41 = tpu.matmul %39, %40, %cst_35 {dimension_numbers = #tpu.dot_dimension_numbers<[1], [0], [0], [1], [0, 0, 1, 1], [], []>} : vector<8x8xbf16>, vector<8x128xbf16>, vector<8x128xf32> -> vector<8x128xf32>
    %42 = arith.addf %36, %41 : vector<8x128xf32>
    %43 = vector.extract_strided_slice %2 {offsets = [0, 0, 0, 0], sizes = [2, 1, 4, 8], strides = [1, 1, 1, 1]} : vector<2x1x5x8xbf16> to vector<2x1x4x8xbf16>
    %44 = vector.shape_cast %43 : vector<2x1x4x8xbf16> to vector<2x4x8xbf16>
    %45 = vector.shape_cast %44 : vector<2x4x8xbf16> to vector<8x8xbf16>
    %c48 = arith.constant 48 : index
    %c0_36 = arith.constant 0 : index
    %46 = vector.load %arg8[%c48, %c0_36] : memref<72x128xbf16, #tpu.memory_space<vmem>>, vector<8x128xbf16>
    %cst_37 = arith.constant dense<0.000000e+00> : vector<8x128xf32>
    %47 = tpu.matmul %45, %46, %cst_37 {dimension_numbers = #tpu.dot_dimension_numbers<[1], [0], [0], [1], [0, 0, 1, 1], [], []>} : vector<8x8xbf16>, vector<8x128xbf16>, vector<8x128xf32> -> vector<8x128xf32>
    %48 = arith.addf %42, %47 : vector<8x128xf32>
    %49 = vector.extract_strided_slice %5 {offsets = [0, 0, 0, 0], sizes = [2, 1, 4, 8], strides = [1, 1, 1, 1]} : vector<2x1x5x8xbf16> to vector<2x1x4x8xbf16>
    %50 = vector.shape_cast %49 : vector<2x1x4x8xbf16> to vector<2x4x8xbf16>
    %51 = vector.shape_cast %50 : vector<2x4x8xbf16> to vector<8x8xbf16>
    %c56 = arith.constant 56 : index
    %c0_38 = arith.constant 0 : index
    %52 = vector.load %arg8[%c56, %c0_38] : memref<72x128xbf16, #tpu.memory_space<vmem>>, vector<8x128xbf16>
    %cst_39 = arith.constant dense<0.000000e+00> : vector<8x128xf32>
    %53 = tpu.matmul %51, %52, %cst_39 {dimension_numbers = #tpu.dot_dimension_numbers<[1], [0], [0], [1], [0, 0, 1, 1], [], []>} : vector<8x8xbf16>, vector<8x128xbf16>, vector<8x128xf32> -> vector<8x128xf32>
    %54 = arith.addf %48, %53 : vector<8x128xf32>
    %55 = vector.extract_strided_slice %2 {offsets = [0, 0, 1, 0], sizes = [2, 1, 4, 8], strides = [1, 1, 1, 1]} : vector<2x1x5x8xbf16> to vector<2x1x4x8xbf16>
    %56 = vector.shape_cast %55 : vector<2x1x4x8xbf16> to vector<2x4x8xbf16>
    %57 = vector.shape_cast %56 : vector<2x4x8xbf16> to vector<8x8xbf16>
    %c64 = arith.constant 64 : index
    %c0_40 = arith.constant 0 : index
    %58 = vector.load %arg8[%c64, %c0_40] : memref<72x128xbf16, #tpu.memory_space<vmem>>, vector<8x128xbf16>
    %cst_41 = arith.constant dense<0.000000e+00> : vector<8x128xf32>
    %59 = tpu.matmul %57, %58, %cst_41 {dimension_numbers = #tpu.dot_dimension_numbers<[1], [0], [0], [1], [0, 0, 1, 1], [], []>} : vector<8x8xbf16>, vector<8x128xbf16>, vector<8x128xf32> -> vector<8x128xf32>
    %60 = arith.addf %54, %59 : vector<8x128xf32>
    %c0_42 = arith.constant 0 : index
    %c0_43 = arith.constant 0 : index
    %61 = vector.load %arg9[%c0_42, %c0_43] : memref<1x128xf32, #tpu.memory_space<vmem>>, vector<1x128xf32>
    %62 = vector.broadcast %61 : vector<1x128xf32> to vector<8x128xf32>
    %63 = arith.addf %60, %62 : vector<8x128xf32>
    %cst_44 = arith.constant 0.000000e+00 : f32
    %64 = vector.broadcast %cst_44 : f32 to vector<8x128xf32>
    %cst_45 = arith.constant 0.000000e+00 : f32
    %65 = vector.broadcast %cst_45 : f32 to vector<8x128xf32>
    %66 = arith.addf %64, %63 : vector<8x128xf32>
    %cst_46 = arith.constant 3.999000e+00 : f32
    %67 = vector.broadcast %cst_46 : f32 to vector<8x128xf32>
    %68 = arith.cmpf oge, %66, %67 : vector<8x128xf32>
    %69 = arith.extui %68 : vector<8x128xi1> to vector<8x128xi32>
    %70 = arith.sitofp %69 : vector<8x128xi32> to vector<8x128xf32>
    %71 = arith.addf %65, %70 : vector<8x128xf32>
    %cst_47 = arith.constant 3.999000e+00 : f32
    %72 = vector.broadcast %cst_47 : f32 to vector<8x128xf32>
    %73 = arith.mulf %70, %72 : vector<8x128xf32>
    %74 = arith.subf %66, %73 : vector<8x128xf32>
    %75 = arith.addf %74, %63 : vector<8x128xf32>
    %cst_48 = arith.constant 3.999000e+00 : f32
    %76 = vector.broadcast %cst_48 : f32 to vector<8x128xf32>
    %77 = arith.cmpf oge, %75, %76 : vector<8x128xf32>
    %78 = arith.extui %77 : vector<8x128xi1> to vector<8x128xi32>
    %79 = arith.sitofp %78 : vector<8x128xi32> to vector<8x128xf32>
    %80 = arith.addf %71, %79 : vector<8x128xf32>
    %cst_49 = arith.constant 3.999000e+00 : f32
    %81 = vector.broadcast %cst_49 : f32 to vector<8x128xf32>
    %82 = arith.mulf %79, %81 : vector<8x128xf32>
    %83 = arith.subf %75, %82 : vector<8x128xf32>
    %84 = arith.addf %83, %63 : vector<8x128xf32>
    %cst_50 = arith.constant 3.999000e+00 : f32
    %85 = vector.broadcast %cst_50 : f32 to vector<8x128xf32>
    %86 = arith.cmpf oge, %84, %85 : vector<8x128xf32>
    %87 = arith.extui %86 : vector<8x128xi1> to vector<8x128xi32>
    %88 = arith.sitofp %87 : vector<8x128xi32> to vector<8x128xf32>
    %89 = arith.addf %80, %88 : vector<8x128xf32>
    %cst_51 = arith.constant 3.999000e+00 : f32
    %90 = vector.broadcast %cst_51 : f32 to vector<8x128xf32>
    %91 = arith.mulf %88, %90 : vector<8x128xf32>
    %92 = arith.subf %84, %91 : vector<8x128xf32>
    %93 = arith.addf %92, %63 : vector<8x128xf32>
    %cst_52 = arith.constant 3.999000e+00 : f32
    %94 = vector.broadcast %cst_52 : f32 to vector<8x128xf32>
    %95 = arith.cmpf oge, %93, %94 : vector<8x128xf32>
    %96 = arith.extui %95 : vector<8x128xi1> to vector<8x128xi32>
    %97 = arith.sitofp %96 : vector<8x128xi32> to vector<8x128xf32>
    %98 = arith.addf %89, %97 : vector<8x128xf32>
    %cst_53 = arith.constant 2.500000e-01 : f32
    %99 = vector.broadcast %cst_53 : f32 to vector<8x128xf32>
    %100 = arith.mulf %98, %99 : vector<8x128xf32>
    %101 = vector.shape_cast %100 : vector<8x128xf32> to vector<2x1x4x128xf32>
    %102 = arith.truncf %101 : vector<2x1x4x128xf32> to vector<2x1x4x128xbf16>
    %c0_54 = arith.constant 0 : index
    %c0_55 = arith.constant 0 : index
    %c0_56 = arith.constant 0 : index
    %c0_57 = arith.constant 0 : index
    %103 = vector.load %arg10[%c0_54, %c0_55, %c0_56, %c0_57] : memref<2x1x4x128xbf16, #tpu.memory_space<vmem>>, vector<2x1x4x128xbf16>
    tpu.vector_store %arg10[%c0_54, %c0_55, %c0_56, %c0_57], %102 {strides = array<i32>} : memref<2x1x4x128xbf16, #tpu.memory_space<vmem>>, vector<2x1x4x128xbf16>,
    return
  }
  func.func @transform_0(%arg0: i32, %arg1: i32) -> (i32, i32, i32, i32) {
    %c2_i32 = arith.constant 2 : i32
    %0 = arith.muli %arg1, %c2_i32 : i32
    %c0_i32 = arith.constant 0 : i32
    %1 = arith.addi %0, %c0_i32 : i32
    %c0_i32_0 = arith.constant 0 : i32
    %c0_i32_1 = arith.constant 0 : i32
    %c0_i32_2 = arith.constant 0 : i32
    %c0_i32_3 = arith.constant 0 : i32
    return %c0_i32_0, %1, %c0_i32_1, %c0_i32_2 : i32, i32, i32, i32
  }
  func.func @transform_1(%arg0: i32, %arg1: i32) -> (i32, i32, i32, i32) {
    %c2_i32 = arith.constant 2 : i32
    %0 = arith.muli %arg1, %c2_i32 : i32
    %c1_i32 = arith.constant 1 : i32
    %1 = arith.addi %0, %c1_i32 : i32
    %c0_i32 = arith.constant 0 : i32
    %c0_i32_0 = arith.constant 0 : i32
    %c0_i32_1 = arith.constant 0 : i32
    %c0_i32_2 = arith.constant 0 : i32
    return %c0_i32, %1, %c0_i32_0, %c0_i32_1 : i32, i32, i32, i32
  }
  func.func @transform_2(%arg0: i32, %arg1: i32) -> (i32, i32, i32, i32) {
    %c2_i32 = arith.constant 2 : i32
    %0 = arith.muli %arg1, %c2_i32 : i32
    %c2_i32_0 = arith.constant 2 : i32
    %1 = arith.addi %0, %c2_i32_0 : i32
    %c0_i32 = arith.constant 0 : i32
    %c0_i32_1 = arith.constant 0 : i32
    %c0_i32_2 = arith.constant 0 : i32
    %c0_i32_3 = arith.constant 0 : i32
    return %c0_i32, %1, %c0_i32_1, %c0_i32_2 : i32, i32, i32, i32
  }
  func.func @transform_3(%arg0: i32, %arg1: i32) -> (i32, i32, i32, i32) {
    %c2_i32 = arith.constant 2 : i32
    %0 = arith.muli %arg1, %c2_i32 : i32
    %c0_i32 = arith.constant 0 : i32
    %1 = arith.addi %0, %c0_i32 : i32
    %c0_i32_0 = arith.constant 0 : i32
    %c0_i32_1 = arith.constant 0 : i32
    %c0_i32_2 = arith.constant 0 : i32
    %c0_i32_3 = arith.constant 0 : i32
    return %c0_i32_0, %1, %c0_i32_1, %c0_i32_2 : i32, i32, i32, i32
  }
  func.func @transform_4(%arg0: i32, %arg1: i32) -> (i32, i32, i32, i32) {
    %c2_i32 = arith.constant 2 : i32
    %0 = arith.muli %arg1, %c2_i32 : i32
    %c1_i32 = arith.constant 1 : i32
    %1 = arith.addi %0, %c1_i32 : i32
    %c0_i32 = arith.constant 0 : i32
    %c0_i32_0 = arith.constant 0 : i32
    %c0_i32_1 = arith.constant 0 : i32
    %c0_i32_2 = arith.constant 0 : i32
    return %c0_i32, %1, %c0_i32_0, %c0_i32_1 : i32, i32, i32, i32
  }
  func.func @transform_5(%arg0: i32, %arg1: i32) -> (i32, i32, i32, i32) {
    %c2_i32 = arith.constant 2 : i32
    %0 = arith.muli %arg1, %c2_i32 : i32
    %c2_i32_0 = arith.constant 2 : i32
    %1 = arith.addi %0, %c2_i32_0 : i32
    %c0_i32 = arith.constant 0 : i32
    %c0_i32_1 = arith.constant 0 : i32
    %c0_i32_2 = arith.constant 0 : i32
    %c0_i32_3 = arith.constant 0 : i32
    return %c0_i32, %1, %c0_i32_1, %c0_i32_2 : i32, i32, i32, i32
  }
  func.func @transform_6(%arg0: i32, %arg1: i32) -> (i32, i32) {
    %c0_i32 = arith.constant 0 : i32
    %c0_i32_0 = arith.constant 0 : i32
    return %c0_i32, %arg0 : i32, i32
  }
  func.func @transform_7(%arg0: i32, %arg1: i32) -> (i32, i32) {
    %c0_i32 = arith.constant 0 : i32
    %c0_i32_0 = arith.constant 0 : i32
    return %c0_i32, %arg0 : i32, i32
  }
  func.func @transform_8(%arg0: i32, %arg1: i32) -> (i32, i32, i32, i32) {
    %c0_i32 = arith.constant 0 : i32
    %c0_i32_0 = arith.constant 0 : i32
    %c0_i32_1 = arith.constant 0 : i32
    return %c0_i32, %arg1, %c0_i32_0, %arg0 : i32, i32, i32, i32
  }
}

module attributes {stable_mosaic.version = 11 : i64} {
  func.func @_pool_spike_kernel(%arg0: i32, %arg1: memref<8x16x16xbf16, #tpu.memory_space<vmem>>, %arg2: memref<8x16xbf16, #tpu.memory_space<vmem>>) attributes {dimension_semantics = [#tpu.dimension_semantics<arbitrary>], iteration_bounds = array<i64: 1>, scalar_prefetch = 0 : i64, scratch_operands = 0 : i64, tpu.core_type = #tpu.core_type<tc>, window_params = [{transform_indices = @transform_0, window_bounds = array<i64: 8, 16, 16>}, {transform_indices = @transform_1, window_bounds = array<i64: 8, 16>}]} {
    %c0 = arith.constant 0 : index
    %c0_0 = arith.constant 0 : index
    %c0_1 = arith.constant 0 : index
    %0 = vector.load %arg1[%c0, %c0_0, %c0_1] : memref<8x16x16xbf16, #tpu.memory_space<vmem>>, vector<8x16x16xbf16>
    %1 = arith.extf %0 : vector<8x16x16xbf16> to vector<8x16x16xf32>
    %cst = arith.constant dense<0.000000e+00> : vector<8x16xf32>
    %2 = vector.multi_reduction <add>, %1, %cst [1] : vector<8x16x16xf32> to vector<8x16xf32>
    %cst_2 = arith.constant 6.250000e-02 : f32
    %3 = vector.broadcast %cst_2 : f32 to vector<8x16xf32>
    %4 = arith.mulf %2, %3 : vector<8x16xf32>
    %cst_3 = arith.constant 0.000000e+00 : f32
    %5 = vector.broadcast %cst_3 : f32 to vector<8x16xf32>
    %cst_4 = arith.constant 0.000000e+00 : f32
    %6 = vector.broadcast %cst_4 : f32 to vector<8x16xf32>
    %7 = arith.addf %5, %4 : vector<8x16xf32>
    %cst_5 = arith.constant 3.999000e+00 : f32
    %8 = vector.broadcast %cst_5 : f32 to vector<8x16xf32>
    %9 = arith.cmpf oge, %7, %8 : vector<8x16xf32>
    %10 = arith.extui %9 : vector<8x16xi1> to vector<8x16xi32>
    %11 = arith.sitofp %10 : vector<8x16xi32> to vector<8x16xf32>
    %12 = arith.addf %6, %11 : vector<8x16xf32>
    %cst_6 = arith.constant 3.999000e+00 : f32
    %13 = vector.broadcast %cst_6 : f32 to vector<8x16xf32>
    %14 = arith.mulf %11, %13 : vector<8x16xf32>
    %15 = arith.subf %7, %14 : vector<8x16xf32>
    %16 = arith.addf %15, %4 : vector<8x16xf32>
    %cst_7 = arith.constant 3.999000e+00 : f32
    %17 = vector.broadcast %cst_7 : f32 to vector<8x16xf32>
    %18 = arith.cmpf oge, %16, %17 : vector<8x16xf32>
    %19 = arith.extui %18 : vector<8x16xi1> to vector<8x16xi32>
    %20 = arith.sitofp %19 : vector<8x16xi32> to vector<8x16xf32>
    %21 = arith.addf %12, %20 : vector<8x16xf32>
    %cst_8 = arith.constant 3.999000e+00 : f32
    %22 = vector.broadcast %cst_8 : f32 to vector<8x16xf32>
    %23 = arith.mulf %20, %22 : vector<8x16xf32>
    %24 = arith.subf %16, %23 : vector<8x16xf32>
    %25 = arith.addf %24, %4 : vector<8x16xf32>
    %cst_9 = arith.constant 3.999000e+00 : f32
    %26 = vector.broadcast %cst_9 : f32 to vector<8x16xf32>
    %27 = arith.cmpf oge, %25, %26 : vector<8x16xf32>
    %28 = arith.extui %27 : vector<8x16xi1> to vector<8x16xi32>
    %29 = arith.sitofp %28 : vector<8x16xi32> to vector<8x16xf32>
    %30 = arith.addf %21, %29 : vector<8x16xf32>
    %cst_10 = arith.constant 3.999000e+00 : f32
    %31 = vector.broadcast %cst_10 : f32 to vector<8x16xf32>
    %32 = arith.mulf %29, %31 : vector<8x16xf32>
    %33 = arith.subf %25, %32 : vector<8x16xf32>
    %34 = arith.addf %33, %4 : vector<8x16xf32>
    %cst_11 = arith.constant 3.999000e+00 : f32
    %35 = vector.broadcast %cst_11 : f32 to vector<8x16xf32>
    %36 = arith.cmpf oge, %34, %35 : vector<8x16xf32>
    %37 = arith.extui %36 : vector<8x16xi1> to vector<8x16xi32>
    %38 = arith.sitofp %37 : vector<8x16xi32> to vector<8x16xf32>
    %39 = arith.addf %30, %38 : vector<8x16xf32>
    %cst_12 = arith.constant 2.500000e-01 : f32
    %40 = vector.broadcast %cst_12 : f32 to vector<8x16xf32>
    %41 = arith.mulf %39, %40 : vector<8x16xf32>
    %42 = arith.truncf %41 : vector<8x16xf32> to vector<8x16xbf16>
    %c0_13 = arith.constant 0 : index
    %c0_14 = arith.constant 0 : index
    %43 = vector.load %arg2[%c0_13, %c0_14] : memref<8x16xbf16, #tpu.memory_space<vmem>>, vector<8x16xbf16>
    tpu.vector_store %arg2[%c0_13, %c0_14], %42 {strides = array<i32>} : memref<8x16xbf16, #tpu.memory_space<vmem>>, vector<8x16xbf16>,
    return
  }
  func.func @transform_0(%arg0: i32) -> (i32, i32, i32) {
    %c0_i32 = arith.constant 0 : i32
    %c0_i32_0 = arith.constant 0 : i32
    %c0_i32_1 = arith.constant 0 : i32
    return %arg0, %c0_i32, %c0_i32_0 : i32, i32, i32
  }
  func.func @transform_1(%arg0: i32) -> (i32, i32) {
    %c0_i32 = arith.constant 0 : i32
    %c0_i32_0 = arith.constant 0 : i32
    return %arg0, %c0_i32 : i32, i32
  }
}

module attributes {stable_mosaic.version = 11 : i64} {
  func.func @_mm_bias_kernel(%arg0: i32, %arg1: i32, %arg2: memref<8x16xbf16, #tpu.memory_space<vmem>>, %arg3: memref<16x128xbf16, #tpu.memory_space<vmem>>, %arg4: memref<1x128xf32, #tpu.memory_space<vmem>>, %arg5: memref<8x128xf32, #tpu.memory_space<vmem>>) attributes {dimension_semantics = [#tpu.dimension_semantics<parallel>, #tpu.dimension_semantics<parallel>], iteration_bounds = array<i64: 1, 1>, scalar_prefetch = 0 : i64, scratch_operands = 0 : i64, tpu.core_type = #tpu.core_type<tc>, window_params = [{transform_indices = @transform_0, window_bounds = array<i64: 8, 16>}, {transform_indices = @transform_1, window_bounds = array<i64: 16, 128>}, {transform_indices = @transform_2, window_bounds = array<i64: 1, 128>}, {transform_indices = @transform_3, window_bounds = array<i64: 8, 128>}]} {
    %c0 = arith.constant 0 : index
    %c0_0 = arith.constant 0 : index
    %0 = vector.load %arg2[%c0, %c0_0] : memref<8x16xbf16, #tpu.memory_space<vmem>>, vector<8x16xbf16>
    %c0_1 = arith.constant 0 : index
    %c0_2 = arith.constant 0 : index
    %1 = vector.load %arg3[%c0_1, %c0_2] : memref<16x128xbf16, #tpu.memory_space<vmem>>, vector<16x128xbf16>
    %cst = arith.constant dense<0.000000e+00> : vector<8x128xf32>
    %2 = tpu.matmul %0, %1, %cst {dimension_numbers = #tpu.dot_dimension_numbers<[1], [0], [0], [1], [0, 0, 1, 1], [], []>} : vector<8x16xbf16>, vector<16x128xbf16>, vector<8x128xf32> -> vector<8x128xf32>
    %c0_3 = arith.constant 0 : index
    %c0_4 = arith.constant 0 : index
    %3 = vector.load %arg4[%c0_3, %c0_4] : memref<1x128xf32, #tpu.memory_space<vmem>>, vector<1x128xf32>
    %4 = vector.broadcast %3 : vector<1x128xf32> to vector<8x128xf32>
    %5 = arith.addf %2, %4 : vector<8x128xf32>
    %c0_5 = arith.constant 0 : index
    %c0_6 = arith.constant 0 : index
    %6 = vector.load %arg5[%c0_5, %c0_6] : memref<8x128xf32, #tpu.memory_space<vmem>>, vector<8x128xf32>
    tpu.vector_store %arg5[%c0_5, %c0_6], %5 {strides = array<i32>} : memref<8x128xf32, #tpu.memory_space<vmem>>, vector<8x128xf32>,
    return
  }
  func.func @transform_0(%arg0: i32, %arg1: i32) -> (i32, i32) {
    %c0_i32 = arith.constant 0 : i32
    %c0_i32_0 = arith.constant 0 : i32
    return %arg1, %c0_i32 : i32, i32
  }
  func.func @transform_1(%arg0: i32, %arg1: i32) -> (i32, i32) {
    %c0_i32 = arith.constant 0 : i32
    %c0_i32_0 = arith.constant 0 : i32
    return %c0_i32, %arg0 : i32, i32
  }
  func.func @transform_2(%arg0: i32, %arg1: i32) -> (i32, i32) {
    %c0_i32 = arith.constant 0 : i32
    %c0_i32_0 = arith.constant 0 : i32
    return %c0_i32, %arg0 : i32, i32
  }
  func.func @transform_3(%arg0: i32, %arg1: i32) -> (i32, i32) {
    %c0_i32 = arith.constant 0 : i32
    return %arg1, %arg0 : i32, i32
  }
}

</mosaic_0001>

<bundles_post_ra>
// kernel: _lambda_.6
= control target key start
LH: loop header
LB: loop body
LE: loop exit
PB: predicated region body
PF: predicated region fallthrough
CT: control target
= control target key end

     0   :  { %s89_s0 = inlined_call_operand.vmem [shape: bf16[4,16,128], index: 0, kind: input, shape index: {}]   ;;  %s90_s1 = inlined_call_operand.vmem [shape: bf16[16,128], index: 1, kind: output, shape index: {}]  }
   0x1   :  { %v41_v0 = vld [vmem:[%s89_s0] sm:$0xff]   ;;  %v61_v1 = vld [vmem:[%s89_s0 + $0x8] sm:$0xff]   ;;  %v62_v2 = vld [vmem:[%s89_s0 + $0x10] sm:$0xff]  }
   0x2   :  { %v42_v3 = vunpack.c.l.bf16 %v41_v0  ;;  %v43_v4 = vunpack.c.h.bf16 %v41_v0  ;;  %v46_v5 = vunpack.c.l.bf16 %v61_v1  ;;  %v47_v6 = vunpack.c.h.bf16 %v61_v1  ;;  %v63_v7 = vld [vmem:[%s89_s0 + $0x18] sm:$0xff]  }
   0x3   :  { %v50_v8 = vunpack.c.l.bf16 %v62_v2  ;;  %v51_v9 = vunpack.c.h.bf16 %v62_v2  ;;  %v54_v10 = vunpack.c.l.bf16 %v63_v7  ;;  %v55_v11 = vunpack.c.h.bf16 %v63_v7 }
   0x4   :  { %v24_v12 = vadd.f32 %v46_v5, %v42_v3  ;;  %v27_v13 = vadd.f32 %v47_v6, %v43_v4 }
   0x6   :  { %v25_v14 = vadd.f32 %v50_v8, %v24_v12  ;;  %v28_v15 = vadd.f32 %v51_v9, %v27_v13 }
   0x8   :  { %v26_v16 = vadd.f32 %v54_v10, %v25_v14  ;;  %v29_v17 = vadd.f32 %v55_v11, %v28_v15 }
   0xa   :  { %v30_v18 = vmul.f32 0.25, %v26_v16  ;;  %v31_v19 = vmul.f32 0.25, %v29_v17 }
   0xc   :  { %v59_v20 = vpack.c.bf16 %v31_v19, %v30_v18 }
   0xe   :  { %60 = vst [vmem:[%s90_s1] sm:$0xff] %v59_v20  }

// kernel: _lambda_.7
= control target key start
LH: loop header
LB: loop body
LE: loop exit
PB: predicated region body
PF: predicated region fallthrough
CT: control target
= control target key end

     0   :  { %s2223_s0 = inlined_call_operand.vmem [shape: bf16[2,18,9,3], index: 0, kind: input, shape index: {}, may-alias: {0,1,2}]   ;;  %s2224_s1 = inlined_call_operand.vmem [shape: bf16[2,18,9,3], index: 1, kind: input, shape index: {}, may-alias: {0,1,2}]   ;;  %s2225_s2 = inlined_call_operand.vmem [shape: bf16[2,18,9,3], index: 2, kind: input, shape index: {}, may-alias: {0,1,2}]   ;;  %s2226_s3 = inlined_call_operand.vmem [shape: bf16[2,18,9,3], index: 3, kind: input, shape index: {}, may-alias: {3,4,5}]   ;;  %s2227_s4 = inlined_call_operand.vmem [shape: bf16[2,18,9,3], index: 4, kind: input, shape index: {}, may-alias: {3,4,5}]   ;;  %s2228_s5 = inlined_call_operand.vmem [shape: bf16[2,18,9,3], index: 5, kind: input, shape index: {}, may-alias: {3,4,5}]   ;;  %s2229_s6 = inlined_call_operand.vmem [shape: bf16[27,128], index: 6, kind: input, shape index: {}]   ;;  %s2230_s7 = inlined_call_operand.vmem [shape: f32[1,128], index: 7, kind: input, shape index: {}]   ;;  %s2231_s8 = inlined_call_operand.vmem [shape: bf16[2,8,8,128], index: 8, kind: output, shape index: {}]  }
   0x1   :  { %2235 = sst [smem:[#allocation16_spill]] %s2229_s6 }
   0x2   :  { %2236 = sst [smem:[#allocation17_spill]] %s2230_s7 }
   0x3   :  { %2237 = sst [smem:[#allocation18_spill]] %s2231_s8 }
   0x4   :  { %s1907_s27 = smov 0   ;;  %s1909_s28 = smov 0  }
   0x5   :  { %s1911_s29 = smov 0   ;;  %s1913_s30 = smov 0  }
   0x6   :  { %s1915_s9 = smov 0   ;;  %s1917_s10 = smov 0  }
   0x7   :  { %s1919_s11 = smov 0   ;;  %s1921_s12 = smov 0  }
   0x8   :  { %s1923_s13 = smov 0   ;;  %s1925_s14 = smov 0  }
   0x9   :  { %s1927_s15 = smov 0  }
   0xa LB: > { %2238 = sst [smem:[#allocation9_spill]] %s1842_s11  ;;  %s27_s17 = sadd.s32 1, %s1854_s14  ;;  %s1858_s15 = sphi %s1927_s15, %s18_s15   ;;  %s1854_s14 = sphi %s1925_s14, %s2271_s14   ;;  %s1850_s13 = sphi %s1923_s13, %s2270_s13   ;;  %s1846_s12 = sphi %s1921_s12, %s2269_s12   ;;  %s1842_s11 = sphi %s1919_s11, %s2268_s11   ;;  %s1838_s10 = sphi %s1917_s10, %s2267_s10   ;;  %s1834_s9 = sphi %s1915_s9, %s2266_s9   ;;  %s1830_s30 = sphi %s1913_s30, %s2265_s30   ;;  %s1826_s29 = sphi %s1911_s29, %s2264_s29   ;;  %s1822_s28 = sphi %s1909_s28, %s2263_s28   ;;  %s1818_s27 = sphi %s1907_s27, %s2262_s27  }
   0xb   : > { %2239 = sst [smem:[#allocation10_spill]] %s1850_s13  ;;  %p28_p0 = scmp.ge.s32.totalorder %s27_s17, 8 }
   0xc   : > { %s1547_s18 = sshll.u32 %s1854_s14, 1  ;;  %s39_s19 = sadd.s32 1, %s1846_s12 }
   0xd   : > { %p46_p1 = scmp.ne.s32.totalorder %s1846_s12, %s1842_s11  ;;  %s2273_s17 = smov (%p28_p0, %s27_s17), 0 }
   0xe   : > { %2240 = sst [smem:[#allocation11_spill]] %s2273_s17  ;;  %p47_p2 = scmp.eq.s32.totalorder %s1858_s15, 0 }
   0xf   : > { %s63_s20 = sadd.s32 1, %s1547_s18  ;;  %s1548_s21 = sshll.u32 %s2273_s17, 1 }
  0x10   : > { %s69_s22 = sadd.s32 1, %s1838_s10  ;;  %s36_s23 = ssub.s32 %s1547_s18, %s1548_s21 }
  0x11   : > { %p1975_p3 = por %p47_p2, %p46_p1  ;;  %p37_p4 = scmp.eq.s32.totalorder %s36_s23, 0 }
  0x12   : > { %s65_s25 = sadd.s32 1, %s1548_s21  ;;  %p76_p5 = scmp.ne.s32.totalorder %s1838_s10, %s1834_s9 }
  0x13   : > { %s66_s26 = ssub.s32 %s63_s20, %s65_s25  ;;  %s93_s13 = sadd.s32 2, %s1547_s18 }
  0x14   : > { %s1982_s16 = scalar_select %p37_p4, %s1846_s12, %s39_s19  }
  0x15   : > { %p67_p6 = scmp.eq.s32.totalorder %s66_s26, 0  ;;  %p1986_p7 = por %p76_p5, %p47_p2 }
  0x16   : > { %2242 = sst [smem:[#allocation12_spill]] %s1982_s16  ;;  %s95_s7 = sadd.s32 2, %s1548_s21 }
  0x17   : > { %s1991_s23 = scalar_select %p67_p6, %s1838_s10, %s69_s22  }
  0x18   : > { %s96_s11 = ssub.s32 %s93_s13, %s95_s7  ;;  %s99_s6 = sadd.s32 1, %s1830_s30 }
  0x19   : > { %2244 = sst [smem:[#allocation13_spill]] %s1991_s23  ;;  %p97_p8 = scmp.eq.s32.totalorder %s96_s11, 0 }
  0x1a   : > { %p106_p9 = scmp.ne.s32.totalorder %s1830_s30, %s1826_s29  ;;  %s262_s20 = ssub.s32 %s1854_s14, %s2273_s17 }
  0x1b   : > { %s267_s25 = sadd.s32 1, %s1822_s28  ;;  %p265_p11 = scmp.eq.s32.totalorder %s262_s20, 0 }
  0x1c   : > { %s2000_s19 = scalar_select %p97_p8, %s1830_s30, %s99_s6  }
  0x1d   : > { %p2004_p10 = por %p106_p9, %p47_p2  ;;  %p277_p12 = scmp.ne.s32.totalorder %s1822_s28, %s1818_s27 }
  0x1e   : > { %2245 = sst [smem:[#allocation14_spill]] %s2000_s19  ;;  %s2247_s16 = sadd.s32 4294967295, %s1858_s15  }
  0x1f   : > { %p278_p13 = scmp.eq.s32.totalorder %s2247_s16, 7  ;;  %p1562_p1 = scmp.ge.s32.totalorder %s1858_s15, 8 }
  0x20   : > { %s2013_s18 = scalar_select %p265_p11, %s1822_s28, %s267_s25  }
  0x21   : > { %p2015_p0 = por %p278_p13, %p277_p12  ;;  %313 = sbr.rel (%p1562_p1) target bundleno = 74 (0x4a), region = 24 }
  0x22   : > { %2248 = sst [smem:[#allocation15_spill]] %s2013_s18 }
  0x26   : > { %316 = sbr.rel (!%p1975_p3) target bundleno = 44 (0x2c), region = 28  ;;  %s318_s6 = sand.u32 (%p1975_p3), 1, %s1846_s12  }
  0x27   : > { %s1661_s11 = sshll.u32 (%p1975_p3), %s1854_s14, 4  ;;  %s1563_s13 = sshll.u32 (%p1975_p3), %s318_s6, 4 }
  0x28   : > { %s324_s16 = scalar_lea.vmem (%p1975_p3), %s2223_s0, %s1661_s11  ;;  %s320_s20 = scalar_lea.vmem (%p1975_p3), [#allocation2], %s1563_s13 }
  0x29   : > { %v341_v0 = vld [vmem:[%s324_s16] sm:$0xff] (%p1975_p3)   ;;  %v345_v1 = vld [vmem:[%s324_s16 + $0x90] sm:$0xff] (%p1975_p3)  }
  0x2a   : > { %342 = vst [vmem:[%s320_s20] sm:$0xff] (%p1975_p3), %v341_v0  }
  0x2b   : > { %346 = vst [vmem:[%s320_s20 + $0x8] sm:$0xff] %v345_v1  }
  0x2c PF: > { %380 = sbr.rel (!%p1986_p7) target bundleno = 50 (0x32), region = 69  ;;  %s382_s25 = sand.u32 (%p1986_p7), 1, %s1838_s10  }
  0x2d   : > { %s1662_s17 = sshll.u32 (%p1986_p7), %s1854_s14, 4  ;;  %s1567_s23 = sshll.u32 (%p1986_p7), %s382_s25, 4 }
  0x2e   : > { %s1377_s18 = scalar_lea.vmem (%p1986_p7), %s2224_s1, %s1662_s17  ;;  %s384_s11 = scalar_lea.vmem (%p1986_p7), [#allocation3], %s1567_s23 }
  0x2f   : > { %v1570_v2 = vld [vmem:[%s1377_s18 + $0x8] sm:$0xff] (%p1986_p7)   ;;  %v1572_v3 = vld [vmem:[%s1377_s18 + $0x98] sm:$0xff] (%p1986_p7)  }
  0x30   : > { %407 = vst [vmem:[%s384_s11] sm:$0xff] (%p1986_p7), %v1570_v2  }
  0x31   : > { %411 = vst [vmem:[%s384_s11 + $0x8] sm:$0xff] %v1572_v3  }
  0x32 PF: > { %445 = sbr.rel (!%p2004_p10) target bundleno = 56 (0x38), region = 110  ;;  %s447_s13 = sand.u32 (%p2004_p10), 1, %s1830_s30  }
  0x33   : > { %s1663_s21 = sshll.u32 (%p2004_p10), %s1854_s14, 4  ;;  %s1574_s22 = sshll.u32 (%p2004_p10), %s447_s13, 4 }
  0x34   : > { %s1383_s25 = scalar_lea.vmem (%p2004_p10), %s2225_s2, %s1663_s21  ;;  %s449_s17 = scalar_lea.vmem (%p2004_p10), [#allocation4], %s1574_s22 }
  0x35   : > { %v1577_v4 = vld [vmem:[%s1383_s25 + $0x10] sm:$0xff] (%p2004_p10)   ;;  %v1579_v5 = vld [vmem:[%s1383_s25 + $0xa0] sm:$0xff] (%p2004_p10)  }
  0x36   : > { %472 = vst [vmem:[%s449_s17] sm:$0xff] (%p2004_p10), %v1577_v4  }
  0x37   : > { %476 = vst [vmem:[%s449_s17 + $0x8] sm:$0xff] %v1579_v5  }
  0x38 PF: > { %510 = sbr.rel (!%p1975_p3) target bundleno = 62 (0x3e), region = 151  ;;  %s512_s23 = sand.u32 (%p1975_p3), 1, %s1846_s12  }
  0x39   : > { %s1665_s19 = sshll.u32 (%p1975_p3), %s1854_s14, 4  ;;  %s1581_s18 = sshll.u32 (%p1975_p3), %s512_s23, 4 }
  0x3a   : > { %s518_s13 = scalar_lea.vmem (%p1975_p3), %s2226_s3, %s1665_s19  ;;  %s514_s21 = scalar_lea.vmem (%p1975_p3), [#allocation5], %s1581_s18 }
  0x3b   : > { %v535_v6 = vld [vmem:[%s518_s13] sm:$0xff] (%p1975_p3)   ;;  %v539_v7 = vld [vmem:[%s518_s13 + $0x90] sm:$0xff] (%p1975_p3)  }
  0x3c   : > { %536 = vst [vmem:[%s514_s21] sm:$0xff] (%p1975_p3), %v535_v6  }
  0x3d   : > { %540 = vst [vmem:[%s514_s21 + $0x8] sm:$0xff] %v539_v7  }
  0x3e PF: > { %574 = sbr.rel (!%p1986_p7) target bundleno = 68 (0x44), region = 192  ;;  %s576_s24 = sand.u32 (%p1986_p7), 1, %s1838_s10  }
  0x3f   : > { %s1666_s22 = sshll.u32 (%p1986_p7), %s1854_s14, 4  ;;  %s1585_s16 = sshll.u32 (%p1986_p7), %s576_s24, 4 }
  0x40   : > { %s1393_s17 = scalar_lea.vmem (%p1986_p7), %s2227_s4, %s1666_s22  ;;  %s578_s23 = scalar_lea.vmem (%p1986_p7), [#allocation6], %s1585_s16 }
  0x41   : > { %v1588_v8 = vld [vmem:[%s1393_s17 + $0x8] sm:$0xff] (%p1986_p7)   ;;  %v1590_v9 = vld [vmem:[%s1393_s17 + $0x98] sm:$0xff] (%p1986_p7)  }
  0x42   : > { %601 = vst [vmem:[%s578_s23] sm:$0xff] (%p1986_p7), %v1588_v8  }
  0x43   : > { %605 = vst [vmem:[%s578_s23 + $0x8] sm:$0xff] %v1590_v9  }
  0x44 PF: > { %639 = sbr.rel (!%p2004_p10) target bundleno = 74 (0x4a), region = 233  ;;  %s641_s8 = sand.u32 (%p2004_p10), 1, %s1830_s30  }
  0x45   : > { %s1667_s19 = sshll.u32 (%p2004_p10), %s1854_s14, 4  ;;  %s1592_s18 = sshll.u32 (%p2004_p10), %s641_s8, 4 }
  0x46   : > { %s1399_s13 = scalar_lea.vmem (%p2004_p10), %s2228_s5, %s1667_s19  ;;  %s643_s21 = scalar_lea.vmem (%p2004_p10), [#allocation7], %s1592_s18 }
  0x47   : > { %v1595_v10 = vld [vmem:[%s1399_s13 + $0x10] sm:$0xff] (%p2004_p10)   ;;  %v1597_v11 = vld [vmem:[%s1399_s13 + $0xa0] sm:$0xff] (%p2004_p10)  }
  0x48   : > { %666 = vst [vmem:[%s643_s21] sm:$0xff] (%p2004_p10), %v1595_v10  }
  0x49   : > { %670 = vst [vmem:[%s643_s21 + $0x8] sm:$0xff] %v1597_v11  }
  0x4a PF: > { %p1599_p2 = scmp.ge.s32.totalorder %s1858_s15, 1  ;;  %p703_p3 = scmp.lt.s32.totalorder %s1858_s15, 9 }
  0x4c   : > { %p704_p4 = pnand %p1599_p2, %p703_p3 }
  0x4d   : > { %s2250_s22 = sld [smem:[#allocation16_spill]] (!%p704_p4)  ;;  %s717_s24 = sand.u32 (!%p704_p4), 1, %s1834_s9  }
  0x4e   : > { %707 = sbr.rel (%p704_p4) target bundleno = 313 (0x139), region = 274  ;;  %s2251_s16 = sld [smem:[#allocation9_spill]] (!%p704_p4) }
  0x4f   : > { %s724_s9 = sand.u32 (!%p704_p4), 1, %s1826_s29   ;;  %s2254_s29 = sld [smem:[#allocation17_spill]] (!%p704_p4) }
  0x50   : > { %s2114_s8 = sshll.u32 (!%p704_p4), %s724_s9, 4  ;;  %s801_s23 = sand.u32 (!%p704_p4), 1, %s1818_s27  }
  0x51   : > { %s747_s9 = scalar_lea.vmem (!%p704_p4), [#allocation7], %s2114_s8 }
  0x53   : > { %v841_v12 = vld [vmem:[%s2250_s22] sm:$0x6]  ;;  %vm862_vm0 = vcmask 1040384   ;;  %vm863_vm1 = vcmask 1041408   ;;  %v1860_v14 = vmov 65535   ;;  %vm858_vm2 = vcmask 23552  }
  0x54   : > { %s710_s20 = sand.u32 1, %s2251_s16   ;;  %v848_v13 = vunpack.c.l.b16 %v841_v12  ;;  %v864_v15 = vsel %vm862_vm0, 4294967295, %v1860_v14  ;;  %v840_v16 = vld [vmem:[%s2250_s22] sm:$0x3]  ;;  %v972_v17 = vld [vmem:[%s2250_s22 + $0x4] sm:$0x3] }
  0x55   : > { %s1600_s19 = sshll.u32 %s710_s20, 4  ;;  %v2074_v18 = vsel %vm863_vm1, %v864_v15, 0  ;;  %v979_v19 = vunpack.c.l.b16 %v972_v17  ;;  %v1619_v20 = vld [vmem:[%s2250_s22] sm:$0x8]  ;;  %v1674_v21 = vld [vmem:[%s2250_s22] sm:$0x10] }
  0x56   : > { %v849_v22 = vpack.c.b16 %v848_v13, %v848_v13  ;;  %v892_v23 = vand.u32 %v2074_v18, %v840_v16  ;;  %v1620_v24 = vor.u32 %v1674_v21, %v1619_v20  ;;  %s2083_s21 = scalar_lea.vmem [#allocation2], %s1600_s19  ;;  %s733_s26 = scalar_lea.vmem [#allocation5], %s1600_s19  ;;  %v1010_v34 = vld [vmem:[%s2250_s22 + $0x4] sm:$0xc]  ;;  %vm908_vm3 = vsmask.f32 3328 }
  0x57   : > { %v1614_v25 = vld [vmem:[%s2083_s21] sm:$0xf]  ;;  %v1668_v26 = vld [vmem:[%s2083_s21 + $0x4] sm:$0xf0]  ;;  %v980_v27 = vpack.c.b16 %v979_v19, %v979_v19  ;;  %s2092_s16 = sshll.u32 %s717_s24, 4  ;;  %v1017_v37 = vunpack.c.l.b16 %v1010_v34  ;;  %s2255_s18 = sld [smem:[#allocation10_spill]] (%p2015_p0) }
  0x58   : > { %v2087_v28 = vld [vmem:[%s733_s26] sm:$0xf]  ;;  %v2089_v29 = vld [vmem:[%s733_s26 + $0x4] sm:$0xf0]  ;;  %v1615_v30 = vor.u32 %v1668_v26, %v1614_v25  ;;  %v851_v31 = vshrl.u32 %v849_v22, 16  ;;  %v854_v32 = vshll.u32 %v849_v22, 16  ;;  %901 = vmatpush.bf16.msra.mxu1 %v892_v23 }
  0x59   : > { %v949_v33 = vrot.slane %v1620_v24, 3  ;;  %v982_v35 = vshrl.u32 %v980_v27, 16  ;;  %v984_v36 = vshll.u32 %v980_v27, 16  ;;  %v822_v38 = vld [vmem:[%s2083_s21] sm:$0xf]  ;;  %s2102_s17 = scalar_lea.vmem [#allocation3], %s2092_s16  ;;  %v1018_v45 = vpack.c.b16 %v1017_v37, %v1017_v37 }
  0x5a   : > { %v853_v39 = vrot.slane %v851_v31, 1  ;;  %v856_v40 = vrot.slane %v854_v32, 2  ;;  %v1624_v43 = vld [vmem:[%s2102_s17] sm:$0xf]  ;;  %v1669_v44 = vld [vmem:[%s2102_s17 + $0x4] sm:$0xf0]  ;;  %v1610_v50 = vor.u32 %v2089_v29, %v2087_v28 }
  0x5b   : > { %v954_v41 = vand.u32 %v949_v33, %v2074_v18  ;;  %v986_v42 = vrot.slane %v984_v36, 1  ;;  %1616 = vmatmul.msk.bf16.vlgmr.msra.gmra.mxu1 %vm858_vm2, %v1615_v30  ;;  %v823_v46 = vld [vmem:[%s2083_s21 + $0x4] sm:$0x1]  ;;  %v824_v47 = vld [vmem:[%s2083_s21 + $0x8] sm:$0xf]  ;;  %v912_v48 = vshrl.u32 %v822_v38, 16  ;;  %v1625_v4 = vor.u32 %v1669_v44, %v1624_v43 }
  0x5c   : > { %v857_v49 = vor.u32 %v856_v40, %v853_v39  ;;  %v825_v51 = vld [vmem:[%s2083_s21 + $0xc] sm:$0x1]  ;;  %vm909_vm4 = vsmask.f32 7440  ;;  %v1019_v53 = vrot.slane %v1018_v45, 2  ;;  %v915_v55 = vshll.u32 %v822_v38, 16 }
  0x5d   : > { %963 = vmatpush.bf16.msra.mxu2 %v954_v41  ;;  %v987_v52 = vor.u32 %v986_v42, %v982_v35  ;;  %v914_v54 = vrot.slane %v912_v48, 4  ;;  %v1110_v56 = vld [vmem:[%s2250_s22 + $0x8] sm:$0x6]  ;;  %v921_v58 = vshll.u32 %v823_v46, 16  ;;  %v926_v59 = vshrl.u32 %v824_v47, 16  ;;  %s2129_s26 = scalar_lea.vmem [#allocation4], %s2114_s8  ;;  %vm2136_vm5 = vmor %vm908_vm3, %vm909_vm4 }
  0x5e   : > { %v867_v57 = vand.u32 %v2074_v18, %v857_v49  ;;  %v929_v60 = vshll.u32 %v824_v47, 16  ;;  %v1142_v61 = vld [vmem:[%s2250_s22 + $0x8] sm:$0xc]  ;;  %v1024_v63 = vand.u32 %v1019_v53, %v2074_v18  ;;  %v917_v0 = vrot.slane %v915_v55, 5  ;;  %v1634_v2 = vld [vmem:[%s2250_s22 + $0x4] sm:$0x8] }
  0x5f   : > { %v992_v62 = vand.u32 %v987_v52, %v2074_v18  ;;  %v935_v1 = vshll.u32 %v825_v51, 16  ;;  %v1675_v3 = vld [vmem:[%s2250_s22 + $0x4] sm:$0x10]  ;;  %v928_v5 = vrot.slane %v926_v59, 4  ;;  %v1117_v7 = vunpack.c.l.b16 %v1110_v56  ;;  %v2132_v12 = vld [vmem:[%s2129_s26] sm:$0xf] }
  0x60   : > { %876 = vmatpush.bf16.msra.mxu0 %v867_v57  ;;  %v931_v6 = vrot.slane %v929_v60, 5  ;;  %v918_v8 = vor.u32 %v917_v0, %v914_v54  ;;  %v923_v9 = vrot.slane %v921_v58, 5  ;;  %v1149_v10 = vunpack.c.l.b16 %v1142_v61  ;;  %v832_v24 = vld [vmem:[%s2129_s26 + $0x8] sm:$0xf]  ;;  %v1209_v30 = vld [vmem:[%s2250_s22 + $0xc] sm:$0x3] }
  0x61   : > { %1001 = vmatpush.bf16.msra.mxu3 %v992_v62  ;;  %v1635_v11 = vor.u32 %v1675_v3, %v1634_v2  ;;  %v937_v15 = vrot.slane %v935_v1, 5  ;;  %v1118_v16 = vpack.c.b16 %v1117_v7, %v1117_v7  ;;  %v1182_v25 = vshrl.u32 %v2132_v12, 16  ;;  %v826_v35 = vld [vmem:[%s2102_s17] sm:$0xf]  ;;  %v827_v39 = vld [vmem:[%s2102_s17 + $0x4] sm:$0x1] }
  0x62   : > { %v932_v14 = vor.u32 %v931_v6, %v928_v5  ;;  %v919_v17 = vrot.slane %v918_v8, 4  ;;  %v1150_v19 = vpack.c.b16 %v1149_v10, %v1149_v10  ;;  %v828_v40 = vld [vmem:[%s2102_s17 + $0x8] sm:$0xf]  ;;  %s740_s25 = scalar_lea.vmem [#allocation6], %s2092_s16  ;;  %v1185_v43 = vshll.u32 %v2132_v12, 16  ;;  %s1606_s8 = sshll.u32 %s801_s23, 3 }
  0x63   : > { %1611 = vmatmul.msk.bf16.vlgmr.msra.gmra.mxu0 %vm858_vm2, %v1610_v50  ;;  %v1081_v20 = vshrl.u32 %v1635_v11, 16  ;;  %v1084_v21 = vshll.u32 %v1635_v11, 16  ;;  %v1119_v23 = vrot.slane %v1118_v16, 1  ;;  %v1629_v42 = vld [vmem:[%s740_s25] sm:$0xf]  ;;  %v1196_v44 = vshrl.u32 %v832_v24, 16 }
  0x64   : > { %1033 = vmatpush.bf16.msrb.mxu0 %v1024_v63  ;;  %1626 = vmatmul.msk.bf16.vlgmr.msra.gmra.mxu3 %vm858_vm2, %v1625_v4  ;;  %v933_v22 = vrot.slane %v932_v14, 4  ;;  %v924_v26 = vsel %vm2136_vm5, %v919_v17, %v923_v9  ;;  %v1152_v27 = vshrl.u32 %v1150_v19, 16  ;;  %v1155_v28 = vshll.u32 %v1150_v19, 16  ;;  %v829_v46 = vld [vmem:[%s2102_s17 + $0xc] sm:$0x1]  ;;  %s803_s19 = scalar_lea.vmem [#allocation8], %s1606_s8 }
  0x65   : > { %v1083_v29 = vrot.slane %v1081_v20, 3  ;;  %v941_v32 = vunpack.c.l.b16 %v924_v26  ;;  %v1124_v33 = vand.u32 %v1119_v23, %v2074_v18  ;;  %v1086_v34 = vrot.slane %v1084_v21, 4  ;;  %v1672_v49 = vld [vmem:[%s740_s25 + $0x4] sm:$0xf0]  ;;  %v1644_v53 = vld [vmem:[%s747_s9] sm:$0xf] }
  0x66   : > { %v938_v31 = vsel %vm2136_vm5, %v933_v22, %v937_v15  ;;  %v1154_v37 = vrot.slane %v1152_v27, 2  ;;  %v1157_v38 = vrot.slane %v1155_v28, 3  ;;  %v1217_v45 = vand.u32 %v1209_v30, %v2074_v18  ;;  %v1673_v58 = vld [vmem:[%s747_s9 + $0x4] sm:$0xf0]  ;;  %v831_v0 = vld [vmem:[%s2129_s26 + $0x4] sm:$0x1] }
  0x67   : > { %v942_v36 = vunpack.c.l.b16 %v938_v31  ;;  %1133 = vmatpush.bf16.msrb.mxu2 %v1124_v33  ;;  %v1087_v41 = vor.u32 %v1086_v34, %v1083_v29  ;;  %v1199_v50 = vshll.u32 %v832_v24, 16  ;;  %v1043_v51 = vshrl.u32 %v826_v35, 16  ;;  %v833_v4 = vld [vmem:[%s2129_s26 + $0xc] sm:$0x1]  ;;  %v1639_v21 = vld [vmem:[%s2129_s26] sm:$0xf] }
  0x68   : > { %v1158_v48 = vor.u32 %v1157_v38, %v1154_v37  ;;  %1226 = vmatpush.bf16.msra.mxu0 %v1217_v45  ;;  %v1046_v54 = vshll.u32 %v826_v35, 16  ;;  %v1052_v55 = vshll.u32 %v827_v39, 16  ;;  %v1057_v56 = vshrl.u32 %v828_v40, 16  ;;  %s1657_s6 = sshll.u32 (%p2015_p0), %s2255_s18, 2  ;;  %s2256_s13 = sld [smem:[#allocation18_spill]] (%p2015_p0) }
  0x69   : > { %v943_v47 = vpack.c.b16 %v942_v36, %v941_v32  ;;  %v1092_v52 = vand.u32 %v1087_v41, %v2074_v18  ;;  %v1045_v59 = vrot.slane %v1043_v51, 4  ;;  %v1060_v60 = vshll.u32 %v828_v40, 16 }
  0x6a   : > { %v1163_v57 = vand.u32 %v1158_v48, %v2074_v18  ;;  %v1066_v61 = vshll.u32 %v829_v46, 16  ;;  %v1048_v62 = vrot.slane %v1046_v54, 5  ;;  %v1059_v63 = vrot.slane %v1057_v56, 4 }
  0x6b   : > { %1621 = vmatmul.msk.bf16.vlgmr.msra.gmra.mxu2 %vm858_vm2, %v943_v47  ;;  %1101 = vmatpush.bf16.msrb.mxu1 %v1092_v52  ;;  %v1184_v1 = vrot.slane %v1182_v25, 4  ;;  %v1630_v2 = vor.u32 %v1672_v49, %v1629_v42  ;;  %v1062_v3 = vrot.slane %v1060_v60, 5  ;;  %v1187_v5 = vrot.slane %v1185_v43, 5  ;;  %v1670_v25 = vld [vmem:[%s2129_s26 + $0x4] sm:$0xf0] }
  0x6c   : > { %1172 = vmatpush.bf16.msrb.mxu3 %v1163_v57  ;;  %v1049_v6 = vor.u32 %v1048_v62, %v1045_v59  ;;  %v1054_v7 = vrot.slane %v1052_v55, 5  ;;  %v1198_v8 = vrot.slane %v1196_v44, 4  ;;  %v1201_v9 = vrot.slane %v1199_v50, 5 }
  0x6d   : > { %v1645_v18 = vor.u32 %v1673_v58, %v1644_v53  ;;  %v1063_v10 = vor.u32 %v1062_v3, %v1059_v63  ;;  %v1068_v11 = vrot.slane %v1066_v61, 5  ;;  %v1191_v12 = vshll.u32 %v831_v0, 16  ;;  %v1771_v61 = vld [vmem:[%s2254_s29] ss:$0 sm:$0xff] }
  0x6e   : > { %v1050_v14 = vrot.slane %v1049_v6, 4  ;;  %v1188_v15 = vor.u32 %v1187_v5, %v1184_v1  ;;  %v1202_v16 = vor.u32 %v1201_v9, %v1198_v8  ;;  %v1205_v17 = vshll.u32 %v833_v4, 16  ;;  %s1308_s21 = scalar_lea.vmem (%p2015_p0), %s2256_s13, %s1657_s6 }
  0x6f   : > { %v1064_v19 = vrot.slane %v1063_v10, 4  ;;  %v1193_v24 = vrot.slane %v1191_v12, 5  ;;  %v1640_v31 = vor.u32 %v1670_v25, %v1639_v21  ;;  %v1861_v5 = vmov 0.0  }
  0x70   : > { %v1055_v20 = vsel %vm2136_vm5, %v1050_v14, %v1054_v7  ;;  %v1189_v27 = vrot.slane %v1188_v15, 4  ;;  %v1203_v28 = vrot.slane %v1202_v16, 4  ;;  %v1207_v29 = vrot.slane %v1205_v17, 5 }
  0x71   : > { %v1069_v22 = vsel %vm2136_vm5, %v1064_v19, %v1068_v11  ;;  %v1072_v23 = vunpack.c.l.b16 %v1055_v20 }
  0x72   : > { %v1073_v26 = vunpack.c.l.b16 %v1069_v22  ;;  %v1194_v32 = vsel %vm2136_vm5, %v1189_v27, %v1193_v24  ;;  %v1208_v33 = vsel %vm2136_vm5, %v1203_v28, %v1207_v29 }
  0x73   : > { %1631 = vmatmul.msk.bf16.vlgmr.msrb.gmra.mxu0 %vm858_vm2, %v1630_v2  ;;  %v1210_v34 = vunpack.c.l.b16 %v1194_v32  ;;  %v1211_v35 = vunpack.c.l.b16 %v1208_v33 }
  0x74   : > { %1646 = vmatmul.msk.bf16.vlgmr.msrb.gmra.mxu3 %vm858_vm2, %v1645_v18  ;;  %v1074_v30 = vpack.c.b16 %v1073_v26, %v1072_v23 }
  0x75   : > { %v1212_v36 = vpack.c.b16 %v1211_v35, %v1210_v34 }
  0x76   : > { %1636 = vmatmul.msk.bf16.vlgmr.msrb.gmra.mxu1 %vm858_vm2, %v1074_v30 }
  0x7b   : > { %1641 = vmatmul.msk.bf16.vlgmr.msrb.gmra.mxu2 %vm858_vm2, %v1640_v31 }
  0x83   : > { %1647 = vmatmul.msk.bf16.vlgmr.msra.gmra.mxu0 %vm858_vm2, %v1212_v36 }
  0xd8   : > { %v903_v38 = vpop.f32.mrf.mxu1 }
  0xe0   : > { %v878_v37 = vpop.f32.mrf.mxu0  ;;  %v905_v42 = vpop.f32.mrf.mxu1 }
  0xe1   : > { %v904_v44 = vadd.f32 %v903_v38, %v878_v37 }
  0xe7   : > { %v1003_v40 = vpop.f32.mrf.mxu3 }
  0xe8   : > { %v880_v39 = vpop.f32.mrf.mxu0 }
  0xe9   : > { %v906_v50 = vadd.f32 %v905_v42, %v880_v39 }
  0xee   : > { %v965_v41 = vpop.f32.mrf.mxu2 }
  0xef   : > { %v970_v45 = vadd.f32 %v965_v41, %v904_v44  ;;  %v1005_v46 = vpop.f32.mrf.mxu3 }
  0xf0   : > { %v1035_v43 = vpop.f32.mrf.mxu0 }
  0xf1   : > { %v1008_v13 = vadd.f32 %v1003_v40, %v970_v45 }
  0xf3   : > { %v1103_v48 = vpop.f32.mrf.mxu1  ;;  %v1040_v51 = vadd.f32 %v1035_v43, %v1008_v13 }
  0xf5   : > { %v1108_v53 = vadd.f32 %v1103_v48, %v1040_v51 }
  0xf6   : > { %v967_v47 = vpop.f32.mrf.mxu2 }
  0xf7   : > { %v971_v52 = vadd.f32 %v967_v47, %v906_v50  ;;  %v1174_v54 = vpop.f32.mrf.mxu3 }
  0xf8   : > { %v1037_v49 = vpop.f32.mrf.mxu0 }
  0xf9   : > { %v1009_v57 = vadd.f32 %v1005_v46, %v971_v52 }
  0xfb   : > { %v1041_v59 = vadd.f32 %v1037_v49, %v1009_v57  ;;  %v1105_v62 = vpop.f32.mrf.mxu1 }
  0xfd   : > { %v1109_v0 = vadd.f32 %v1105_v62, %v1041_v59 }
  0xfe   : > { %v1135_v55 = vpop.f32.mrf.mxu2 }
  0xff   : > { %v1140_v56 = vadd.f32 %v1135_v55, %v1108_v53  ;;  %v1176_v4 = vpop.f32.mrf.mxu3 }
 0x100   : > { %v1228_v58 = vpop.f32.mrf.mxu0 }
 0x101   : > { %v1179_v60 = vadd.f32 %v1174_v54, %v1140_v56 }
 0x103   : > { %v1233_v63 = vadd.f32 %v1228_v58, %v1179_v60 }
 0x105   : > { %v1239_v1 = vadd.f32 %v1771_v61, %v1233_v63 }
 0x106   : > { %v1137_v2 = vpop.f32.mrf.mxu2 }
 0x107   : > { %v1141_v3 = vadd.f32 %v1137_v2, %v1109_v0  ;;  %vm1243_vm6 = vcmp.ge.f32.partialorder %v1239_v1, 3.999 }
 0x108   : > { %v1648_v6 = vsel %vm1243_vm6, 1.0, %v1861_v5  ;;  %v1230_v7 = vpop.f32.mrf.mxu0 }
 0x109   : > { %v1251_v8 = vmul.f32 3.999, %v1648_v6  ;;  %v1180_v9 = vadd.f32 %v1176_v4, %v1141_v3 }
 0x10b   : > { %v1253_v18 = vsub.f32 %v1239_v1, %v1251_v8  ;;  %v1234_v10 = vadd.f32 %v1230_v7, %v1180_v9 }
 0x10d   : > { %v1255_v11 = vadd.f32 %v1253_v18, %v1239_v1  ;;  %v1240_v12 = vadd.f32 %v1771_v61, %v1234_v10 }
 0x10f   : > { %vm1257_vm7 = vcmp.ge.f32.partialorder %v1255_v11, 3.999  ;;  %vm1244_vm8 = vcmp.ge.f32.partialorder %v1240_v12, 3.999 }
 0x110   : > { %v1650_v14 = vsel %vm1257_vm7, 1.0, %v1861_v5  ;;  %v1649_v15 = vsel %vm1244_vm8, 1.0, %v1861_v5 }
 0x111   : > { %v1265_v16 = vmul.f32 3.999, %v1650_v14  ;;  %v1252_v17 = vmul.f32 3.999, %v1649_v15  ;;  %v1263_v33 = vadd.f32 %v1650_v14, %v1648_v6 }
 0x113   : > { %v1267_v19 = vsub.f32 %v1255_v11, %v1265_v16  ;;  %v1254_v20 = vsub.f32 %v1240_v12, %v1252_v17 }
 0x115   : > { %v1269_v21 = vadd.f32 %v1267_v19, %v1239_v1  ;;  %v1256_v22 = vadd.f32 %v1254_v20, %v1240_v12 }
 0x117   : > { %vm1271_vm9 = vcmp.ge.f32.partialorder %v1269_v21, 3.999  ;;  %vm1258_vm10 = vcmp.ge.f32.partialorder %v1256_v22, 3.999 }
 0x118   : > { %v1652_v23 = vsel %vm1271_vm9, 1.0, %v1861_v5  ;;  %v1651_v24 = vsel %vm1258_vm10, 1.0, %v1861_v5 }
 0x119   : > { %v1279_v25 = vmul.f32 3.999, %v1652_v23  ;;  %v1266_v26 = vmul.f32 3.999, %v1651_v24  ;;  %v1277_v36 = vadd.f32 %v1652_v23, %v1263_v33  ;;  %v1264_v37 = vadd.f32 %v1651_v24, %v1649_v15 }
 0x11b   : > { %v1281_v27 = vsub.f32 %v1269_v21, %v1279_v25  ;;  %v1268_v28 = vsub.f32 %v1256_v22, %v1266_v26 }
 0x11d   : > { %v1283_v29 = vadd.f32 %v1281_v27, %v1239_v1  ;;  %v1270_v30 = vadd.f32 %v1268_v28, %v1240_v12 }
 0x11f   : > { %vm1272_vm11 = vcmp.ge.f32.partialorder %v1270_v30, 3.999  ;;  %vm1285_vm12 = vcmp.ge.f32.partialorder %v1283_v29, 3.999 }
 0x120   : > { %v1653_v31 = vsel %vm1272_vm11, 1.0, %v1861_v5  ;;  %v1654_v35 = vsel %vm1285_vm12, 1.0, %v1861_v5 }
 0x121   : > { %v1280_v32 = vmul.f32 3.999, %v1653_v31  ;;  %v1291_v39 = vadd.f32 %v1654_v35, %v1277_v36  ;;  %v1278_v40 = vadd.f32 %v1653_v31, %v1264_v37 }
 0x123   : > { %v1282_v34 = vsub.f32 %v1270_v30, %v1280_v32  ;;  %v1293_v43 = vmul.f32 0.25, %v1291_v39 }
 0x125   : > { %v1284_v38 = vadd.f32 %v1282_v34, %v1240_v12 }
 0x127   : > { %vm1286_vm13 = vcmp.ge.f32.partialorder %v1284_v38, 3.999 }
 0x128   : > { %v1655_v41 = vsel %vm1286_vm13, 1.0, %v1861_v5 }
 0x129   : > { %v1292_v42 = vadd.f32 %v1655_v41, %v1278_v40 }
 0x12b   : > { %v1294_v44 = vmul.f32 0.25, %v1292_v42  ;;  %1305 = sbr.rel (!%p2015_p0) target bundleno = 313 (0x139), region = 302 }
 0x12d   : > { %v1679_v45 = vpack.c.bf16 %v1294_v44, %v1293_v43 }
 0x12f   : > { %1680 = vst [vmem:[%s803_s19] sm:$0xff] %v1679_v45  }
 0x136   : > { %v1325_v46 = vld [vmem:[%s803_s19] sm:$0xf]  ;;  %v1327_v47 = vld [vmem:[%s803_s19 + $0x4] sm:$0xf] }
 0x137   : > { %1326 = vst [vmem:[%s1308_s21] sm:$0xf] %v1325_v46 }
 0x138   : > { %1328 = vst [vmem:[%s1308_s21 + $0x20] sm:$0xf] %v1327_v47 }
 0x139 PF: > { %s18_s15 = sadd.s32 1, %s1858_s15   ;;  %s2257_s26 = sld [smem:[#allocation15_spill]] }
 0x13a   : > { %p15_p5 = scmp.ge.s32.totalorder %s18_s15, 10   ;;  %s2258_s7 = sld [smem:[#allocation14_spill]] }
 0x13b   : > { %s2259_s24 = sld [smem:[#allocation13_spill]]  ;;  %s2262_s27 = smov %s1822_s28 }
 0x13c   : > { %s2260_s20 = sld [smem:[#allocation12_spill]]  ;;  %s2264_s29 = smov %s1830_s30 }
 0x13d   : > { %s2261_s25 = sld [smem:[#allocation11_spill]]  ;;  %s2266_s9 = smov %s1838_s10 }
 0x13e   : > { %s2268_s11 = smov %s1846_s12  ;;  %s2270_s13 = smov %s1854_s14 }
 0x13f   : > { %s2263_s28 = smov %s2257_s26  ;;  %17 = sbr.rel (!%p15_p5) target bundleno = 10 (0xa), region = 420 }
 0x140   : > { %s2265_s30 = smov %s2258_s7 }
 0x141   : > { %s2267_s10 = smov %s2259_s24 }
 0x142   : > { %s2269_s12 = smov %s2260_s20 }
 0x143   : > { %s2271_s14 = smov %s2261_s25 }

// kernel: _lambda_.8
= control target key start
LH: loop header
LB: loop body
LE: loop exit
PB: predicated region body
PF: predicated region fallthrough
CT: control target
= control target key end

     0   :  { %s1352_s18 = smov 0   ;;  %s1354_s19 = smov 0   ;;  %s1642_s0 = inlined_call_operand.vmem [shape: bf16[2,10,10,8], index: 0, kind: input, shape index: {}, may-alias: {0,1,2}]   ;;  %s1643_s1 = inlined_call_operand.vmem [shape: bf16[2,10,10,8], index: 1, kind: input, shape index: {}, may-alias: {0,1,2}]   ;;  %s1644_s2 = inlined_call_operand.vmem [shape: bf16[2,10,10,8], index: 2, kind: input, shape index: {}, may-alias: {0,1,2}]   ;;  %s1645_s3 = inlined_call_operand.vmem [shape: bf16[72,128], index: 3, kind: input, shape index: {}]   ;;  %s1646_s4 = inlined_call_operand.vmem [shape: f32[1,128], index: 4, kind: input, shape index: {}]   ;;  %s1647_s5 = inlined_call_operand.vmem [shape: bf16[2,8,8,128], index: 5, kind: output, shape index: {}]  }
   0x1   :  { %s1356_s20 = smov 0   ;;  %s1358_s21 = smov 0  }
   0x2   :  { %s1360_s22 = smov 0   ;;  %s1362_s23 = smov 0  }
   0x3   :  { %s1364_s24 = smov 0   ;;  %s1366_s25 = smov 0  }
   0x4   :  { %s1368_s26 = smov 0  }
   0x5 LB: > { %1650 = sst [smem:[#allocation6_spill]] %s1307_s23  ;;  %s1101_s27 = sadd.s32 4294967295, %s1319_s26   ;;  %s1319_s26 = sphi %s1368_s26, %s15_s26   ;;  %s1315_s25 = sphi %s1366_s25, %s1669_s25   ;;  %s1311_s24 = sphi %s1364_s24, %s1668_s24   ;;  %s1307_s23 = sphi %s1362_s23, %s1662_s23   ;;  %s1303_s22 = sphi %s1360_s22, %s1661_s22   ;;  %s1299_s21 = sphi %s1358_s21, %s1667_s21   ;;  %s1295_s20 = sphi %s1356_s20, %s1666_s20   ;;  %s1291_s19 = sphi %s1354_s19, %s1665_s19   ;;  %s1287_s18 = sphi %s1352_s18, %s1664_s18  }
   0x6   : > { %s24_s28 = sadd.s32 1, %s1315_s25  ;;  %s34_s29 = sadd.s32 1, %s1307_s23 }
   0x7   : > { %p25_p0 = scmp.ge.s32.totalorder %s24_s28, 8  ;;  %p41_p1 = scmp.ne.s32.totalorder %s1307_s23, %s1303_s22 }
   0x8   : > { %p42_p2 = scmp.eq.s32.totalorder %s1319_s26, 0  ;;  %s62_s7 = sadd.s32 1, %s1299_s21 }
   0x9   : > { %s1403_s30 = scalar_select %p25_p0, 0, %s24_s28  }
   0xa   : > { %p1410_p3 = por %p42_p2, %p41_p1  ;;  %p69_p6 = scmp.ne.s32.totalorder %s1299_s21, %s1295_s20 }
   0xb   : > { %1651 = sst [smem:[#allocation7_spill]] %s1403_s30  ;;  %s31_s8 = ssub.s32 %s1315_s25, %s1403_s30 }
   0xc   : > { %s58_s9 = sadd.s32 1, %s1403_s30  ;;  %p32_p4 = scmp.eq.s32.totalorder %s31_s8, 0 }
   0xd   : > { %s59_s10 = ssub.s32 %s24_s28, %s58_s9  ;;  %p1428_p7 = por %p69_p6, %p42_p2 }
   0xe   : > { %p60_p5 = scmp.eq.s32.totalorder %s59_s10, 0  ;;  %s85_s14 = sadd.s32 2, %s1315_s25 }
   0xf   : > { %s1421_s11 = scalar_select %p32_p4, %s1307_s23, %s34_s29  }
  0x10   : > { %s1424_s12 = scalar_select %p60_p5, %s1299_s21, %s62_s7  }
  0x11   : > { %1653 = sst [smem:[#allocation8_spill]] %s1421_s11  ;;  %s86_s15 = sadd.s32 2, %s1403_s30 }
  0x12   : > { %s90_s16 = sadd.s32 1, %s1291_s19  ;;  %s87_s17 = ssub.s32 %s85_s14, %s86_s15 }
  0x13   : > { %p97_p8 = scmp.ne.s32.totalorder %s1291_s19, %s1287_s18  ;;  %p88_p9 = scmp.eq.s32.totalorder %s87_s17, 0 }
  0x14   : > { %p181_p10 = scmp.eq.s32.totalorder %s1101_s27, 7  ;;  %p1106_p13 = scmp.ge.s32.totalorder %s1319_s26, 8 }
  0x15   : > { %p1439_p11 = por %p97_p8, %p42_p2 }
  0x16   : > { %s1444_s29 = scalar_select %p88_p9, %s1291_s19, %s90_s16  }
  0x17   : > { %p1449_p12 = por %p181_p10, %p41_p1  ;;  %216 = sbr.rel (%p1106_p13) target bundleno = 46 (0x2e), region = 24 }
  0x1c   : > { %219 = sbr.rel (!%p1410_p3) target bundleno = 34 (0x22), region = 28  ;;  %s221_s27 = sand.u32 (%p1410_p3), 1, %s1307_s23  }
  0x1d   : > { %s1166_s8 = sshll.u32 (%p1410_p3), %s1315_s25, 3  ;;  %s1107_s9 = sshll.u32 (%p1410_p3), %s221_s27, 4 }
  0x1e   : > { %s226_s15 = scalar_lea.vmem (%p1410_p3), %s1642_s0, %s1166_s8  ;;  %s223_s16 = scalar_lea.vmem (%p1410_p3), [#allocation2], %s1107_s9 }
  0x1f   : > { %v243_v0 = vld [vmem:[%s226_s15] sm:$0xff] (%p1410_p3)   ;;  %v247_v1 = vld [vmem:[%s226_s15 + $0x50] sm:$0xff] (%p1410_p3)  }
  0x20   : > { %244 = vst [vmem:[%s223_s16] sm:$0xff] (%p1410_p3), %v243_v0  }
  0x21   : > { %248 = vst [vmem:[%s223_s16 + $0x8] sm:$0xff] %v247_v1  }
  0x22 PF: > { %282 = sbr.rel (!%p1428_p7) target bundleno = 40 (0x28), region = 69  ;;  %s284_s6 = sand.u32 (%p1428_p7), 1, %s1299_s21  }
  0x23   : > { %s1111_s17 = sshll.u32 (%p1428_p7), %s1315_s25, 3  ;;  %s1110_s30 = sshll.u32 (%p1428_p7), %s284_s6, 4 }
  0x24   : > { %s992_s23 = scalar_lea.vmem (%p1428_p7), %s1643_s1, %s1111_s17  ;;  %s286_s8 = scalar_lea.vmem (%p1428_p7), [#allocation3], %s1110_s30 }
  0x25   : > { %v1112_v2 = vld [vmem:[%s992_s23 + $0x8] sm:$0xff] (%p1428_p7)   ;;  %v1114_v3 = vld [vmem:[%s992_s23 + $0x58] sm:$0xff] (%p1428_p7)  }
  0x26   : > { %308 = vst [vmem:[%s286_s8] sm:$0xff] (%p1428_p7), %v1112_v2  }
  0x27   : > { %312 = vst [vmem:[%s286_s8 + $0x8] sm:$0xff] %v1114_v3  }
  0x28 PF: > { %346 = sbr.rel (!%p1439_p11) target bundleno = 46 (0x2e), region = 110  ;;  %s348_s13 = sand.u32 (%p1439_p11), 1, %s1291_s19  }
  0x29   : > { %s1117_s9 = sshll.u32 (%p1439_p11), %s1315_s25, 3  ;;  %s1116_s10 = sshll.u32 (%p1439_p11), %s348_s13, 4 }
  0x2a   : > { %s997_s16 = scalar_lea.vmem (%p1439_p11), %s1644_s2, %s1117_s9  ;;  %s350_s11 = scalar_lea.vmem (%p1439_p11), [#allocation4], %s1116_s10 }
  0x2b   : > { %v1118_v4 = vld [vmem:[%s997_s16 + $0x10] sm:$0xff] (%p1439_p11)   ;;  %v1120_v5 = vld [vmem:[%s997_s16 + $0x60] sm:$0xff] (%p1439_p11)  }
  0x2c   : > { %372 = vst [vmem:[%s350_s11] sm:$0xff] (%p1439_p11), %v1118_v4  }
  0x2d   : > { %376 = vst [vmem:[%s350_s11 + $0x8] sm:$0xff] %v1120_v5  }
  0x2e PF: > { %p1122_p0 = scmp.ge.s32.totalorder %s1319_s26, 1  ;;  %p409_p1 = scmp.lt.s32.totalorder %s1319_s26, 9 }
  0x30   : > { %p410_p2 = pnand %p1122_p0, %p409_p1 }
  0x31   : > { %s416_s17 = sand.u32 (!%p410_p2), 1, %s1303_s22   ;;  %s423_s15 = sand.u32 (!%p410_p2), 1, %s1295_s20  }
  0x32   : > { %413 = sbr.rel (%p410_p2) target bundleno = 288 (0x120), region = 151  ;;  %s1123_s27 = sshll.u32 (!%p410_p2), %s416_s17, 4 }
  0x33   : > { %s1494_s14 = scalar_lea.vmem (!%p410_p2), [#allocation2], %s1123_s27  ;;  %s1124_s16 = sshll.u32 (!%p410_p2), %s423_s15, 4 }
  0x34   : > { %s430_s11 = sand.u32 (!%p410_p2), 1, %s1287_s18   ;;  %s1513_s20 = scalar_lea.vmem (!%p410_p2), [#allocation3], %s1124_s16 }
  0x35   : > { %s1518_s18 = sshll.u32 (!%p410_p2), %s430_s11, 4 }
  0x36   : > { %s432_s10 = scalar_lea.vmem (!%p410_p2), [#allocation4], %s1518_s18 }
  0x37   : > { %vm533_vm0 = vcmask 1043456   ;;  %v589_v6 = vld [vmem:[%s1645_s3 + $0x8] sm:$0xf]  ;;  %v615_v7 = vld [vmem:[%s1645_s3 + $0xc] sm:$0xf]  ;;  %vm529_vm1 = vcmask 64512  }
  0x38   : > { %v597_v8 = vsel %vm533_vm0, %v589_v6, 0  ;;  %v625_v9 = vsel %vm533_vm0, %v615_v7, 0  ;;  %vm578_vm2 = vcmask 1042432   ;;  %vm579_vm3 = vcmask 1046532   ;;  %v525_v10 = vld [vmem:[%s1645_s3 + $0x4] sm:$0xf] }
  0x39   : > { %606 = vmatpush.bf16.msra.mxu2 %v597_v8  ;;  %634 = vmatpush.bf16.msra.mxu3 %v625_v9  ;;  %v493_v11 = vld [vmem:[%s1645_s3] sm:$0xf]  ;;  %v482_v13 = vld [vmem:[%s1494_s14 + $0x4] sm:$0x1]  ;;  %v483_v14 = vld [vmem:[%s1494_s14 + $0x8] sm:$0xf] }
  0x3a   : > { %v481_v12 = vld [vmem:[%s1494_s14] sm:$0xf]  ;;  %v484_v15 = vld [vmem:[%s1494_s14 + $0xc] sm:$0x1]  ;;  %vm1500_vm4 = vmor %vm578_vm2, %vm579_vm3  ;;  %v583_v18 = vrot.slane %v482_v13, 5  ;;  %v1134_v19 = vrot.slane %v483_v14, 9 }
  0x3b   : > { %v1133_v17 = vrot.slane %v481_v12, 9  ;;  %v535_v20 = vsel %vm533_vm0, %v525_v10, 0  ;;  %v587_v21 = vrot.slane %v484_v15, 5  ;;  %v560_v22 = vsel %vm533_vm0, %v493_v11, 0  ;;  %v1130_v31 = vld [vmem:[%s1494_s14] sm:$0xf] }
  0x3c   : > { %544 = vmatpush.bf16.msra.mxu0 %v535_v20  ;;  %vm494_vm5 = vsmask.f32 3328  ;;  %v498_v23 = vshrl.u32 %v481_v12, 16  ;;  %569 = vmatpush.bf16.msra.mxu1 %v560_v22  ;;  %vm495_vm6 = vsmask.f32 7440  ;;  %v501_v25 = vshll.u32 %v481_v12, 16 }
  0x3d   : > { %v584_v24 = vsel %vm1500_vm4, %v1133_v17, %v583_v18  ;;  %v507_v26 = vshll.u32 %v482_v13, 16  ;;  %v588_v27 = vsel %vm1500_vm4, %v1134_v19, %v587_v21  ;;  %v512_v30 = vshrl.u32 %v483_v14, 16  ;;  %v1138_v33 = vld [vmem:[%s1513_s20] sm:$0xf]  ;;  %v1168_v34 = vld [vmem:[%s1513_s20 + $0x4] sm:$0xf0]  ;;  %vm1532_vm7 = vmor %vm494_vm5, %vm495_vm6 }
  0x3e   : > { %v590_v28 = vunpack.c.l.b16 %v584_v24  ;;  %v500_v29 = vrot.slane %v498_v23, 4  ;;  %v591_v32 = vunpack.c.l.b16 %v588_v27  ;;  %v503_v35 = vrot.slane %v501_v25, 5  ;;  %v1167_v41 = vld [vmem:[%s1494_s14 + $0x4] sm:$0xf0]  ;;  %v671_v45 = vld [vmem:[%s1645_s3 + $0x10] sm:$0xf] }
  0x3f   : > { %v509_v36 = vrot.slane %v507_v26, 5  ;;  %v1139_v37 = vor.u32 %v1168_v34, %v1138_v33  ;;  %v514_v38 = vrot.slane %v512_v30, 4  ;;  %v515_v39 = vshll.u32 %v483_v14, 16  ;;  %v733_v46 = vld [vmem:[%s1645_s3 + $0x18] sm:$0xf]  ;;  %s1163_s23 = sshll.u32 (%p1449_p12), %s1311_s24, 2 }
  0x40   : > { %v521_v40 = vshll.u32 %v484_v15, 16  ;;  %v592_v42 = vpack.c.b16 %v591_v32, %v590_v28  ;;  %v504_v43 = vor.u32 %v503_v35, %v500_v29  ;;  %v1131_v44 = vor.u32 %v1167_v41, %v1130_v31  ;;  %v789_v47 = vld [vmem:[%s1645_s3 + $0x1c] sm:$0xf]  ;;  %v707_v52 = vld [vmem:[%s1645_s3 + $0x14] sm:$0xf]  ;;  %s924_s6 = scalar_lea.vmem (%p1449_p12), %s1647_s5, %s1163_s23 }
  0x41   : > { %1140 = vmatmul.msk.bf16.vlgmr.msra.gmra.mxu3 %vm529_vm1, %v1139_v37  ;;  %v517_v49 = vrot.slane %v515_v39, 5  ;;  %v679_v50 = vsel %vm533_vm0, %v671_v45, 0  ;;  %v743_v51 = vsel %vm533_vm0, %v733_v46, 0  ;;  %v797_v54 = vsel %vm533_vm0, %v789_v47, 0  ;;  %v1546_v58 = vld [vmem:[%s1513_s20] sm:$0xf] }
  0x42   : > { %1135 = vmatmul.msk.bf16.vlgmr.msra.gmra.mxu2 %vm529_vm1, %v592_v42  ;;  %v505_v53 = vrot.slane %v504_v43, 4  ;;  %1132 = vmatmul.msk.bf16.vlgmr.msra.gmra.mxu1 %vm529_vm1, %v1131_v44  ;;  %v715_v55 = vsel %vm533_vm0, %v707_v52, 0  ;;  %v523_v57 = vrot.slane %v521_v40, 5  ;;  %v486_v60 = vld [vmem:[%s1513_s20 + $0x4] sm:$0x1]  ;;  %v644_v62 = vshrl.u32 %v1546_v58, 16 }
  0x43   : > { %v518_v56 = vor.u32 %v517_v49, %v514_v38  ;;  %688 = vmatpush.bf16.msrb.mxu0 %v679_v50  ;;  %752 = vmatpush.bf16.msrb.mxu2 %v743_v51  ;;  %v1552_v61 = vld [vmem:[%s1513_s20 + $0x8] sm:$0xf]  ;;  %v647_v63 = vshll.u32 %v1546_v58, 16  ;;  %v488_v1 = vld [vmem:[%s1513_s20 + $0xc] sm:$0x1]  ;;  %v653_v10 = vshll.u32 %v486_v60, 16 }
  0x44   : > { %v510_v59 = vsel %vm1532_vm7, %v505_v53, %v509_v36  ;;  %806 = vmatpush.bf16.msrb.mxu3 %v797_v54  ;;  %724 = vmatpush.bf16.msrb.mxu1 %v715_v55  ;;  %v658_v2 = vshrl.u32 %v1552_v61, 16  ;;  %v1559_v3 = vld [vmem:[%s432_s10] sm:$0xf]  ;;  %v646_v5 = vrot.slane %v644_v62, 4  ;;  %v661_v7 = vshll.u32 %v1552_v61, 16  ;;  %s1126_s20 = sshll.u32 %s416_s17, 3 }
  0x45   : > { %v519_v0 = vrot.slane %v518_v56, 4  ;;  %v526_v4 = vunpack.c.l.b16 %v510_v59  ;;  %v649_v6 = vrot.slane %v647_v63, 5  ;;  %v1562_v8 = vld [vmem:[%s432_s10 + $0x4] sm:$0x1]  ;;  %v1566_v12 = vld [vmem:[%s432_s10 + $0x8] sm:$0xf] }
  0x46   : > { %v660_v11 = vrot.slane %v658_v2, 4  ;;  %v663_v15 = vrot.slane %v661_v7, 5  ;;  %v667_v17 = vshll.u32 %v488_v1, 16  ;;  %v492_v18 = vld [vmem:[%s432_s10 + $0xc] sm:$0x1]  ;;  %v762_v19 = vshrl.u32 %v1559_v3, 16 }
  0x47   : > { %v524_v9 = vsel %vm1532_vm7, %v519_v0, %v523_v57  ;;  %v650_v14 = vor.u32 %v649_v6, %v646_v5  ;;  %v765_v20 = vshll.u32 %v1559_v3, 16  ;;  %v771_v21 = vshll.u32 %v1562_v8, 16  ;;  %v1147_v24 = vld [vmem:[%s432_s10] sm:$0xf]  ;;  %v1169_v25 = vld [vmem:[%s432_s10 + $0x4] sm:$0xf0] }
  0x48   : > { %v527_v13 = vunpack.c.l.b16 %v524_v9  ;;  %v776_v22 = vshrl.u32 %v1566_v12, 16  ;;  %v664_v26 = vor.u32 %v663_v15, %v660_v11  ;;  %v779_v27 = vshll.u32 %v1566_v12, 16  ;;  %v825_v31 = vld [vmem:[%s1645_s3 + $0x20] sm:$0xf]  ;;  %s470_s18 = scalar_lea.vmem [#allocation5], %s1126_s20 }
  0x49   : > { %v764_v28 = vrot.slane %v762_v19, 4  ;;  %v767_v29 = vrot.slane %v765_v20, 5  ;;  %v655_v32 = vrot.slane %v653_v10, 5  ;;  %v669_v33 = vrot.slane %v667_v17, 5 }
  0x4a   : > { %v528_v23 = vpack.c.b16 %v527_v13, %v526_v4  ;;  %v778_v30 = vrot.slane %v776_v22, 4  ;;  %v781_v34 = vrot.slane %v779_v27, 5  ;;  %v785_v35 = vshll.u32 %v492_v18, 16 }
  0x4b   : > { %v651_v36 = vrot.slane %v650_v14, 4  ;;  %v665_v37 = vrot.slane %v664_v26, 4  ;;  %v768_v38 = vor.u32 %v767_v29, %v764_v28  ;;  %v773_v39 = vrot.slane %v771_v21, 5 }
  0x4c   : > { %1127 = vmatmul.msk.bf16.vlgmr.msra.gmra.mxu0 %vm529_vm1, %v528_v23  ;;  %v1148_v40 = vor.u32 %v1169_v25, %v1147_v24  ;;  %v782_v41 = vor.u32 %v781_v34, %v778_v30  ;;  %v787_v42 = vrot.slane %v785_v35, 5  ;;  %v833_v43 = vsel %vm533_vm0, %v825_v31, 0 }
  0x4d   : > { %v769_v44 = vrot.slane %v768_v38, 4  ;;  %842 = vmatpush.bf16.msra.mxu0 %v833_v43  ;;  %v1142_v45 = vrot.slane %v1546_v58, 9  ;;  %v701_v46 = vrot.slane %v486_v60, 5  ;;  %v1143_v49 = vrot.slane %v1552_v61, 9 }
  0x4e   : > { %v783_v47 = vrot.slane %v782_v41, 4  ;;  %v705_v50 = vrot.slane %v488_v1, 5  ;;  %v656_v51 = vsel %vm1532_vm7, %v651_v36, %v655_v32  ;;  %v670_v52 = vsel %vm1532_vm7, %v665_v37, %v669_v33  ;;  %v1248_v36 = vld [vmem:[%s1646_s4] ss:$0 sm:$0xff] }
  0x4f   : > { %v774_v53 = vsel %vm1532_vm7, %v769_v44, %v773_v39  ;;  %v702_v54 = vsel %vm1500_vm4, %v1142_v45, %v701_v46  ;;  %v672_v61 = vunpack.c.l.b16 %v656_v51  ;;  %v673_v62 = vunpack.c.l.b16 %v670_v52 }
  0x50   : > { %v788_v55 = vsel %vm1532_vm7, %v783_v47, %v787_v42  ;;  %v790_v56 = vunpack.c.l.b16 %v774_v53  ;;  %v706_v57 = vsel %vm1500_vm4, %v1143_v49, %v705_v50  ;;  %v708_v58 = vunpack.c.l.b16 %v702_v54 }
  0x51   : > { %v791_v59 = vunpack.c.l.b16 %v788_v55  ;;  %v709_v60 = vunpack.c.l.b16 %v706_v57  ;;  %v674_v1 = vpack.c.b16 %v673_v62, %v672_v61  ;;  %v819_v48 = vrot.slane %v1562_v8, 5 }
  0x52   : > { %1149 = vmatmul.msk.bf16.vlgmr.msrb.gmra.mxu2 %vm529_vm1, %v1148_v40  ;;  %v823_v2 = vrot.slane %v492_v18, 5  ;;  %v1151_v4 = vrot.slane %v1559_v3, 9  ;;  %v1152_v5 = vrot.slane %v1566_v12, 9  ;;  %v1321_v43 = vmov 0.0  }
  0x53   : > { %v792_v63 = vpack.c.b16 %v791_v59, %v790_v56  ;;  %v710_v0 = vpack.c.b16 %v709_v60, %v708_v58 }
  0x54   : > { %v820_v6 = vsel %vm1500_vm4, %v1151_v4, %v819_v48  ;;  %v824_v7 = vsel %vm1500_vm4, %v1152_v5, %v823_v2 }
  0x55   : > { %1150 = vmatmul.msk.bf16.vlgmr.msrb.gmra.mxu3 %vm529_vm1, %v792_v63  ;;  %1144 = vmatmul.msk.bf16.vlgmr.msrb.gmra.mxu1 %vm529_vm1, %v710_v0  ;;  %v826_v9 = vunpack.c.l.b16 %v820_v6  ;;  %v827_v10 = vunpack.c.l.b16 %v824_v7 }
  0x57   : > { %v828_v11 = vpack.c.b16 %v827_v10, %v826_v9 }
  0x5c   : > { %1141 = vmatmul.msk.bf16.vlgmr.msrb.gmra.mxu0 %vm529_vm1, %v674_v1 }
  0x6c   : > { %1153 = vmatmul.msk.bf16.vlgmr.msra.gmra.mxu0 %vm529_vm1, %v828_v11 }
  0xbf   : > { %v571_v14 = vpop.f32.mrf.mxu1 }
  0xc4   : > { %v636_v8 = vpop.f32.mrf.mxu3 }
  0xc5   : > { %v608_v15 = vpop.f32.mrf.mxu2 }
  0xc7   : > { %v573_v3 = vpop.f32.mrf.mxu1 }
  0xc9   : > { %v546_v13 = vpop.f32.mrf.mxu0 }
  0xca   : > { %v572_v18 = vadd.f32 %v571_v14, %v546_v13 }
  0xcc   : > { %v613_v19 = vadd.f32 %v608_v15, %v572_v18  ;;  %v638_v23 = vpop.f32.mrf.mxu3 }
  0xcd   : > { %v610_v12 = vpop.f32.mrf.mxu2 }
  0xce   : > { %v641_v21 = vadd.f32 %v636_v8, %v613_v19 }
  0xd1   : > { %v548_v17 = vpop.f32.mrf.mxu0 }
  0xd2   : > { %v574_v22 = vadd.f32 %v573_v3, %v548_v17  ;;  %v726_v16 = vpop.f32.mrf.mxu1 }
  0xd4   : > { %v614_v25 = vadd.f32 %v610_v12, %v574_v22 }
  0xd5   : > { %v754_v26 = vpop.f32.mrf.mxu2 }
  0xd6   : > { %v642_v29 = vadd.f32 %v638_v23, %v614_v25 }
  0xd8   : > { %v808_v30 = vpop.f32.mrf.mxu3 }
  0xd9   : > { %v690_v20 = vpop.f32.mrf.mxu0 }
  0xda   : > { %v695_v24 = vadd.f32 %v690_v20, %v641_v21  ;;  %v728_v33 = vpop.f32.mrf.mxu1 }
  0xdc   : > { %v731_v27 = vadd.f32 %v726_v16, %v695_v24 }
  0xdd   : > { %v756_v37 = vpop.f32.mrf.mxu2 }
  0xde   : > { %v759_v31 = vadd.f32 %v754_v26, %v731_v27 }
  0xe0   : > { %v813_v34 = vadd.f32 %v808_v30, %v759_v31  ;;  %v810_v42 = vpop.f32.mrf.mxu3 }
  0xe1   : > { %v692_v28 = vpop.f32.mrf.mxu0 }
  0xe2   : > { %v696_v32 = vadd.f32 %v692_v28, %v642_v29 }
  0xe4   : > { %v732_v35 = vadd.f32 %v728_v33, %v696_v32 }
  0xe6   : > { %v760_v40 = vadd.f32 %v756_v37, %v732_v35 }
  0xe8   : > { %v814_v45 = vadd.f32 %v810_v42, %v760_v40 }
  0xe9   : > { %v844_v38 = vpop.f32.mrf.mxu0 }
  0xea   : > { %v849_v39 = vadd.f32 %v844_v38, %v813_v34 }
  0xec   : > { %v855_v41 = vadd.f32 %v1248_v36, %v849_v39 }
  0xee   : > { %vm859_vm8 = vcmp.ge.f32.partialorder %v855_v41, 3.999 }
  0xef   : > { %v1154_v44 = vsel %vm859_vm8, 1.0, %v1321_v43 }
  0xf0   : > { %v867_v46 = vmul.f32 3.999, %v1154_v44 }
  0xf1   : > { %v846_v47 = vpop.f32.mrf.mxu0 }
  0xf2   : > { %v869_v49 = vsub.f32 %v855_v41, %v867_v46  ;;  %v850_v50 = vadd.f32 %v846_v47, %v814_v45 }
  0xf4   : > { %v871_v51 = vadd.f32 %v869_v49, %v855_v41  ;;  %v856_v52 = vadd.f32 %v1248_v36, %v850_v50 }
  0xf6   : > { %vm873_vm9 = vcmp.ge.f32.partialorder %v871_v51, 3.999  ;;  %vm860_vm10 = vcmp.ge.f32.partialorder %v856_v52, 3.999 }
  0xf7   : > { %v1156_v53 = vsel %vm873_vm9, 1.0, %v1321_v43  ;;  %v1155_v54 = vsel %vm860_vm10, 1.0, %v1321_v43 }
  0xf8   : > { %v881_v55 = vmul.f32 3.999, %v1156_v53  ;;  %v868_v56 = vmul.f32 3.999, %v1155_v54  ;;  %v879_v7 = vadd.f32 %v1156_v53, %v1154_v44 }
  0xfa   : > { %v883_v57 = vsub.f32 %v871_v51, %v881_v55  ;;  %v870_v58 = vsub.f32 %v856_v52, %v868_v56 }
  0xfc   : > { %v885_v59 = vadd.f32 %v883_v57, %v855_v41  ;;  %v872_v60 = vadd.f32 %v870_v58, %v856_v52 }
  0xfe   : > { %vm887_vm11 = vcmp.ge.f32.partialorder %v885_v59, 3.999  ;;  %vm874_vm12 = vcmp.ge.f32.partialorder %v872_v60, 3.999 }
  0xff   : > { %v1158_v61 = vsel %vm887_vm11, 1.0, %v1321_v43  ;;  %v1157_v62 = vsel %vm874_vm12, 1.0, %v1321_v43 }
 0x100   : > { %v895_v63 = vmul.f32 3.999, %v1158_v61  ;;  %v882_v0 = vmul.f32 3.999, %v1157_v62  ;;  %v893_v11 = vadd.f32 %v1158_v61, %v879_v7  ;;  %v880_v13 = vadd.f32 %v1157_v62, %v1155_v54 }
 0x102   : > { %v897_v1 = vsub.f32 %v885_v59, %v895_v63  ;;  %v884_v48 = vsub.f32 %v872_v60, %v882_v0 }
 0x104   : > { %v899_v2 = vadd.f32 %v897_v1, %v855_v41  ;;  %v886_v4 = vadd.f32 %v884_v48, %v856_v52 }
 0x106   : > { %vm888_vm13 = vcmp.ge.f32.partialorder %v886_v4, 3.999  ;;  %vm901_vm14 = vcmp.ge.f32.partialorder %v899_v2, 3.999 }
 0x107   : > { %v1159_v5 = vsel %vm888_vm13, 1.0, %v1321_v43  ;;  %v1160_v10 = vsel %vm901_vm14, 1.0, %v1321_v43 }
 0x108   : > { %v896_v6 = vmul.f32 3.999, %v1159_v5  ;;  %v907_v15 = vadd.f32 %v1160_v10, %v893_v11  ;;  %v894_v8 = vadd.f32 %v1159_v5, %v880_v13 }
 0x10a   : > { %v898_v9 = vsub.f32 %v886_v4, %v896_v6  ;;  %v909_v3 = vmul.f32 0.25, %v907_v15 }
 0x10c   : > { %v900_v14 = vadd.f32 %v898_v9, %v856_v52 }
 0x10e   : > { %vm902_vm15 = vcmp.ge.f32.partialorder %v900_v14, 3.999 }
 0x10f   : > { %v1161_v17 = vsel %vm902_vm15, 1.0, %v1321_v43 }
 0x110   : > { %v908_v18 = vadd.f32 %v1161_v17, %v894_v8 }
 0x112   : > { %v910_v19 = vmul.f32 0.25, %v908_v18  ;;  %921 = sbr.rel (!%p1449_p12) target bundleno = 288 (0x120), region = 167 }
 0x114   : > { %v1173_v12 = vpack.c.bf16 %v910_v19, %v909_v3 }
 0x116   : > { %1174 = vst [vmem:[%s470_s18] sm:$0xff] %v1173_v12  }
 0x11d   : > { %v941_v20 = vld [vmem:[%s470_s18] sm:$0xf]  ;;  %v943_v21 = vld [vmem:[%s470_s18 + $0x4] sm:$0xf] }
 0x11e   : > { %942 = vst [vmem:[%s924_s6] sm:$0xf] %v941_v20 }
 0x11f   : > { %944 = vst [vmem:[%s924_s6 + $0x20] sm:$0xf] %v943_v21 }
 0x120 PF: > { %s15_s26 = sadd.s32 1, %s1319_s26   ;;  %s1661_s22 = sld [smem:[#allocation6_spill]] }
 0x121   : > { %p12_p3 = scmp.ge.s32.totalorder %s15_s26, 10   ;;  %s1662_s23 = sld [smem:[#allocation8_spill]] }
 0x122   : > { %s1663_s7 = sld [smem:[#allocation7_spill]]  ;;  %s1664_s18 = smov %s1291_s19 }
 0x123   : > { %s1665_s19 = smov %s1444_s29  ;;  %s1666_s20 = smov %s1299_s21 }
 0x124   : > { %s1667_s21 = smov %s1424_s12  ;;  %s1668_s24 = smov %s1315_s25 }
 0x125   :  { %14 = sbr.rel (!%p12_p3) target bundleno = 5 (0x5), region = 261 }
 0x128   : > { %s1669_s25 = smov %s1663_s7 }

// kernel: _lambda_.9
= control target key start
LH: loop header
LB: loop body
LE: loop exit
PB: predicated region body
PF: predicated region fallthrough
CT: control target
= control target key end

     0   :  { %s2010_s0 = inlined_call_operand.vmem [shape: bf16[2,10,5,8], index: 0, kind: input, shape index: {}, may-alias: {0,1,2}]   ;;  %s2011_s1 = inlined_call_operand.vmem [shape: bf16[2,10,5,8], index: 1, kind: input, shape index: {}, may-alias: {0,1,2}]   ;;  %s2012_s2 = inlined_call_operand.vmem [shape: bf16[2,10,5,8], index: 2, kind: input, shape index: {}, may-alias: {0,1,2}]   ;;  %s2013_s3 = inlined_call_operand.vmem [shape: bf16[2,10,5,8], index: 3, kind: input, shape index: {}, may-alias: {3,4,5}]   ;;  %s2014_s4 = inlined_call_operand.vmem [shape: bf16[2,10,5,8], index: 4, kind: input, shape index: {}, may-alias: {3,4,5}]   ;;  %s2015_s5 = inlined_call_operand.vmem [shape: bf16[2,10,5,8], index: 5, kind: input, shape index: {}, may-alias: {3,4,5}]   ;;  %s2016_s6 = inlined_call_operand.vmem [shape: bf16[72,128], index: 6, kind: input, shape index: {}]   ;;  %s2017_s7 = inlined_call_operand.vmem [shape: f32[1,128], index: 7, kind: input, shape index: {}]   ;;  %s2018_s8 = inlined_call_operand.vmem [shape: bf16[2,4,4,128], index: 8, kind: output, shape index: {}]  }
   0x1   :  { %2022 = sst [smem:[#allocation16_spill]] %s2016_s6 }
   0x2   :  { %2023 = sst [smem:[#allocation17_spill]] %s2017_s7 }
   0x3   :  { %2024 = sst [smem:[#allocation18_spill]] %s2018_s8 }
   0x4   :  { %s1719_s27 = smov 0   ;;  %s1721_s28 = smov 0  }
   0x5   :  { %s1723_s29 = smov 0   ;;  %s1725_s30 = smov 0  }
   0x6   :  { %s1727_s9 = smov 0   ;;  %s1729_s10 = smov 0  }
   0x7   :  { %s1731_s11 = smov 0   ;;  %s1733_s12 = smov 0  }
   0x8   :  { %s1735_s13 = smov 0   ;;  %s1737_s14 = smov 0  }
   0x9   :  { %s1739_s15 = smov 0  }
   0xa LB: > { %2025 = sst [smem:[#allocation9_spill]] %s1655_s11  ;;  %s27_s17 = sadd.s32 1, %s1667_s14  ;;  %s1671_s15 = sphi %s1739_s15, %s18_s15   ;;  %s1667_s14 = sphi %s1737_s14, %s2060_s14   ;;  %s1663_s13 = sphi %s1735_s13, %s2059_s13   ;;  %s1659_s12 = sphi %s1733_s12, %s2058_s12   ;;  %s1655_s11 = sphi %s1731_s11, %s2057_s11   ;;  %s1651_s10 = sphi %s1729_s10, %s2056_s10   ;;  %s1647_s9 = sphi %s1727_s9, %s2055_s9   ;;  %s1643_s30 = sphi %s1725_s30, %s2054_s30   ;;  %s1639_s29 = sphi %s1723_s29, %s2053_s29   ;;  %s1635_s28 = sphi %s1721_s28, %s2052_s28   ;;  %s1631_s27 = sphi %s1719_s27, %s2051_s27  }
   0xb   : > { %2026 = sst [smem:[#allocation10_spill]] %s1663_s13  ;;  %p28_p0 = scmp.ge.s32.totalorder %s27_s17, 4 }
   0xc   : > { %s1422_s18 = sshll.u32 %s1667_s14, 1  ;;  %s39_s19 = sadd.s32 1, %s1659_s12 }
   0xd   : > { %p46_p1 = scmp.ne.s32.totalorder %s1659_s12, %s1655_s11  ;;  %s2062_s17 = smov (%p28_p0, %s27_s17), 0 }
   0xe   : > { %2027 = sst [smem:[#allocation11_spill]] %s2062_s17  ;;  %p47_p2 = scmp.eq.s32.totalorder %s1671_s15, 0 }
   0xf   : > { %s63_s20 = sadd.s32 1, %s1422_s18  ;;  %s1423_s21 = sshll.u32 %s2062_s17, 1 }
  0x10   : > { %s69_s22 = sadd.s32 1, %s1651_s10  ;;  %s36_s23 = ssub.s32 %s1422_s18, %s1423_s21 }
  0x11   : > { %p1787_p3 = por %p47_p2, %p46_p1  ;;  %p37_p4 = scmp.eq.s32.totalorder %s36_s23, 0 }
  0x12   : > { %s65_s25 = sadd.s32 1, %s1423_s21  ;;  %p76_p5 = scmp.ne.s32.totalorder %s1651_s10, %s1647_s9 }
  0x13   : > { %s66_s26 = ssub.s32 %s63_s20, %s65_s25  ;;  %s93_s13 = sadd.s32 2, %s1422_s18 }
  0x14   : > { %s1794_s16 = scalar_select %p37_p4, %s1659_s12, %s39_s19  }
  0x15   : > { %p67_p6 = scmp.eq.s32.totalorder %s66_s26, 0  ;;  %p1798_p7 = por %p76_p5, %p47_p2 }
  0x16   : > { %2029 = sst [smem:[#allocation12_spill]] %s1794_s16  ;;  %s95_s7 = sadd.s32 2, %s1423_s21 }
  0x17   : > { %s1803_s23 = scalar_select %p67_p6, %s1651_s10, %s69_s22  }
  0x18   : > { %s96_s11 = ssub.s32 %s93_s13, %s95_s7  ;;  %s99_s6 = sadd.s32 1, %s1643_s30 }
  0x19   : > { %2031 = sst [smem:[#allocation13_spill]] %s1803_s23  ;;  %p97_p8 = scmp.eq.s32.totalorder %s96_s11, 0 }
  0x1a   : > { %p106_p9 = scmp.ne.s32.totalorder %s1643_s30, %s1639_s29  ;;  %s262_s20 = ssub.s32 %s1667_s14, %s2062_s17 }
  0x1b   : > { %s267_s25 = sadd.s32 1, %s1635_s28  ;;  %p265_p11 = scmp.eq.s32.totalorder %s262_s20, 0 }
  0x1c   : > { %s1812_s19 = scalar_select %p97_p8, %s1643_s30, %s99_s6  }
  0x1d   : > { %p1816_p10 = por %p106_p9, %p47_p2  ;;  %p277_p12 = scmp.ne.s32.totalorder %s1635_s28, %s1631_s27 }
  0x1e   : > { %2032 = sst [smem:[#allocation14_spill]] %s1812_s19  ;;  %s2034_s16 = sadd.s32 4294967295, %s1671_s15  }
  0x1f   : > { %p278_p13 = scmp.eq.s32.totalorder %s2034_s16, 3  ;;  %p1437_p1 = scmp.ge.s32.totalorder %s1671_s15, 4 }
  0x20   : > { %s1825_s18 = scalar_select %p265_p11, %s1635_s28, %s267_s25  }
  0x21   : > { %p1827_p0 = por %p278_p13, %p277_p12  ;;  %313 = sbr.rel (%p1437_p1) target bundleno = 74 (0x4a), region = 24 }
  0x22   : > { %2035 = sst [smem:[#allocation15_spill]] %s1825_s18 }
  0x26   : > { %316 = sbr.rel (!%p1787_p3) target bundleno = 44 (0x2c), region = 28  ;;  %s318_s6 = sand.u32 (%p1787_p3), 1, %s1659_s12  }
  0x27   : > { %s1489_s11 = sshll.u32 (%p1787_p3), %s1667_s14, 3  ;;  %s1438_s13 = sshll.u32 (%p1787_p3), %s318_s6, 3 }
  0x28   : > { %s323_s16 = scalar_lea.vmem (%p1787_p3), %s2010_s0, %s1489_s11  ;;  %s320_s20 = scalar_lea.vmem (%p1787_p3), [#allocation2], %s1438_s13 }
  0x29   : > { %v340_v0 = vld [vmem:[%s323_s16] sm:$0xf] (%p1787_p3)  ;;  %v342_v1 = vld [vmem:[%s323_s16 + $0x28] sm:$0xf] (%p1787_p3) }
  0x2a   : > { %341 = vst [vmem:[%s320_s20] sm:$0xf] (%p1787_p3), %v340_v0 }
  0x2b   : > { %343 = vst [vmem:[%s320_s20 + $0x4] sm:$0xf] %v342_v1 }
  0x2c PF: > { %371 = sbr.rel (!%p1798_p7) target bundleno = 50 (0x32), region = 69  ;;  %s373_s25 = sand.u32 (%p1798_p7), 1, %s1651_s10  }
  0x2d   : > { %s1490_s17 = sshll.u32 (%p1798_p7), %s1667_s14, 3  ;;  %s1441_s23 = sshll.u32 (%p1798_p7), %s373_s25, 3 }
  0x2e   : > { %s1252_s18 = scalar_lea.vmem (%p1798_p7), %s2011_s1, %s1490_s17  ;;  %s375_s11 = scalar_lea.vmem (%p1798_p7), [#allocation3], %s1441_s23 }
  0x2f   : > { %v1444_v2 = vld [vmem:[%s1252_s18 + $0x4] sm:$0xf] (%p1798_p7)  ;;  %v1445_v3 = vld [vmem:[%s1252_s18 + $0x2c] sm:$0xf] (%p1798_p7) }
  0x30   : > { %397 = vst [vmem:[%s375_s11] sm:$0xf] (%p1798_p7), %v1444_v2 }
  0x31   : > { %399 = vst [vmem:[%s375_s11 + $0x4] sm:$0xf] %v1445_v3 }
  0x32 PF: > { %427 = sbr.rel (!%p1816_p10) target bundleno = 56 (0x38), region = 110  ;;  %s429_s13 = sand.u32 (%p1816_p10), 1, %s1643_s30  }
  0x33   : > { %s1491_s21 = sshll.u32 (%p1816_p10), %s1667_s14, 3  ;;  %s1446_s22 = sshll.u32 (%p1816_p10), %s429_s13, 3 }
  0x34   : > { %s1258_s25 = scalar_lea.vmem (%p1816_p10), %s2012_s2, %s1491_s21  ;;  %s431_s17 = scalar_lea.vmem (%p1816_p10), [#allocation4], %s1446_s22 }
  0x35   : > { %v1449_v4 = vld [vmem:[%s1258_s25 + $0x8] sm:$0xf] (%p1816_p10)  ;;  %v1450_v5 = vld [vmem:[%s1258_s25 + $0x30] sm:$0xf] (%p1816_p10) }
  0x36   : > { %453 = vst [vmem:[%s431_s17] sm:$0xf] (%p1816_p10), %v1449_v4 }
  0x37   : > { %455 = vst [vmem:[%s431_s17 + $0x4] sm:$0xf] %v1450_v5 }
  0x38 PF: > { %483 = sbr.rel (!%p1787_p3) target bundleno = 62 (0x3e), region = 151  ;;  %s485_s23 = sand.u32 (%p1787_p3), 1, %s1659_s12  }
  0x39   : > { %s1492_s19 = sshll.u32 (%p1787_p3), %s1667_s14, 3  ;;  %s1451_s18 = sshll.u32 (%p1787_p3), %s485_s23, 3 }
  0x3a   : > { %s490_s13 = scalar_lea.vmem (%p1787_p3), %s2013_s3, %s1492_s19  ;;  %s487_s21 = scalar_lea.vmem (%p1787_p3), [#allocation5], %s1451_s18 }
  0x3b   : > { %v507_v6 = vld [vmem:[%s490_s13] sm:$0xf] (%p1787_p3)  ;;  %v509_v7 = vld [vmem:[%s490_s13 + $0x28] sm:$0xf] (%p1787_p3) }
  0x3c   : > { %508 = vst [vmem:[%s487_s21] sm:$0xf] (%p1787_p3), %v507_v6 }
  0x3d   : > { %510 = vst [vmem:[%s487_s21 + $0x4] sm:$0xf] %v509_v7 }
  0x3e PF: > { %538 = sbr.rel (!%p1798_p7) target bundleno = 68 (0x44), region = 192  ;;  %s540_s24 = sand.u32 (%p1798_p7), 1, %s1651_s10  }
  0x3f   : > { %s1493_s22 = sshll.u32 (%p1798_p7), %s1667_s14, 3  ;;  %s1454_s16 = sshll.u32 (%p1798_p7), %s540_s24, 3 }
  0x40   : > { %s1268_s17 = scalar_lea.vmem (%p1798_p7), %s2014_s4, %s1493_s22  ;;  %s542_s23 = scalar_lea.vmem (%p1798_p7), [#allocation6], %s1454_s16 }
  0x41   : > { %v1457_v8 = vld [vmem:[%s1268_s17 + $0x4] sm:$0xf] (%p1798_p7)  ;;  %v1458_v9 = vld [vmem:[%s1268_s17 + $0x2c] sm:$0xf] (%p1798_p7) }
  0x42   : > { %564 = vst [vmem:[%s542_s23] sm:$0xf] (%p1798_p7), %v1457_v8 }
  0x43   : > { %566 = vst [vmem:[%s542_s23 + $0x4] sm:$0xf] %v1458_v9 }
  0x44 PF: > { %594 = sbr.rel (!%p1816_p10) target bundleno = 74 (0x4a), region = 233  ;;  %s596_s8 = sand.u32 (%p1816_p10), 1, %s1643_s30  }
  0x45   : > { %s1494_s19 = sshll.u32 (%p1816_p10), %s1667_s14, 3  ;;  %s1459_s18 = sshll.u32 (%p1816_p10), %s596_s8, 3 }
  0x46   : > { %s1274_s13 = scalar_lea.vmem (%p1816_p10), %s2015_s5, %s1494_s19  ;;  %s598_s21 = scalar_lea.vmem (%p1816_p10), [#allocation7], %s1459_s18 }
  0x47   : > { %v1462_v10 = vld [vmem:[%s1274_s13 + $0x8] sm:$0xf] (%p1816_p10)  ;;  %v1463_v11 = vld [vmem:[%s1274_s13 + $0x30] sm:$0xf] (%p1816_p10) }
  0x48   : > { %620 = vst [vmem:[%s598_s21] sm:$0xf] (%p1816_p10), %v1462_v10 }
  0x49   : > { %622 = vst [vmem:[%s598_s21 + $0x4] sm:$0xf] %v1463_v11 }
  0x4a PF: > { %p1464_p2 = scmp.ge.s32.totalorder %s1671_s15, 1  ;;  %p649_p3 = scmp.lt.s32.totalorder %s1671_s15, 5 }
  0x4c   : > { %p650_p4 = pnand %p1464_p2, %p649_p3 }
  0x4d   : > { %s2037_s22 = sld [smem:[#allocation16_spill]] (!%p650_p4)  ;;  %s663_s20 = sand.u32 (!%p650_p4), 1, %s1647_s9  }
  0x4e   : > { %653 = sbr.rel (%p650_p4) target bundleno = 342 (0x156), region = 274  ;;  %s2038_s16 = sld [smem:[#allocation9_spill]] (!%p650_p4) }
  0x4f   : > { %s1918_s25 = sshll.u32 (!%p650_p4), %s663_s20, 3  ;;  %s2043_s20 = sld [smem:[#allocation17_spill]] (!%p650_p4) }
  0x50   : > { %s665_s9 = scalar_lea.vmem (!%p650_p4), [#allocation3], %s1918_s25 }
  0x53   : > { %v781_v12 = vld [vmem:[%s2037_s22 + $0x4] sm:$0xf]  ;;  %vm791_vm0 = vcmask 1043456   ;;  %v780_v13 = vld [vmem:[%s2037_s22] sm:$0xf]  ;;  %vm836_vm1 = vcmask 1041408  }
  0x54   : > { %s656_s17 = sand.u32 1, %s2038_s16   ;;  %v793_v14 = vsel %vm791_vm0, %v781_v12, 0  ;;  %v817_v15 = vsel %vm791_vm0, %v780_v13, 0  ;;  %v881_v16 = vld [vmem:[%s2037_s22 + $0x8] sm:$0xf]  ;;  %vm839_vm2 = vcmask 1043458  }
  0x55   : > { %s1465_s23 = sshll.u32 %s656_s17, 3  ;;  %802 = vmatpush.bf16.msra.mxu0 %v793_v14  ;;  %826 = vmatpush.bf16.msra.mxu1 %v817_v15  ;;  %v891_v17 = vsel %vm791_vm0, %v881_v16, 0  ;;  %v907_v18 = vld [vmem:[%s2037_s22 + $0xc] sm:$0xf]  ;;  %vm848_vm3 = vsmask.f32 1280 }
  0x56   : > { %s679_s11 = scalar_lea.vmem [#allocation5], %s1465_s23  ;;  %s658_s13 = scalar_lea.vmem [#allocation2], %s1465_s23  ;;  %900 = vmatpush.bf16.msra.mxu2 %v891_v17  ;;  %v917_v23 = vsel %vm791_vm0, %v907_v18, 0  ;;  %vm849_vm4 = vsmask.f32 3336  ;;  %vm788_vm6 = vcmask 64512  }
  0x57   : > { %v774_v19 = vld [vmem:[%s679_s11] sm:$0x7]  ;;  %v775_v20 = vld [vmem:[%s679_s11 + $0x4] sm:$0x7]  ;;  %v768_v21 = vld [vmem:[%s658_s13] sm:$0x7]  ;;  %926 = vmatpush.bf16.msra.mxu3 %v917_v23 }
  0x58   : > { %783 = vst [vmem:[#allocation1] ss:$4 sm:$0xff] %v774_v19  ;;  %v769_v22 = vld [vmem:[%s658_s13 + $0x4] sm:$0x7]  ;;  %v834_v24 = vrot.slane %v768_v21, 2  ;;  %vm1897_vm7 = vmor %vm848_vm3, %vm849_vm4  ;;  %s686_s11 = scalar_lea.vmem [#allocation6], %s1918_s25 }
  0x59   : > { %786 = vst [vmem:[#allocation1 + $0x1] ss:$4 sm:$0xff] %v775_v20  ;;  %v835_v25 = vrot.slane %v769_v22, 2  ;;  %vm851_vm5 = vsmask.f32 5392  ;;  %s670_s13 = sand.u32 1, %s1639_s29  }
  0x5a   : > { %v838_v26 = vsel %vm836_vm1, %v768_v21, %v834_v24  ;;  %v840_v27 = vsel %vm839_vm2, %v768_v21, %v834_v24  ;;  %v933_v40 = vld [vmem:[%s2037_s22 + $0x10] sm:$0xf]  ;;  %v999_v44 = vld [vmem:[%s2037_s22 + $0x14] sm:$0xf]  ;;  %vm852_vm8 = vmor %vm1897_vm7, %vm851_vm5  ;;  %vm853_vm9 = vsmask.f32 7448 }
  0x5b   : > { %v842_v28 = vrot.slane %v840_v27, 2  ;;  %v844_v29 = vsel %vm836_vm1, %v769_v22, %v835_v25  ;;  %v845_v30 = vsel %vm839_vm2, %v769_v22, %v835_v25  ;;  %v855_v32 = vshrl.u32 %v838_v26, 16  ;;  %vm1914_vm10 = vmor %vm852_vm8, %vm853_vm9  ;;  %v1025_v55 = vld [vmem:[%s2037_s22 + $0x18] sm:$0xf]  ;;  %v771_v61 = vld [vmem:[%s665_s9 + $0x4] sm:$0x7] }
  0x5c   : > { %v847_v31 = vrot.slane %v845_v30, 2  ;;  %v858_v33 = vshll.u32 %v838_v26, 16  ;;  %v868_v34 = vshrl.u32 %v844_v29, 16  ;;  %v871_v35 = vshll.u32 %v844_v29, 16  ;;  %v770_v60 = vld [vmem:[%s665_s9] sm:$0x7] }
  0x5d   : > { %v857_v37 = vrot.slane %v855_v32, 6  ;;  %v864_v41 = vshll.u32 %v842_v28, 16  ;;  %v943_v43 = vsel %vm791_vm0, %v933_v40, 0  ;;  %v1009_v48 = vsel %vm791_vm0, %v999_v44, 0  ;;  %v1051_v1 = vld [vmem:[%s2037_s22 + $0x1c] sm:$0xf] }
  0x5e   : > { %v860_v38 = vrot.slane %v858_v33, 7  ;;  %v870_v39 = vrot.slane %v868_v34, 6  ;;  %v873_v42 = vrot.slane %v871_v35, 7  ;;  %v877_v47 = vshll.u32 %v847_v31, 16  ;;  %952 = vmatpush.bf16.msrb.mxu0 %v943_v43  ;;  %1018 = vmatpush.bf16.msrb.mxu1 %v1009_v48  ;;  %v1117_v17 = vld [vmem:[%s2037_s22 + $0x20] sm:$0xf] }
  0x5f   : > { %v866_v51 = vrot.slane %v864_v41, 7  ;;  %v1035_v57 = vsel %vm791_vm0, %v1025_v55, 0  ;;  %v961_v62 = vrot.slane %v770_v60, 2  ;;  %v962_v63 = vrot.slane %v771_v61, 2  ;;  %v776_v18 = vld [vmem:[%s686_s11] sm:$0x7] }
  0x60   : > { %v787_v45 = vld.sshfl [vmem:[#allocation1] sm:$0xff pattern:$0x73625140]  ;;  %v861_v46 = vor.u32 %v860_v38, %v857_v37  ;;  %v874_v49 = vor.u32 %v873_v42, %v870_v39  ;;  %v879_v54 = vrot.slane %v877_v47, 7  ;;  %1044 = vmatpush.bf16.msrb.mxu2 %v1035_v57  ;;  %v1061_v3 = vsel %vm791_vm0, %v1051_v1, 0  ;;  %s1946_s21 = sshll.u32 %s670_s13, 3 }
  0x61   : > { %1472 = vmatmul.msk.bf16.vlgmr.msra.gmra.mxu0 %vm788_vm6, %v787_v45  ;;  %809 = vst [vmem:[#allocation1] ss:$4 sm:$0xff] %v768_v21  ;;  %v964_v0 = vsel %vm836_vm1, %v770_v60, %v961_v62  ;;  %v969_v2 = vsel %vm836_vm1, %v771_v61, %v962_v63  ;;  %1070 = vmatpush.bf16.msrb.mxu3 %v1061_v3  ;;  %v1127_v19 = vsel %vm791_vm0, %v1117_v17, 0  ;;  %v777_v20 = vld [vmem:[%s686_s11 + $0x4] sm:$0x7]  ;;  %s672_s26 = scalar_lea.vmem [#allocation4], %s1946_s21 }
  0x62   : > { %812 = vst [vmem:[#allocation1 + $0x1] ss:$4 sm:$0xff] %v769_v22  ;;  %v862_v50 = vrot.slane %v861_v46, 2  ;;  %v875_v53 = vrot.slane %v874_v49, 2  ;;  %v973_v5 = vshrl.u32 %v964_v0, 16  ;;  %v976_v6 = vshll.u32 %v964_v0, 16  ;;  %1136 = vmatpush.bf16.msra.mxu0 %v1127_v19 }
  0x63   : > { %v965_v7 = vsel %vm839_vm2, %v770_v60, %v961_v62  ;;  %v986_v8 = vshrl.u32 %v969_v2, 16  ;;  %v989_v9 = vshll.u32 %v969_v2, 16  ;;  %v970_v10 = vsel %vm839_vm2, %v771_v61, %v962_v63  ;;  %v772_v33 = vld [vmem:[%s672_s26] sm:$0x7]  ;;  %v773_v34 = vld [vmem:[%s672_s26 + $0x4] sm:$0x7] }
  0x64   : > { %v867_v56 = vsel %vm1914_vm10, %v862_v50, %v866_v51  ;;  %v880_v58 = vsel %vm1914_vm10, %v875_v53, %v879_v54  ;;  %v967_v11 = vrot.slane %v965_v7, 2  ;;  %v975_v12 = vrot.slane %v973_v5, 6  ;;  %s693_s29 = scalar_lea.vmem [#allocation7], %s1946_s21  ;;  %s747_s25 = sand.u32 1, %s1631_s27  }
  0x65   : > { %v978_v13 = vrot.slane %v976_v6, 7  ;;  %v972_v14 = vrot.slane %v970_v10, 2  ;;  %v988_v15 = vrot.slane %v986_v8, 6  ;;  %v991_v16 = vrot.slane %v989_v9, 7  ;;  %v778_v53 = vld [vmem:[%s693_s29] sm:$0x7] }
  0x66   : > { %v982_v22 = vshll.u32 %v967_v11, 16  ;;  %v1079_v35 = vrot.slane %v772_v33, 2  ;;  %v1080_v36 = vrot.slane %v773_v34, 2  ;;  %s1471_s17 = sshll.u32 %s747_s25, 2  ;;  %s2044_s9 = sld [smem:[#allocation10_spill]] (%p1827_p0) }
  0x67   : > { %v979_v21 = vor.u32 %v978_v13, %v975_v12  ;;  %v992_v24 = vor.u32 %v991_v16, %v988_v15  ;;  %v995_v25 = vshll.u32 %v972_v14, 16  ;;  %s749_s23 = scalar_lea.vmem [#allocation8], %s1471_s17  ;;  %s2045_s18 = sld [smem:[#allocation18_spill]] (%p1827_p0) }
  0x68   : > { %v984_v27 = vrot.slane %v982_v22, 7  ;;  %v1082_v37 = vsel %vm836_vm1, %v772_v33, %v1079_v35  ;;  %v1087_v38 = vsel %vm836_vm1, %v773_v34, %v1080_v36  ;;  %v1083_v42 = vsel %vm839_vm2, %v772_v33, %v1079_v35 }
  0x69   : > { %v813_v59 = vld.sshfl [vmem:[#allocation1] sm:$0xff pattern:$0x73625140]  ;;  %v980_v26 = vrot.slane %v979_v21, 2  ;;  %v993_v28 = vrot.slane %v992_v24, 2  ;;  %v997_v29 = vrot.slane %v995_v25, 7  ;;  %v1088_v45 = vsel %vm839_vm2, %v773_v34, %v1080_v36 }
  0x6a   : > { %1473 = vmatmul.msk.bf16.vlgmr.msra.gmra.mxu1 %vm788_vm6, %v813_v59  ;;  %883 = vst [vmem:[#allocation1] ss:$4 sm:$0xff] %v867_v56  ;;  %v1091_v40 = vshrl.u32 %v1082_v37, 16  ;;  %v1094_v41 = vshll.u32 %v1082_v37, 16  ;;  %v1104_v43 = vshrl.u32 %v1087_v38, 16  ;;  %v1107_v44 = vshll.u32 %v1087_v38, 16 }
  0x6b   : > { %886 = vst [vmem:[#allocation1 + $0x1] ss:$4 sm:$0xff] %v880_v58  ;;  %v985_v30 = vsel %vm1914_vm10, %v980_v26, %v984_v27  ;;  %v998_v31 = vsel %vm1914_vm10, %v993_v28, %v997_v29  ;;  %v1085_v46 = vrot.slane %v1083_v42, 2  ;;  %v1090_v49 = vrot.slane %v1088_v45, 2  ;;  %v779_v56 = vld [vmem:[%s693_s29 + $0x4] sm:$0x7] }
  0x6c   : > { %v1093_v47 = vrot.slane %v1091_v40, 6  ;;  %v1096_v48 = vrot.slane %v1094_v41, 7  ;;  %v1106_v50 = vrot.slane %v1104_v43, 6  ;;  %v1109_v51 = vrot.slane %v1107_v44, 7  ;;  %v1584_v25 = vld [vmem:[%s2043_s20] ss:$0 sm:$0xff] }
  0x6d   : > { %v1100_v55 = vshll.u32 %v1085_v46, 16  ;;  %v1113_v58 = vshll.u32 %v1090_v49, 16  ;;  %s1486_s8 = sshll.u32 (%p1827_p0), %s2044_s9, 1 }
  0x6e   : > { %v1097_v54 = vor.u32 %v1096_v48, %v1093_v47  ;;  %v1110_v57 = vor.u32 %v1109_v51, %v1106_v50  ;;  %s1191_s6 = scalar_lea.vmem (%p1827_p0), %s2045_s18, %s1486_s8 }
  0x6f   : > { %v1115_v63 = vrot.slane %v1113_v58, 7 }
  0x70   : > { %v1111_v62 = vrot.slane %v1110_v57, 2 }
  0x72   : > { %v887_v4 = vld.sshfl [vmem:[#allocation1] sm:$0xff pattern:$0x73625140]  ;;  %v1116_v1 = vsel %vm1914_vm10, %v1111_v62, %v1115_v63 }
  0x73   : > { %1474 = vmatmul.msk.bf16.vlgmr.msra.gmra.mxu2 %vm788_vm6, %v887_v4  ;;  %909 = vst [vmem:[#allocation1] ss:$4 sm:$0xff] %v770_v60  ;;  %v1098_v60 = vrot.slane %v1097_v54, 2 }
  0x74   : > { %912 = vst [vmem:[#allocation1 + $0x1] ss:$4 sm:$0xff] %v771_v61  ;;  %v1102_v61 = vrot.slane %v1100_v55, 7 }
  0x76   : > { %v1103_v0 = vsel %vm1914_vm10, %v1098_v60, %v1102_v61 }
  0x7b   : > { %v913_v23 = vld.sshfl [vmem:[#allocation1] sm:$0xff pattern:$0x73625140] }
  0x7c   : > { %1475 = vmatmul.msk.bf16.vlgmr.msra.gmra.mxu3 %vm788_vm6, %v913_v23  ;;  %935 = vst [vmem:[#allocation1] ss:$4 sm:$0xff] %v776_v18 }
  0x7d   : > { %938 = vst [vmem:[#allocation1 + $0x1] ss:$4 sm:$0xff] %v777_v20 }
  0x84   : > { %v939_v32 = vld.sshfl [vmem:[#allocation1] sm:$0xff pattern:$0x73625140] }
  0x85   : > { %1476 = vmatmul.msk.bf16.vlgmr.msrb.gmra.mxu0 %vm788_vm6, %v939_v32  ;;  %1001 = vst [vmem:[#allocation1] ss:$4 sm:$0xff] %v985_v30  ;;  %v1673_v30 = vmov 0.0  }
  0x86   : > { %1004 = vst [vmem:[#allocation1 + $0x1] ss:$4 sm:$0xff] %v998_v31 }
  0x8d   : > { %v1005_v39 = vld.sshfl [vmem:[#allocation1] sm:$0xff pattern:$0x73625140] }
  0x8e   : > { %1477 = vmatmul.msk.bf16.vlgmr.msrb.gmra.mxu1 %vm788_vm6, %v1005_v39  ;;  %1027 = vst [vmem:[#allocation1] ss:$4 sm:$0xff] %v772_v33 }
  0x8f   : > { %1030 = vst [vmem:[#allocation1 + $0x1] ss:$4 sm:$0xff] %v773_v34 }
  0x96   : > { %v1031_v59 = vld.sshfl [vmem:[#allocation1] sm:$0xff pattern:$0x73625140] }
  0x97   : > { %1478 = vmatmul.msk.bf16.vlgmr.msrb.gmra.mxu2 %vm788_vm6, %v1031_v59  ;;  %1053 = vst [vmem:[#allocation1] ss:$4 sm:$0xff] %v778_v53 }
  0x98   : > { %1056 = vst [vmem:[#allocation1 + $0x1] ss:$4 sm:$0xff] %v779_v56 }
  0x9f   : > { %v1057_v2 = vld.sshfl [vmem:[#allocation1] sm:$0xff pattern:$0x73625140] }
  0xa0   : > { %1479 = vmatmul.msk.bf16.vlgmr.msrb.gmra.mxu3 %vm788_vm6, %v1057_v2  ;;  %1119 = vst [vmem:[#allocation1] ss:$4 sm:$0xff] %v1103_v0 }
  0xa1   : > { %1122 = vst [vmem:[#allocation1 + $0x1] ss:$4 sm:$0xff] %v1116_v1 }
  0xa8   : > { %v1123_v3 = vld.sshfl [vmem:[#allocation1] sm:$0xff pattern:$0x73625140] }
  0xa9   : > { %1480 = vmatmul.msk.bf16.vlgmr.msra.gmra.mxu0 %vm788_vm6, %v1123_v3 }
  0xde   : > { %v804_v4 = vpop.f32.mrf.mxu0 }
  0xe6   : > { %v806_v5 = vpop.f32.mrf.mxu0 }
  0xe7   : > { %v828_v6 = vpop.f32.mrf.mxu1 }
  0xe8   : > { %v829_v14 = vadd.f32 %v828_v6, %v804_v4 }
  0xef   : > { %v830_v7 = vpop.f32.mrf.mxu1 }
  0xf6   : > { %v902_v8 = vpop.f32.mrf.mxu2 }
  0xf7   : > { %v906_v16 = vadd.f32 %v902_v8, %v829_v14 }
  0xfe   : > { %v904_v9 = vpop.f32.mrf.mxu2 }
  0xff   : > { %v928_v10 = vpop.f32.mrf.mxu3 }
 0x100   : > { %v932_v17 = vadd.f32 %v928_v10, %v906_v16 }
 0x102   : > { %v954_v11 = vpop.f32.mrf.mxu0 }
 0x103   : > { %v958_v19 = vadd.f32 %v954_v11, %v932_v17 }
 0x107   : > { %v930_v12 = vpop.f32.mrf.mxu3 }
 0x10a   : > { %v956_v13 = vpop.f32.mrf.mxu0 }
 0x10b   : > { %v1020_v52 = vpop.f32.mrf.mxu1 }
 0x10c   : > { %v1024_v20 = vadd.f32 %v1020_v52, %v958_v19 }
 0x113   : > { %v1022_v15 = vpop.f32.mrf.mxu1 }
 0x11a   : > { %v1046_v18 = vpop.f32.mrf.mxu2 }
 0x11b   : > { %v1050_v21 = vadd.f32 %v1046_v18, %v1024_v20 }
 0x122   : > { %v1048_v22 = vpop.f32.mrf.mxu2 }
 0x123   : > { %v1072_v23 = vpop.f32.mrf.mxu3 }
 0x124   : > { %v1076_v24 = vadd.f32 %v1072_v23, %v1050_v21 }
 0x126   : > { %v1138_v26 = vpop.f32.mrf.mxu0 }
 0x127   : > { %v1142_v27 = vadd.f32 %v1138_v26, %v1076_v24 }
 0x129   : > { %v1147_v28 = vadd.f32 %v1584_v25, %v1142_v27 }
 0x12b   : > { %vm1149_vm11 = vcmp.ge.f32.partialorder %v1147_v28, 3.999  ;;  %v1074_v29 = vpop.f32.mrf.mxu3 }
 0x12c   : > { %v1481_v31 = vsel %vm1149_vm11, 1.0, %v1673_v30 }
 0x12d   : > { %v1153_v32 = vmul.f32 3.999, %v1481_v31 }
 0x12e   : > { %v1140_v33 = vpop.f32.mrf.mxu0 }
 0x12f   : > { %v1154_v34 = vsub.f32 %v1147_v28, %v1153_v32 }
 0x131   : > { %v1155_v35 = vadd.f32 %v1154_v34, %v1147_v28 }
 0x133   : > { %vm1156_vm12 = vcmp.ge.f32.partialorder %v1155_v35, 3.999 }
 0x134   : > { %v1482_v36 = vsel %vm1156_vm12, 1.0, %v1673_v30 }
 0x135   : > { %v1160_v37 = vmul.f32 3.999, %v1482_v36  ;;  %v1159_v43 = vadd.f32 %v1482_v36, %v1481_v31 }
 0x137   : > { %v1161_v38 = vsub.f32 %v1155_v35, %v1160_v37 }
 0x139   : > { %v1162_v39 = vadd.f32 %v1161_v38, %v1147_v28 }
 0x13b   : > { %vm1163_vm13 = vcmp.ge.f32.partialorder %v1162_v39, 3.999 }
 0x13c   : > { %v1483_v40 = vsel %vm1163_vm13, 1.0, %v1673_v30 }
 0x13d   : > { %v1167_v41 = vmul.f32 3.999, %v1483_v40  ;;  %v1166_v45 = vadd.f32 %v1483_v40, %v1159_v43 }
 0x13f   : > { %v1168_v42 = vsub.f32 %v1162_v39, %v1167_v41 }
 0x141   : > { %v1169_v44 = vadd.f32 %v1168_v42, %v1147_v28 }
 0x143   : > { %vm1170_vm14 = vcmp.ge.f32.partialorder %v1169_v44, 3.999 }
 0x144   : > { %v1484_v46 = vsel %vm1170_vm14, 1.0, %v1673_v30 }
 0x145   : > { %v1173_v47 = vadd.f32 %v1484_v46, %v1166_v45 }
 0x147   : > { %v1174_v48 = vmul.f32 0.25, %v1173_v47 }
 0x149   : > { %v1176_v49 = vrot.slane %v1174_v48, 4  ;;  %v1178_v50 = vpack.c.bf16 %v1174_v48, %v1174_v48  ;;  %1188 = sbr.rel (!%p1827_p0) target bundleno = 342 (0x156), region = 302 }
 0x14b   : > { %v1179_v51 = vpack.c.bf16 %v1176_v49, %v1176_v49  ;;  %1180 = vst [vmem:[%s749_s23] sm:$0x3] %v1178_v50 }
 0x14d   : > { %1181 = vst [vmem:[%s749_s23 + $0x2] sm:$0x3] %v1179_v51 }
 0x152   : > { %v1208_v53 = vld [vmem:[%s749_s23] sm:$0x3] }
 0x153   : > { %1209 = vst [vmem:[%s1191_s6] sm:$0x3] %v1208_v53 }
 0x154   : > { %v1210_v54 = vld [vmem:[%s749_s23 + $0x2] sm:$0x3] }
 0x155   : > { %1211 = vst [vmem:[%s1191_s6 + $0x8] sm:$0x3] %v1210_v54 }
 0x156 PF: > { %s18_s15 = sadd.s32 1, %s1671_s15   ;;  %s2046_s11 = sld [smem:[#allocation15_spill]] }
 0x157   : > { %p15_p5 = scmp.ge.s32.totalorder %s18_s15, 6   ;;  %s2047_s7 = sld [smem:[#allocation14_spill]] }
 0x158   : > { %s2048_s13 = sld [smem:[#allocation13_spill]]  ;;  %s2051_s27 = smov %s1635_s28 }
 0x159   : > { %s2049_s21 = sld [smem:[#allocation12_spill]]  ;;  %s2053_s29 = smov %s1643_s30 }
 0x15a   : > { %s2050_s26 = sld [smem:[#allocation11_spill]]  ;;  %s2055_s9 = smov %s1651_s10 }
 0x15c   : > { %s2052_s28 = smov %s2046_s11  ;;  %s2057_s11 = smov %s1659_s12 }
 0x15d   : > { %s2054_s30 = smov %s2047_s7  ;;  %17 = sbr.rel (!%p15_p5) target bundleno = 10 (0xa), region = 422 }
 0x15e   : > { %s2056_s10 = smov %s2048_s13  ;;  %s2059_s13 = smov %s1667_s14 }
 0x15f   : > { %s2058_s12 = smov %s2049_s21 }
 0x160   : > { %s2060_s14 = smov %s2050_s26 }

// kernel: _lambda_.11
= control target key start
LH: loop header
LB: loop body
LE: loop exit
PB: predicated region body
PF: predicated region fallthrough
CT: control target
= control target key end

     0   :  { %vm28_vm0 = vcmask 130048   ;;  %s89_s1 = inlined_call_operand.vmem [shape: bf16[16,128], index: 1, kind: input, shape index: {}]   ;;  %s90_s0 = inlined_call_operand.vmem [shape: bf16[8,16], index: 0, kind: input, shape index: {}]   ;;  %s91_s2 = inlined_call_operand.vmem [shape: f32[1,128], index: 2, kind: input, shape index: {}]   ;;  %s92_s3 = inlined_call_operand.vmem [shape: f32[8,128], index: 3, kind: output, shape index: {}]  }
   0x1   :  { %v55_v0 = vld [vmem:[%s89_s1] sm:$0xff] }
   0x2   :  { %39 = vmatpush.bf16.msra.mxu0 %v55_v0  ;;  %v15_v1 = vld [vmem:[%s90_s0] sm:$0xf] }
   0x3   :  { %v56_v2 = vld [vmem:[%s91_s2] ss:$0 sm:$0xff] }
   0x5   :  { %54 = vmatmul.msk.bf16.vlgmr.msra.gmra.mxu0 %vm28_vm0, %v15_v1 }
  0x82   :  { %v41_v3 = vpop.f32.mrf.mxu0 }
  0x83   :  { %v42_v4 = vadd.f32 %v56_v2, %v41_v3 }
  0x85   :  { %45 = vst [vmem:[%s92_s3] sm:$0xff] %v42_v4 }
  0x8a   :  { %v43_v5 = vpop.f32.mrf.mxu0 }

// kernel: _lambda_.10
= control target key start
LH: loop header
LB: loop body
LE: loop exit
PB: predicated region body
PF: predicated region fallthrough
CT: control target
= control target key end

     0   :  { %vm40_vm0 = vcmask 130048   ;;  %s609_s0 = inlined_call_operand.vmem [shape: bf16[8,16,16], index: 0, kind: input, shape index: {}]   ;;  %s610_s1 = inlined_call_operand.vmem [shape: bf16[8,16], index: 1, kind: output, shape index: {}]  }
   0x1   :  { %v416_v0 = vld [vmem:[%s609_s0] sm:$0xff]   ;;  %v447_v1 = vld [vmem:[%s609_s0 + $0x8] sm:$0xff]   ;;  %v448_v2 = vld [vmem:[%s609_s0 + $0x10] sm:$0xff]  }
   0x2   :  { %v417_v3 = vunpack.c.l.bf16 %v416_v0  ;;  %v418_v4 = vunpack.c.h.bf16 %v416_v0  ;;  %v421_v5 = vunpack.c.l.bf16 %v447_v1  ;;  %v422_v6 = vunpack.c.h.bf16 %v447_v1  ;;  %v449_v7 = vld [vmem:[%s609_s0 + $0x18] sm:$0xff]   ;;  %v450_v8 = vld [vmem:[%s609_s0 + $0x20] sm:$0xff]   ;;  %v451_v9 = vld [vmem:[%s609_s0 + $0x28] sm:$0xff]  }
   0x3   :  { %v425_v10 = vunpack.c.l.bf16 %v448_v2  ;;  %v426_v11 = vunpack.c.h.bf16 %v448_v2  ;;  %v429_v12 = vunpack.c.l.bf16 %v449_v7  ;;  %v430_v13 = vunpack.c.h.bf16 %v449_v7  ;;  %v452_v14 = vld [vmem:[%s609_s0 + $0x30] sm:$0xff]   ;;  %v453_v15 = vld [vmem:[%s609_s0 + $0x38] sm:$0xff]  }
   0x4   :  { %v433_v16 = vunpack.c.l.bf16 %v450_v8  ;;  %v434_v17 = vunpack.c.h.bf16 %v450_v8  ;;  %v437_v18 = vunpack.c.l.bf16 %v451_v9  ;;  %v438_v19 = vunpack.c.h.bf16 %v451_v9 }
   0x5   :  { %v441_v20 = vunpack.c.l.bf16 %v452_v14  ;;  %v442_v21 = vunpack.c.h.bf16 %v452_v14  ;;  %v445_v22 = vunpack.c.l.bf16 %v453_v15  ;;  %v446_v23 = vunpack.c.h.bf16 %v453_v15 }
   0x6   :  { %v41_v24 = vsel %vm40_vm0, %v417_v3, 0.0  ;;  %v42_v25 = vsel %vm40_vm0, %v418_v4, 0.0  ;;  %v50_v26 = vsel %vm40_vm0, %v421_v5, 0.0  ;;  %v51_v27 = vsel %vm40_vm0, %v422_v6, 0.0 }
   0x7   :  { %v43_v28 = vadd.f32 %v42_v25, %v41_v24  ;;  %v52_v29 = vadd.f32 %v51_v27, %v50_v26  ;;  %v59_v30 = vsel %vm40_vm0, %v425_v10, 0.0  ;;  %v60_v31 = vsel %vm40_vm0, %v426_v11, 0.0 }
   0x8   :  { %v61_v32 = vadd.f32 %v60_v31, %v59_v30  ;;  %v68_v33 = vsel %vm40_vm0, %v429_v12, 0.0  ;;  %v69_v34 = vsel %vm40_vm0, %v430_v13, 0.0  ;;  %v77_v35 = vsel %vm40_vm0, %v433_v16, 0.0 }
   0x9   :  { %v44_v36 = vrot.slane %v43_v28, 4  ;;  %v53_v37 = vrot.slane %v52_v29, 4  ;;  %v70_v38 = vadd.f32 %v69_v34, %v68_v33  ;;  %v78_v39 = vsel %vm40_vm0, %v434_v17, 0.0 }
   0xa   :  { %v62_v40 = vrot.slane %v61_v32, 4  ;;  %v79_v41 = vadd.f32 %v78_v39, %v77_v35  ;;  %v86_v42 = vsel %vm40_vm0, %v437_v18, 0.0  ;;  %v87_v43 = vsel %vm40_vm0, %v438_v19, 0.0 }
   0xb   :  { %v45_v44 = vadd.f32 %v44_v36, %v43_v28  ;;  %v54_v45 = vadd.f32 %v53_v37, %v52_v29  ;;  %v71_v46 = vrot.slane %v70_v38, 4  ;;  %v88_v47 = vadd.f32 %v87_v43, %v86_v42 }
   0xc   :  { %v63_v48 = vadd.f32 %v62_v40, %v61_v32  ;;  %v80_v49 = vrot.slane %v79_v41, 4  ;;  %v95_v50 = vsel %vm40_vm0, %v441_v20, 0.0  ;;  %v96_v51 = vsel %vm40_vm0, %v442_v21, 0.0 }
   0xd   :  { %v46_v52 = vrot.slane %v45_v44, 2  ;;  %v55_v53 = vrot.slane %v54_v45, 2  ;;  %v72_v54 = vadd.f32 %v71_v46, %v70_v38  ;;  %v89_v55 = vrot.slane %v88_v47, 4 }
   0xe   :  { %v64_v56 = vrot.slane %v63_v48, 2  ;;  %v81_v57 = vadd.f32 %v80_v49, %v79_v41  ;;  %v97_v58 = vadd.f32 %v96_v51, %v95_v50  ;;  %v104_v59 = vsel %vm40_vm0, %v445_v22, 0.0 }
   0xf   :  { %v47_v60 = vadd.f32 %v46_v52, %v45_v44  ;;  %v56_v61 = vadd.f32 %v55_v53, %v54_v45  ;;  %v73_v62 = vrot.slane %v72_v54, 2  ;;  %v90_v63 = vadd.f32 %v89_v55, %v88_v47 }
  0x10   :  { %v65_v0 = vadd.f32 %v64_v56, %v63_v48  ;;  %v82_v1 = vrot.slane %v81_v57, 2  ;;  %v98_v2 = vrot.slane %v97_v58, 4  ;;  %v105_v3 = vsel %vm40_vm0, %v446_v23, 0.0 }
  0x11   :  { %v48_v4 = vrot.slane %v47_v60, 1  ;;  %v57_v5 = vrot.slane %v56_v61, 1  ;;  %v74_v6 = vadd.f32 %v73_v62, %v72_v54  ;;  %v91_v7 = vrot.slane %v90_v63, 2 }
  0x12   :  { %v66_v8 = vrot.slane %v65_v0, 1  ;;  %v83_v9 = vadd.f32 %v82_v1, %v81_v57  ;;  %v99_v10 = vadd.f32 %v98_v2, %v97_v58  ;;  %v106_v11 = vadd.f32 %v105_v3, %v104_v59 }
  0x13   :  { %v49_v12 = vadd.f32 %v48_v4, %v47_v60  ;;  %v58_v13 = vadd.f32 %v57_v5, %v56_v61  ;;  %v75_v14 = vrot.slane %v74_v6, 1  ;;  %v92_v15 = vadd.f32 %v91_v7, %v90_v63 }
  0x14   :  { %v67_v16 = vadd.f32 %v66_v8, %v65_v0  ;;  %v84_v17 = vrot.slane %v83_v9, 1  ;;  %v100_v18 = vrot.slane %v99_v10, 2  ;;  %v107_v19 = vrot.slane %v106_v11, 4 }
  0x15   :  { %v76_v20 = vadd.f32 %v75_v14, %v74_v6  ;;  %v93_v21 = vrot.slane %v92_v15, 1  ;;  %v506_v22 = vmul.f32 0.0625, %v49_v12  ;;  %v508_v23 = vmul.f32 0.0625, %v58_v13 }
  0x16   :  { %v85_v24 = vadd.f32 %v84_v17, %v83_v9  ;;  %v101_v25 = vadd.f32 %v100_v18, %v99_v10  ;;  %v108_v26 = vadd.f32 %v107_v19, %v106_v11  ;;  %v510_v27 = vmul.f32 0.0625, %v67_v16 }
  0x17   :  { %v94_v28 = vadd.f32 %v93_v21, %v92_v15  ;;  %v512_v29 = vmul.f32 0.0625, %v76_v20  ;;  %vm129_vm1 = vcmp.ge.f32.partialorder %v506_v22, 3.999  ;;  %vm130_vm2 = vcmp.ge.f32.partialorder %v508_v23, 3.999 }
  0x18   :  { %v102_v30 = vrot.slane %v101_v25, 1  ;;  %v109_v31 = vrot.slane %v108_v26, 2  ;;  %v516_v32 = vmul.f32 0.0625, %v85_v24  ;;  %vm131_vm3 = vcmp.ge.f32.partialorder %v510_v27, 3.999 }
  0x19   :  { %v519_v33 = vmul.f32 0.0625, %v94_v28  ;;  %vm132_vm4 = vcmp.ge.f32.partialorder %v512_v29, 3.999  ;;  %v455_v34 = vmov 0.0  }
  0x1a   :  { %v383_v35 = vsel %vm129_vm1, 1.0, %v455_v34  ;;  %v384_v36 = vsel %vm130_vm2, 1.0, %v455_v34  ;;  %v103_v37 = vadd.f32 %v102_v30, %v101_v25  ;;  %v110_v38 = vadd.f32 %v109_v31, %v108_v26 }
  0x1b   :  { %vm133_vm5 = vcmp.ge.f32.partialorder %v516_v32, 3.999  ;;  %v385_v39 = vsel %vm131_vm3, 1.0, %v455_v34  ;;  %vm134_vm6 = vcmp.ge.f32.partialorder %v519_v33, 3.999  ;;  %v386_v40 = vsel %vm132_vm4, 1.0, %v455_v34 }
  0x1c   :  { %v529_v41 = vsel %vm133_vm5, 1.0, %v455_v34  ;;  %v161_v42 = vmul.f32 3.999, %v383_v35  ;;  %v111_v43 = vrot.slane %v110_v38, 1  ;;  %v531_v44 = vmul.f32 0.0625, %v103_v37 }
  0x1d   :  { %v534_v45 = vsel %vm134_vm6, 1.0, %v455_v34  ;;  %v162_v46 = vmul.f32 3.999, %v384_v36  ;;  %v163_v47 = vmul.f32 3.999, %v385_v39 }
  0x1e   :  { %v164_v48 = vmul.f32 3.999, %v386_v40  ;;  %v165_v49 = vmul.f32 3.999, %v529_v41  ;;  %v169_v50 = vsub.f32 %v506_v22, %v161_v42  ;;  %v112_v51 = vadd.f32 %v111_v43, %v110_v38 }
  0x1f   :  { %vm135_vm7 = vcmp.ge.f32.partialorder %v531_v44, 3.999  ;;  %v166_v52 = vmul.f32 3.999, %v534_v45  ;;  %v170_v53 = vsub.f32 %v508_v23, %v162_v46  ;;  %v171_v55 = vsub.f32 %v510_v27, %v163_v47 }
  0x20   :  { %v542_v54 = vsel %vm135_vm7, 1.0, %v455_v34  ;;  %v172_v56 = vsub.f32 %v512_v29, %v164_v48  ;;  %v173_v57 = vsub.f32 %v516_v32, %v165_v49  ;;  %v547_v58 = vmul.f32 0.0625, %v112_v51 }
  0x21   :  { %v167_v59 = vmul.f32 3.999, %v542_v54  ;;  %v174_v60 = vsub.f32 %v519_v33, %v166_v52  ;;  %v177_v61 = vadd.f32 %v169_v50, %v506_v22  ;;  %v178_v62 = vadd.f32 %v170_v53, %v508_v23 }
  0x22   :  { %v179_v63 = vadd.f32 %v171_v55, %v510_v27  ;;  %v180_v0 = vadd.f32 %v172_v56, %v512_v29  ;;  %v181_v1 = vadd.f32 %v173_v57, %v516_v32  ;;  %vm136_vm8 = vcmp.ge.f32.partialorder %v547_v58, 3.999 }
  0x23   :  { %v175_v2 = vsub.f32 %v531_v44, %v167_v59  ;;  %v182_v3 = vadd.f32 %v174_v60, %v519_v33  ;;  %vm185_vm9 = vcmp.ge.f32.partialorder %v177_v61, 3.999  ;;  %v390_v4 = vsel %vm136_vm8, 1.0, %v455_v34 }
  0x24   :  { %vm186_vm10 = vcmp.ge.f32.partialorder %v178_v62, 3.999  ;;  %vm187_vm11 = vcmp.ge.f32.partialorder %v179_v63, 3.999  ;;  %v168_v5 = vmul.f32 3.999, %v390_v4 }
  0x25   :  { %v183_v6 = vadd.f32 %v175_v2, %v531_v44  ;;  %vm188_vm12 = vcmp.ge.f32.partialorder %v180_v0, 3.999  ;;  %vm189_vm13 = vcmp.ge.f32.partialorder %v181_v1, 3.999  ;;  %vm190_vm14 = vcmp.ge.f32.partialorder %v182_v3, 3.999 }
  0x26   :  { %v391_v7 = vsel %vm185_vm9, 1.0, %v455_v34  ;;  %v176_v8 = vsub.f32 %v547_v58, %v168_v5  ;;  %v392_v9 = vsel %vm186_vm10, 1.0, %v455_v34  ;;  %v393_v10 = vsel %vm187_vm11, 1.0, %v455_v34 }
  0x27   :  { %vm191_vm15 = vcmp.ge.f32.partialorder %v183_v6, 3.999  ;;  %v394_v11 = vsel %vm188_vm12, 1.0, %v455_v34  ;;  %v395_v12 = vsel %vm189_vm13, 1.0, %v455_v34  ;;  %v396_v14 = vsel %vm190_vm14, 1.0, %v455_v34 }
  0x28   :  { %v184_v13 = vadd.f32 %v176_v8, %v547_v58  ;;  %v397_v15 = vsel %vm191_vm15, 1.0, %v455_v34  ;;  %v209_v16 = vadd.f32 %v391_v7, %v383_v35  ;;  %v210_v17 = vadd.f32 %v392_v9, %v384_v36 }
  0x29   :  { %v217_v18 = vmul.f32 3.999, %v391_v7  ;;  %v218_v19 = vmul.f32 3.999, %v392_v9  ;;  %v219_v20 = vmul.f32 3.999, %v393_v10  ;;  %v211_v21 = vadd.f32 %v393_v10, %v385_v39 }
  0x2a   :  { %vm192_vm0 = vcmp.ge.f32.partialorder %v184_v13, 3.999  ;;  %v220_v24 = vmul.f32 3.999, %v394_v11  ;;  %v221_v25 = vmul.f32 3.999, %v395_v12  ;;  %v212_v37 = vadd.f32 %v394_v11, %v386_v40 }
  0x2b   :  { %v398_v26 = vsel %vm192_vm0, 1.0, %v455_v34  ;;  %v222_v28 = vmul.f32 3.999, %v396_v14  ;;  %v223_v30 = vmul.f32 3.999, %v397_v15  ;;  %v225_v31 = vsub.f32 %v177_v61, %v217_v18 }
  0x2c   :  { %v224_v38 = vmul.f32 3.999, %v398_v26  ;;  %v226_v42 = vsub.f32 %v178_v62, %v218_v19  ;;  %v227_v43 = vsub.f32 %v179_v63, %v219_v20  ;;  %v228_v46 = vsub.f32 %v180_v0, %v220_v24 }
  0x2d   :  { %v229_v47 = vsub.f32 %v181_v1, %v221_v25  ;;  %v230_v35 = vsub.f32 %v182_v3, %v222_v28  ;;  %v231_v36 = vsub.f32 %v183_v6, %v223_v30  ;;  %v233_v49 = vadd.f32 %v225_v31, %v506_v22 }
  0x2e   :  { %v232_v48 = vsub.f32 %v184_v13, %v224_v38  ;;  %v234_v39 = vadd.f32 %v226_v42, %v508_v23  ;;  %v235_v50 = vadd.f32 %v227_v43, %v510_v27  ;;  %v236_v51 = vadd.f32 %v228_v46, %v512_v29 }
  0x2f   :  { %v237_v52 = vadd.f32 %v229_v47, %v516_v32  ;;  %v238_v40 = vadd.f32 %v230_v35, %v519_v33  ;;  %v239_v53 = vadd.f32 %v231_v36, %v531_v44  ;;  %vm241_vm1 = vcmp.ge.f32.partialorder %v233_v49, 3.999 }
  0x30   :  { %v240_v55 = vadd.f32 %v232_v48, %v547_v58  ;;  %vm242_vm2 = vcmp.ge.f32.partialorder %v234_v39, 3.999  ;;  %vm243_vm3 = vcmp.ge.f32.partialorder %v235_v50, 3.999  ;;  %v213_v56 = vadd.f32 %v395_v12, %v529_v41 }
  0x31   :  { %vm244_vm4 = vcmp.ge.f32.partialorder %v236_v51, 3.999  ;;  %vm245_vm5 = vcmp.ge.f32.partialorder %v237_v52, 3.999  ;;  %vm246_vm6 = vcmp.ge.f32.partialorder %v238_v40, 3.999  ;;  %v214_v57 = vadd.f32 %v396_v14, %v534_v45 }
  0x32   :  { %v215_v59 = vadd.f32 %v397_v15, %v542_v54  ;;  %vm247_vm7 = vcmp.ge.f32.partialorder %v239_v53, 3.999  ;;  %vm248_vm8 = vcmp.ge.f32.partialorder %v240_v55, 3.999  ;;  %v216_v60 = vadd.f32 %v398_v26, %v390_v4 }
  0x33   :  { %v399_v61 = vsel %vm241_vm1, 1.0, %v455_v34  ;;  %v400_v62 = vsel %vm242_vm2, 1.0, %v455_v34  ;;  %v401_v63 = vsel %vm243_vm3, 1.0, %v455_v34  ;;  %v402_v0 = vsel %vm244_vm4, 1.0, %v455_v34 }
  0x34   :  { %v403_v41 = vsel %vm245_vm5, 1.0, %v455_v34  ;;  %v404_v1 = vsel %vm246_vm6, 1.0, %v455_v34  ;;  %v405_v2 = vsel %vm247_vm7, 1.0, %v455_v34  ;;  %v406_v45 = vsel %vm248_vm8, 1.0, %v455_v34 }
  0x35   :  { %v265_v54 = vadd.f32 %v399_v61, %v209_v16  ;;  %v266_v3 = vadd.f32 %v400_v62, %v210_v17  ;;  %v267_v5 = vadd.f32 %v401_v63, %v211_v21  ;;  %v268_v4 = vadd.f32 %v402_v0, %v212_v37 }
  0x36   :  { %v269_v6 = vadd.f32 %v403_v41, %v213_v56  ;;  %v273_v7 = vmul.f32 3.999, %v399_v61  ;;  %v274_v8 = vmul.f32 3.999, %v400_v62  ;;  %v270_v9 = vadd.f32 %v404_v1, %v214_v57 }
  0x37   :  { %v275_v10 = vmul.f32 3.999, %v401_v63  ;;  %v276_v11 = vmul.f32 3.999, %v402_v0  ;;  %v277_v12 = vmul.f32 3.999, %v403_v41  ;;  %v271_v46 = vadd.f32 %v405_v2, %v215_v59 }
  0x38   :  { %v278_v13 = vmul.f32 3.999, %v404_v1  ;;  %v279_v14 = vmul.f32 3.999, %v405_v2  ;;  %v280_v15 = vmul.f32 3.999, %v406_v45  ;;  %v281_v18 = vsub.f32 %v233_v49, %v273_v7 }
  0x39   :  { %v282_v19 = vsub.f32 %v234_v39, %v274_v8  ;;  %v283_v20 = vsub.f32 %v235_v50, %v275_v10  ;;  %v284_v24 = vsub.f32 %v236_v51, %v276_v11  ;;  %v285_v25 = vsub.f32 %v237_v52, %v277_v12 }
  0x3a   :  { %v286_v26 = vsub.f32 %v238_v40, %v278_v13  ;;  %v287_v16 = vsub.f32 %v239_v53, %v279_v14  ;;  %v288_v17 = vsub.f32 %v240_v55, %v280_v15  ;;  %v289_v21 = vadd.f32 %v281_v18, %v506_v22 }
  0x3b   :  { %v290_v28 = vadd.f32 %v282_v19, %v508_v23  ;;  %v291_v30 = vadd.f32 %v283_v20, %v510_v27  ;;  %v292_v31 = vadd.f32 %v284_v24, %v512_v29  ;;  %v293_v37 = vadd.f32 %v285_v25, %v516_v32 }
  0x3c   :  { %v294_v38 = vadd.f32 %v286_v26, %v519_v33  ;;  %v295_v42 = vadd.f32 %v287_v16, %v531_v44  ;;  %v296_v43 = vadd.f32 %v288_v17, %v547_v58  ;;  %vm297_vm9 = vcmp.ge.f32.partialorder %v289_v21, 3.999 }
  0x3d   :  { %vm298_vm10 = vcmp.ge.f32.partialorder %v290_v28, 3.999  ;;  %vm299_vm11 = vcmp.ge.f32.partialorder %v291_v30, 3.999  ;;  %vm300_vm12 = vcmp.ge.f32.partialorder %v292_v31, 3.999  ;;  %v272_v22 = vadd.f32 %v406_v45, %v216_v60 }
  0x3e   :  { %vm301_vm13 = vcmp.ge.f32.partialorder %v293_v37, 3.999  ;;  %vm302_vm14 = vcmp.ge.f32.partialorder %v294_v38, 3.999  ;;  %vm303_vm15 = vcmp.ge.f32.partialorder %v295_v42, 3.999 }
  0x3f   :  { %vm304_vm0 = vcmp.ge.f32.partialorder %v296_v43, 3.999  ;;  %v407_v23 = vsel %vm297_vm9, 1.0, %v455_v34  ;;  %v408_v27 = vsel %vm298_vm10, 1.0, %v455_v34  ;;  %v409_v29 = vsel %vm299_vm11, 1.0, %v455_v34 }
  0x40   :  { %v410_v32 = vsel %vm300_vm12, 1.0, %v455_v34  ;;  %v411_v33 = vsel %vm301_vm13, 1.0, %v455_v34  ;;  %v412_v44 = vsel %vm302_vm14, 1.0, %v455_v34  ;;  %v413_v58 = vsel %vm303_vm15, 1.0, %v455_v34 }
  0x41   :  { %v414_v47 = vsel %vm304_vm0, 1.0, %v455_v34  ;;  %v321_v35 = vadd.f32 %v407_v23, %v265_v54  ;;  %v322_v36 = vadd.f32 %v408_v27, %v266_v3  ;;  %v323_v48 = vadd.f32 %v409_v29, %v267_v5 }
  0x42   :  { %v324_v49 = vadd.f32 %v410_v32, %v268_v4  ;;  %v325_v39 = vadd.f32 %v411_v33, %v269_v6  ;;  %v326_v50 = vadd.f32 %v412_v44, %v270_v9  ;;  %v327_v51 = vadd.f32 %v413_v58, %v271_v46 }
  0x43   :  { %v328_v52 = vadd.f32 %v414_v47, %v272_v22  ;;  %v329_v40 = vmul.f32 0.25, %v321_v35  ;;  %v330_v53 = vmul.f32 0.25, %v322_v36  ;;  %v331_v55 = vmul.f32 0.25, %v323_v48 }
  0x44   :  { %v332_v56 = vmul.f32 0.25, %v324_v49  ;;  %v333_v57 = vmul.f32 0.25, %v325_v39  ;;  %v334_v59 = vmul.f32 0.25, %v326_v50  ;;  %v335_v60 = vmul.f32 0.25, %v327_v51 }
  0x45   :  { %v336_v61 = vmul.f32 0.25, %v328_v52  ;;  %v337_v62 = vpack.c.bf16 %v329_v40, %v329_v40  ;;  %v338_v63 = vpack.c.bf16 %v330_v53, %v330_v53  ;;  %v339_v0 = vpack.c.bf16 %v331_v55, %v331_v55 }
  0x46   :  { %v340_v34 = vpack.c.bf16 %v332_v56, %v332_v56  ;;  %v341_v41 = vpack.c.bf16 %v333_v57, %v333_v57  ;;  %v342_v1 = vpack.c.bf16 %v334_v59, %v334_v59  ;;  %v343_v2 = vpack.c.bf16 %v335_v60, %v335_v60 }
  0x47   :  { %v353_v45 = vunpack.c.l.b16 %v337_v62  ;;  %v354_v54 = vunpack.c.l.b16 %v338_v63  ;;  %v355_v3 = vunpack.c.l.b16 %v339_v0  ;;  %v344_v5 = vpack.c.bf16 %v336_v61, %v336_v61 }
  0x48   :  { %v356_v4 = vunpack.c.l.b16 %v340_v34  ;;  %v357_v6 = vunpack.c.l.b16 %v341_v41  ;;  %vm361_vm1 = vcmask 1041409   ;;  %vm363_vm2 = vcmask 1042434  }
  0x49   :  { %vm365_vm3 = vcmask 1043459   ;;  %v358_v7 = vunpack.c.l.b16 %v342_v1  ;;  %v362_v8 = vsel %vm361_vm1, %v354_v54, %v353_v45  ;;  %vm367_vm4 = vcmask 1044484  }
  0x4a   :  { %v359_v9 = vunpack.c.l.b16 %v343_v2  ;;  %v364_v10 = vsel %vm363_vm2, %v355_v3, %v362_v8  ;;  %vm369_vm5 = vcmask 1045509   ;;  %v360_v11 = vunpack.c.l.b16 %v344_v5 }
  0x4b   :  { %v366_v12 = vsel %vm365_vm3, %v356_v4, %v364_v10  ;;  %vm371_vm6 = vcmask 1046534   ;;  %vm373_vm7 = vcmask 1047559   ;;  %vm377_vm8 = vcmask 125952  }
  0x4c   :  { %v368_v13 = vsel %vm367_vm4, %v357_v6, %v366_v12 }
  0x4d   :  { %v370_v14 = vsel %vm369_vm5, %v358_v7, %v368_v13 }
  0x4e   :  { %v372_v15 = vsel %vm371_vm6, %v359_v9, %v370_v14 }
  0x4f   :  { %v374_v18 = vsel %vm373_vm7, %v360_v11, %v372_v15 }
  0x50   :  { %v375_v19 = vpack.c.b16 %v374_v18, %v374_v18 }
  0x52   :  { %378 = vst.msk [vmem:[%s610_s1] sm:$0xf] %vm377_vm8, %v375_v19 }

</bundles_post_ra>
